<compile_context>
chip_gen: v7x
topology: tpu7x:2x2x1
jax: 0.10.0
libtpu: 0.0.40
codegen_flags: <defaults>
</compile_context>

<pallas_src>
import functools

import jax
import jax.numpy as jnp
from jax import lax
from jax.experimental import pallas as pl
from jax.experimental.pallas import tpu as pltpu

LN_EPS = 1e-5  # nn.LayerNorm default


def _vmem_limit_bytes():
    cap = 128 * 1024 * 1024
    try:
        info = pltpu.get_tpu_info()
        cap = int(getattr(info, "vmem_capacity_bytes", cap))
    except Exception:
        pass
    # Leave headroom for double-buffering + internal scratch:
    # v5e/v6e (128 MiB) -> ~76 MiB, v7x (64 MiB) -> ~38 MiB.
    return min((cap * 3) // 5, 100 * 1024 * 1024)


VMEM_LIMIT = _vmem_limit_bytes()


def _pick_tile(dim, target, align):
    """Largest aligned tile <= target that divides dim (or the full dim)."""
    if dim <= target:
        return dim
    t = (target // align) * align
    while t >= align:
        if dim % t == 0:
            return t
        t -= align
    return dim  # fallback: one full-dimension block (always legal)


def _layer_norm(x, g, b):
    mu = jnp.mean(x, axis=-1, keepdims=True)
    var = jnp.mean(jnp.square(x - mu), axis=-1, keepdims=True)
    return (x - mu) * lax.rsqrt(var + LN_EPS) * g + b


# ----------------------------------------------------------------------------
# Kernel 1: tiled matmul (fused QKV projection and the R projection)
# ----------------------------------------------------------------------------
def _matmul_kernel(x_ref, w_ref, o_ref, acc_ref):
    @pl.when(pl.program_id(2) == 0)
    def _():
        acc_ref[...] = jnp.zeros_like(acc_ref)

    acc_ref[...] += jnp.dot(x_ref[...], w_ref[...],
                            preferred_element_type=jnp.float32)

    @pl.when(pl.program_id(2) == pl.num_programs(2) - 1)
    def _():
        o_ref[...] = acc_ref[...].astype(o_ref.dtype)


def pallas_matmul(x, w, *, out_dtype=jnp.float32, tm=256, tn=256, tk=1024):
    m, k = x.shape
    k2, n = w.shape
    assert k == k2
    m_orig = m
    if m > tm:
        pad = (-m) % tm          # pad rows to a multiple of the 16-aligned tile
        if pad:
            x = jnp.pad(x, ((0, pad), (0, 0)))
            m += pad
    else:
        tm = m
    tn = _pick_tile(n, tn, 128)
    tk = _pick_tile(k, tk, 128)
    out = pl.pallas_call(
        _matmul_kernel,
        out_shape=jax.ShapeDtypeStruct((m, n), out_dtype),
        grid_spec=pltpu.PrefetchScalarGridSpec(
            num_scalar_prefetch=0,
            grid=(m // tm, n // tn, k // tk),
            in_specs=[
                pl.BlockSpec((tm, tk), lambda i, j, kk: (i, kk)),
                pl.BlockSpec((tk, tn), lambda i, j, kk: (kk, j)),
            ],
            out_specs=pl.BlockSpec((tm, tn), lambda i, j, kk: (i, j)),
            scratch_shapes=[pltpu.VMEM((tm, tn), jnp.float32)],
        ),
        compiler_params=pltpu.CompilerParams(
            dimension_semantics=("parallel", "parallel", "arbitrary"),
            vmem_limit_bytes=VMEM_LIMIT),
    )(x, w)
    return out[:m_orig] if m != m_orig else out


# ----------------------------------------------------------------------------
# Kernel 2: relative-position attention core
#   grid = (bsz, head_groups); each step handles one head group of one batch
#   element; per-head Q/K/V relayout, ac/ef scores, mask-folded bd add,
#   softmax and P@V all happen in VMEM; output is lane-dense [qlen, H*d].
# ----------------------------------------------------------------------------
def _rel_attn_kernel(q_ref, k_ref, v_ref, bd_ref, seg_ref, rw_ref, rs_ref,
                     se_ref, out_ref, *, heads_per_step, d_head, scale):
    """Per (batch, head-group) step:
    q_ref/k_ref/v_ref : [1, qlen, 1, G, d]  bf16   (views of the fused qkv buf)
    bd_ref            : [1, G, qlen, klen]  bf16   (rel-shifted, scaled, mask folded)
    seg_ref           : [1, qlen, klen]     f32    (1.0 where same segment)
    rw_ref/rs_ref     : [1, G, d]           f32
    se_ref            : [1, 2, G, d]        f32
    out_ref           : [1, qlen, G*d]      bf16
    """
    seg_same = seg_ref[0]                                    # [q, k]
    for h in range(heads_per_step):
        lo = h * d_head
        q_h = q_ref[0, :, 0, h, :].astype(jnp.float32)       # [q, d]
        k_h = k_ref[0, :, 0, h, :]                           # [k, d] bf16
        v_h = v_ref[0, :, 0, h, :]                           # [k, d] bf16
        rw_h = rw_ref[0, h:h + 1, :]                         # [1, d]
        rs_h = rs_ref[0, h:h + 1, :]
        se0 = se_ref[0, 0, h:h + 1, :]                       # [1, d] same-segment
        se1 = se_ref[0, 1, h:h + 1, :]                       # [1, d] diff-segment

        # ac: content score, scale folded into the (small) query operand.
        qw = ((q_h + rw_h) * scale).astype(jnp.bfloat16)
        ac = lax.dot_general(qw, k_h, (((1,), (1,)), ((), ())),
                             preferred_element_type=jnp.float32)   # [q, k]

        # ef: segment score (per-query scalars broadcast over keys).
        qs = (q_h + rs_h) * scale
        ef0 = jnp.sum(qs * se0, axis=-1, keepdims=True)             # [q, 1]
        ef1 = jnp.sum(qs * se1, axis=-1, keepdims=True)
        ef = ef1 + seg_same * (ef0 - ef1)                           # [q, k]

        # bd already carries the -1e30 attention-mask bias.
        score = ac + bd_ref[0, h, :, :].astype(jnp.float32) + ef

        m = jnp.max(score, axis=-1, keepdims=True)
        p = jnp.exp(score - m)
        denom = jnp.sum(p, axis=-1, keepdims=True)
        prob = p * pl.reciprocal(denom, approx=True)

        av = lax.dot_general(prob.astype(jnp.bfloat16), v_h,
                             (((1,), (0,)), ((), ())),
                             preferred_element_type=jnp.float32)    # [q, d]
        out_ref[0, :, lo:lo + d_head] = av.astype(out_ref.dtype)


def _num_head_groups(n_head, d_head, qlen, klen, budget_bytes=4 * 1024 * 1024):
    """Split heads into groups so the per-step bf16 bd block stays small, while
    keeping every block shape (8,128)-legal."""
    per_head = qlen * klen * 2
    target = max(1, min(n_head, budget_bytes // max(per_head, 1)))
    for g in range(target, 0, -1):
        if n_head % g:
            continue
        if g == n_head or (g % 8 == 0 and (g * d_head) % 128 == 0):
            return n_head // g
    return 1


def rel_attn_core(qkv5, bd, seg_same, rw, rs, se, *, n_head, d_head, scale):
    bsz, qlen = qkv5.shape[0], qkv5.shape[1]
    hd = n_head * d_head
    klen = bd.shape[-1]
    n_groups = _num_head_groups(n_head, d_head, qlen, klen)
    gh = n_head // n_groups

    rw_g = rw.reshape(n_groups, gh, d_head)
    rs_g = rs.reshape(n_groups, gh, d_head)
    se_g = jnp.transpose(se.reshape(2, n_groups, gh, d_head), (1, 0, 2, 3))

    kernel = functools.partial(_rel_attn_kernel, heads_per_step=gh,
                               d_head=d_head, scale=scale)
    qspec = pl.BlockSpec((1, qlen, 1, gh, d_head), lambda b, g: (b, 0, 0, g, 0))
    kspec = pl.BlockSpec((1, qlen, 1, gh, d_head), lambda b, g: (b, 0, 1, g, 0))
    vspec = pl.BlockSpec((1, qlen, 1, gh, d_head), lambda b, g: (b, 0, 2, g, 0))

    return pl.pallas_call(
        kernel,
        out_shape=jax.ShapeDtypeStruct((bsz, qlen, hd), jnp.bfloat16),
        grid_spec=pltpu.PrefetchScalarGridSpec(
            num_scalar_prefetch=0,
            grid=(bsz, n_groups),
            in_specs=[
                qspec, kspec, vspec,
                pl.BlockSpec((1, gh, qlen, klen), lambda b, g: (b, g, 0, 0)),
                pl.BlockSpec((1, qlen, klen), lambda b, g: (b, 0, 0)),
                pl.BlockSpec((1, gh, d_head), lambda b, g: (g, 0, 0)),
                pl.BlockSpec((1, gh, d_head), lambda b, g: (g, 0, 0)),
                pl.BlockSpec((1, 2, gh, d_head), lambda b, g: (g, 0, 0, 0)),
            ],
            out_specs=pl.BlockSpec((1, qlen, gh * d_head),
                                   lambda b, g: (b, 0, g)),
        ),
        compiler_params=pltpu.CompilerParams(
            dimension_semantics=("parallel", "parallel"),
            vmem_limit_bytes=VMEM_LIMIT),
    )(qkv5, qkv5, qkv5, bd, seg_same, rw_g, rs_g, se_g)


# ----------------------------------------------------------------------------
# Kernel 3: fused post-attention (proj_o + residual + LN) + position-wise FFN
#           (conv1 + ReLU + residual + LN; reference never applies conv2).
#           Emits both an f32 copy (mems / final output) and a bf16 copy
#           (next layer's compute input).
# ----------------------------------------------------------------------------
def _post_attn_ffn_kernel(av_ref, h_ref, wo_ref, w1_ref, b1_ref, g_ref, b_ref,
                          o32_ref, o16_ref):
    g = g_ref[...]
    b = b_ref[...]
    attn_out = jnp.dot(av_ref[...], wo_ref[...],
                       preferred_element_type=jnp.float32)
    x = _layer_norm(attn_out + h_ref[...].astype(jnp.float32), g, b)
    ff = jnp.dot(x.astype(jnp.bfloat16), w1_ref[...],
                 preferred_element_type=jnp.float32) + b1_ref[...]
    ff = jnp.maximum(ff, 0.0)                 # ReLU (dropout p=0)
    y = _layer_norm(ff + x, g, b)
    o32_ref[...] = y
    o16_ref[...] = y.astype(jnp.bfloat16)


def post_attn_ffn(av_flat, h_flat, wo, w1, b1, gamma, beta, *, tm=256):
    m, hd = av_flat.shape
    d_model = h_flat.shape[1]
    d_inner = w1.shape[1]
    m_orig = m
    if m > tm:
        pad = (-m) % tm
        if pad:
            av_flat = jnp.pad(av_flat, ((0, pad), (0, 0)))
            h_flat = jnp.pad(h_flat, ((0, pad), (0, 0)))
            m += pad
    else:
        tm = m
    # TODO(synk): for very large d_model, tile wo/w1 (extra N/K grid axes or
    # pl.Buffered(1) on the constant weight specs) so they are not fully
    # resident + double-buffered in VMEM on v7x.
    out32, out16 = pl.pallas_call(
        _post_attn_ffn_kernel,
        out_shape=(jax.ShapeDtypeStruct((m, d_model), jnp.float32),
                   jax.ShapeDtypeStruct((m, d_model), jnp.bfloat16)),
        grid_spec=pltpu.PrefetchScalarGridSpec(
            num_scalar_prefetch=0,
            grid=(m // tm,),
            in_specs=[
                pl.BlockSpec((tm, hd), lambda i: (i, 0)),
                pl.BlockSpec((tm, d_model), lambda i: (i, 0)),
                pl.BlockSpec((hd, d_model), lambda i: (0, 0)),
                pl.BlockSpec((d_model, d_inner), lambda i: (0, 0)),
                pl.BlockSpec((1, d_inner), lambda i: (0, 0)),
                pl.BlockSpec((1, d_model), lambda i: (0, 0)),
                pl.BlockSpec((1, d_model), lambda i: (0, 0)),
            ],
            out_specs=[pl.BlockSpec((tm, d_model), lambda i: (i, 0)),
                       pl.BlockSpec((tm, d_model), lambda i: (i, 0))],
        ),
        compiler_params=pltpu.CompilerParams(
            dimension_semantics=("parallel",),
            vmem_limit_bytes=VMEM_LIMIT),
    )(av_flat, h_flat, wo, w1, b1, gamma, beta)
    if m != m_orig:
        out32 = out32[:m_orig]
        out16 = out16[:m_orig]
    return out32, out16


# ----------------------------------------------------------------------------
# JAX glue reproducing Model.forward for the inp_q=None / mems=None / 'bi' path
# ----------------------------------------------------------------------------
def relative_positional_encoding(qlen, klen, d_model):
    # attn_type='bi', bi_data=False, clamp_len=-1; batch-independent.
    freq_seq = jnp.arange(0, d_model, 2.0, dtype=jnp.float32)
    inv_freq = 1.0 / (10000.0 ** (freq_seq / d_model))
    fwd_pos_seq = jnp.arange(klen, -qlen, -1.0, dtype=jnp.float32)  # [plen]
    sinusoid = jnp.einsum("i,d->id", fwd_pos_seq, inv_freq)
    return jnp.concatenate([jnp.sin(sinusoid), jnp.cos(sinusoid)], axis=-1)


def rel_shift(x, klen):
    """Classic Transformer-XL rel_shift on a [B, H, qlen, plen] tensor."""
    b, h, q, p = x.shape
    x = x.reshape(b, h, p, q)
    x = x[:, :, 1:, :]
    x = x.reshape(b, h, q, p - 1)
    return x[:, :, :, :klen]


def model_forward(params, inp_k, seg_id, input_mask, *, n_layer, n_head,
                  d_head, d_model, mem_len):
    qlen, bsz = inp_k.shape
    mlen = 0                         # mems=None
    klen = mlen + qlen
    plen = klen + qlen
    scale = 1.0 / (d_head ** 0.5)
    hd = n_head * d_head
    m_rows = bsz * qlen

    # ---- shared (layer-independent) weights, flattened once, bf16 for MXU ----
    w_q = params["q_proj"].reshape(d_model, hd)
    w_k = params["k_proj"].reshape(d_model, hd)
    w_v = params["v_proj"].reshape(d_model, hd)
    w_qkv = jnp.concatenate([w_q, w_k, w_v], axis=1).astype(jnp.bfloat16)
    w_r = params["r_proj"].reshape(d_model, hd).astype(jnp.bfloat16)
    wo = jnp.transpose(params["proj_o"].reshape(d_model, hd)).astype(jnp.bfloat16)
    w1 = params["ff_w1"].astype(jnp.bfloat16)
    b1 = params["ff_b1"][None, :]
    gamma = params["ln_gamma"][None, :]
    beta = params["ln_beta"][None, :]
    d_inner = w1.shape[1]
    assert d_inner == d_model  # reference FFN: layer_norm(relu(conv1(x)) + x)

    # ---- masks (attn_type='bi' -> no causal mask; perm_mask=None) ----
    data_mask = input_mask[None]                                  # [1, q, b]
    attn_mask = (data_mask[:, :, :, None] > 0).astype(jnp.float32)
    non_tgt = -jnp.eye(qlen, dtype=jnp.float32)
    non_tgt_mask = ((attn_mask + non_tgt[:, :, None, None]) > 0
                    ).astype(jnp.float32)                         # [q, k, b, 1]
    mask_bqk = jnp.transpose(non_tgt_mask[..., 0], (2, 0, 1))     # [b, q, k]

    # ---- segment "same" matrix (replaces the 2-plane one-hot seg_mat) ----
    same = (seg_id[:, None, :] == seg_id[None, :, :])             # [q, k, b]
    seg_same = jnp.transpose(same, (2, 0, 1)).astype(jnp.float32)

    # ---- embeddings; hidden state kept batch-major + bf16 between layers ----
    word_emb = params["embedding"][jnp.transpose(inp_k)]          # [b, q, d_model] f32
    hidden_f32 = word_emb                                         # dropout p=0
    hidden_bf16 = word_emb.astype(jnp.bfloat16)

    # ---- relative positional encoding + R head projection (once, shared) ----
    pos_emb = relative_positional_encoding(qlen, klen, d_model)   # [plen, d_model]
    r_heads = pallas_matmul(pos_emb.astype(jnp.bfloat16), w_r,
                            out_dtype=jnp.bfloat16).reshape(plen, n_head, d_head)

    new_mems = []
    for i in range(n_layer):
        # _cache_mem (reuse_len=0, prev_mem=None) -> last mem_len tokens, f32,
        # in the reference [mem_len, bsz, d_model] layout.
        new_mems.append(jnp.transpose(hidden_f32[:, -mem_len:, :], (1, 0, 2)))

        h16_flat = hidden_bf16.reshape(m_rows, d_model)

        # fused Q/K/V head projection (one tiled matmul); viewed [b,q,3,H,d]
        qkv_flat = pallas_matmul(h16_flat, w_qkv, out_dtype=jnp.bfloat16)
        qkv5 = qkv_flat.reshape(bsz, qlen, 3, n_head, d_head)

        # bd term: (q + r_r_bias) . k_head_r, rel-shifted, scaled, with the
        # -1e30 attention mask folded in; stored bf16.
        rr_i = params["r_r_bias"][i]                              # [H, d]
        q_rr = ((qkv5[:, :, 0].astype(jnp.float32) + rr_i[None, None]) * scale
                ).astype(jnp.bfloat16)
        bd_full = jnp.einsum("bqhd,phd->bhqp", q_rr, r_heads,
                             preferred_element_type=jnp.float32)
        bd = rel_shift(bd_full, klen)                             # [b, H, q, k]
        bd = (bd - 1e30 * mask_bqk[:, None, :, :]).astype(jnp.bfloat16)

        attn_out = rel_attn_core(
            qkv5, bd, seg_same,
            params["r_w_bias"][i], params["r_s_bias"][i], params["seg_embed"][i],
            n_head=n_head, d_head=d_head, scale=scale)            # [b, q, HD] bf16

        out32, out16 = post_attn_ffn(attn_out.reshape(m_rows, hd), h16_flat,
                                     wo, w1, b1, gamma, beta)
        hidden_f32 = out32.reshape(bsz, qlen, d_model)
        hidden_bf16 = out16.reshape(bsz, qlen, d_model)

    output = jnp.transpose(hidden_f32, (1, 0, 2))   # back to [qlen, bsz, d_model]
    return output, new_mems, output                  # final Dropout is identity


# ----------------------------------------------------------------------------
# Parameter init + demo
# ----------------------------------------------------------------------------
def init_params(key, *, vocab, n_layer, n_head, d_head, d_model, d_inner):
    ks = jax.random.split(key, 12)
    nrm = lambda k, s, sc=0.1: sc * jax.random.normal(k, s, jnp.float32)
    return {
        "embedding": jax.random.normal(ks[0], (vocab, d_model), jnp.float32),
        "r_w_bias": nrm(ks[1], (n_layer, n_head, d_head)),
        "r_r_bias": nrm(ks[2], (n_layer, n_head, d_head)),
        "r_s_bias": nrm(ks[3], (n_layer, n_head, d_head)),
        "seg_embed": nrm(ks[4], (n_layer, 2, n_head, d_head)),
        "proj_o": nrm(ks[5], (d_model, n_head, d_head)),
        "q_proj": nrm(ks[6], (d_model, n_head, d_head)),
        "k_proj": nrm(ks[7], (d_model, n_head, d_head)),
        "v_proj": nrm(ks[8], (d_model, n_head, d_head)),
        "r_proj": nrm(ks[9], (d_model, n_head, d_head)),
        "ln_gamma": jnp.ones((d_model,), jnp.float32),
        "ln_beta": jnp.zeros((d_model,), jnp.float32),
        "ff_w1": nrm(ks[10], (d_model, d_inner)),
        "ff_b1": jnp.zeros((d_inner,), jnp.float32),
        # TODO(synk): conv2 / mask_emb / two-stream (inp_q) path are unused in
        # this forward configuration (inp_q=None), so they are not materialized.
    }


if __name__ == "__main__":
    qlen, bsz = 8, 2
    n_layer, n_head, d_head = 2, 4, 8
    d_model, d_inner = 32, 32     # reference FFN requires d_inner == d_model
    vocab = 32
    mem_len = 8

    key = jax.random.PRNGKey(0)
    kp, k1, k2, k3 = jax.random.split(key, 4)
    params = init_params(kp, vocab=vocab, n_layer=n_layer, n_head=n_head,
                         d_head=d_head, d_model=d_model, d_inner=d_inner)

    inp_k = jax.random.randint(k1, (qlen, bsz), 0, vocab, dtype=jnp.int32)
    seg_id = jax.random.randint(k2, (qlen, bsz), 0, 2, dtype=jnp.int32)
    input_mask = (jax.random.uniform(k3, (qlen, bsz)) > 0.8).astype(jnp.float32)

    fwd = jax.jit(functools.partial(model_forward, n_layer=n_layer,
                                    n_head=n_head, d_head=d_head,
                                    d_model=d_model, mem_len=mem_len))
    output, new_mems, output_h = fwd(params, inp_k, seg_id, input_mask)
    jax.block_until_ready((output, new_mems, output_h))

    assert output.shape == (qlen, bsz, d_model)
    assert output_h.shape == (qlen, bsz, d_model)
    assert len(new_mems) == n_layer and new_mems[0].shape == (mem_len, bsz, d_model)
    assert bool(jnp.all(jnp.isfinite(output)))
    print("KERNEL_OK")
</pallas_src>

<mosaic_0001>
module attributes {stable_mosaic.version = 11 : i64} {
  func.func @_matmul_kernel(%arg0: i32, %arg1: i32, %arg2: i32, %arg3: memref<16x32xbf16, #tpu.memory_space<vmem>>, %arg4: memref<32x32xbf16, #tpu.memory_space<vmem>>, %arg5: memref<16x32xbf16, #tpu.memory_space<vmem>>, %arg6: memref<16x32xf32, #tpu.memory_space<vmem>>) attributes {dimension_semantics = [#tpu.dimension_semantics<parallel>, #tpu.dimension_semantics<parallel>, #tpu.dimension_semantics<arbitrary>], iteration_bounds = array<i64: 1, 1, 1>, scalar_prefetch = 0 : i64, scratch_operands = 1 : i64, tpu.core_type = #tpu.core_type<tc>, window_params = [{transform_indices = @transform_0, window_bounds = array<i64: 16, 32>}, {transform_indices = @transform_1, window_bounds = array<i64: 32, 32>}, {transform_indices = @transform_2, window_bounds = array<i64: 16, 32>}]} {
    %c0_i32 = arith.constant 0 : i32
    %0 = arith.cmpi eq, %arg2, %c0_i32 : i32
    %1 = arith.extui %0 : i1 to i32
    %c0_i32_0 = arith.constant 0 : i32
    %2 = arith.cmpi ne, %1, %c0_i32_0 : i32
    scf.if %2 {
      %cst_10 = arith.constant 0.000000e+00 : f32
      %12 = vector.broadcast %cst_10 : f32 to vector<16x32xf32>
      %c0_11 = arith.constant 0 : index
      %c0_12 = arith.constant 0 : index
      %13 = vector.load %arg6[%c0_11, %c0_12] : memref<16x32xf32, #tpu.memory_space<vmem>>, vector<16x32xf32>
      tpu.vector_store %arg6[%c0_11, %c0_12], %12 {strides = array<i32>} : memref<16x32xf32, #tpu.memory_space<vmem>>, vector<16x32xf32>,
    } else {
    }
    %c0 = arith.constant 0 : index
    %c0_1 = arith.constant 0 : index
    %3 = vector.load %arg6[%c0, %c0_1] : memref<16x32xf32, #tpu.memory_space<vmem>>, vector<16x32xf32>
    %c0_2 = arith.constant 0 : index
    %c0_3 = arith.constant 0 : index
    %4 = vector.load %arg3[%c0_2, %c0_3] : memref<16x32xbf16, #tpu.memory_space<vmem>>, vector<16x32xbf16>
    %c0_4 = arith.constant 0 : index
    %c0_5 = arith.constant 0 : index
    %5 = vector.load %arg4[%c0_4, %c0_5] : memref<32x32xbf16, #tpu.memory_space<vmem>>, vector<32x32xbf16>
    %cst = arith.constant dense<0.000000e+00> : vector<16x32xf32>
    %6 = tpu.matmul %4, %5, %cst {dimension_numbers = #tpu.dot_dimension_numbers<[1], [0], [0], [1], [0, 0, 1, 1], [], []>} : vector<16x32xbf16>, vector<32x32xbf16>, vector<16x32xf32> -> vector<16x32xf32>
    %7 = arith.addf %3, %6 : vector<16x32xf32>
    %c0_6 = arith.constant 0 : index
    %c0_7 = arith.constant 0 : index
    %8 = vector.load %arg6[%c0_6, %c0_7] : memref<16x32xf32, #tpu.memory_space<vmem>>, vector<16x32xf32>
    tpu.vector_store %arg6[%c0_6, %c0_7], %7 {strides = array<i32>} : memref<16x32xf32, #tpu.memory_space<vmem>>, vector<16x32xf32>,
    %c0_i32_8 = arith.constant 0 : i32
    %9 = arith.cmpi eq, %arg2, %c0_i32_8 : i32
    %10 = arith.extui %9 : i1 to i32
    %c0_i32_9 = arith.constant 0 : i32
    %11 = arith.cmpi ne, %10, %c0_i32_9 : i32
    scf.if %11 {
      %c0_10 = arith.constant 0 : index
      %c0_11 = arith.constant 0 : index
      %12 = vector.load %arg6[%c0_10, %c0_11] : memref<16x32xf32, #tpu.memory_space<vmem>>, vector<16x32xf32>
      %13 = arith.truncf %12 : vector<16x32xf32> to vector<16x32xbf16>
      %c0_12 = arith.constant 0 : index
      %c0_13 = arith.constant 0 : index
      %14 = vector.load %arg5[%c0_12, %c0_13] : memref<16x32xbf16, #tpu.memory_space<vmem>>, vector<16x32xbf16>
      tpu.vector_store %arg5[%c0_12, %c0_13], %13 {strides = array<i32>} : memref<16x32xbf16, #tpu.memory_space<vmem>>, vector<16x32xbf16>,
    } else {
    }
    return
  }
  func.func @transform_0(%arg0: i32, %arg1: i32, %arg2: i32) -> (i32, i32) {
    %c0_i32 = arith.constant 0 : i32
    return %arg0, %arg2 : i32, i32
  }
  func.func @transform_1(%arg0: i32, %arg1: i32, %arg2: i32) -> (i32, i32) {
    %c0_i32 = arith.constant 0 : i32
    return %arg2, %arg1 : i32, i32
  }
  func.func @transform_2(%arg0: i32, %arg1: i32, %arg2: i32) -> (i32, i32) {
    %c0_i32 = arith.constant 0 : i32
    return %arg0, %arg1 : i32, i32
  }
}

module attributes {stable_mosaic.version = 11 : i64} {
  func.func @_matmul_kernel(%arg0: i32, %arg1: i32, %arg2: i32, %arg3: memref<16x32xbf16, #tpu.memory_space<vmem>>, %arg4: memref<32x96xbf16, #tpu.memory_space<vmem>>, %arg5: memref<16x96xbf16, #tpu.memory_space<vmem>>, %arg6: memref<16x96xf32, #tpu.memory_space<vmem>>) attributes {dimension_semantics = [#tpu.dimension_semantics<parallel>, #tpu.dimension_semantics<parallel>, #tpu.dimension_semantics<arbitrary>], iteration_bounds = array<i64: 1, 1, 1>, scalar_prefetch = 0 : i64, scratch_operands = 1 : i64, tpu.core_type = #tpu.core_type<tc>, window_params = [{transform_indices = @transform_0, window_bounds = array<i64: 16, 32>}, {transform_indices = @transform_1, window_bounds = array<i64: 32, 96>}, {transform_indices = @transform_2, window_bounds = array<i64: 16, 96>}]} {
    %c0_i32 = arith.constant 0 : i32
    %0 = arith.cmpi eq, %arg2, %c0_i32 : i32
    %1 = arith.extui %0 : i1 to i32
    %c0_i32_0 = arith.constant 0 : i32
    %2 = arith.cmpi ne, %1, %c0_i32_0 : i32
    scf.if %2 {
      %cst_10 = arith.constant 0.000000e+00 : f32
      %12 = vector.broadcast %cst_10 : f32 to vector<16x96xf32>
      %c0_11 = arith.constant 0 : index
      %c0_12 = arith.constant 0 : index
      %13 = vector.load %arg6[%c0_11, %c0_12] : memref<16x96xf32, #tpu.memory_space<vmem>>, vector<16x96xf32>
      tpu.vector_store %arg6[%c0_11, %c0_12], %12 {strides = array<i32>} : memref<16x96xf32, #tpu.memory_space<vmem>>, vector<16x96xf32>,
    } else {
    }
    %c0 = arith.constant 0 : index
    %c0_1 = arith.constant 0 : index
    %3 = vector.load %arg6[%c0, %c0_1] : memref<16x96xf32, #tpu.memory_space<vmem>>, vector<16x96xf32>
    %c0_2 = arith.constant 0 : index
    %c0_3 = arith.constant 0 : index
    %4 = vector.load %arg3[%c0_2, %c0_3] : memref<16x32xbf16, #tpu.memory_space<vmem>>, vector<16x32xbf16>
    %c0_4 = arith.constant 0 : index
    %c0_5 = arith.constant 0 : index
    %5 = vector.load %arg4[%c0_4, %c0_5] : memref<32x96xbf16, #tpu.memory_space<vmem>>, vector<32x96xbf16>
    %cst = arith.constant dense<0.000000e+00> : vector<16x96xf32>
    %6 = tpu.matmul %4, %5, %cst {dimension_numbers = #tpu.dot_dimension_numbers<[1], [0], [0], [1], [0, 0, 1, 1], [], []>} : vector<16x32xbf16>, vector<32x96xbf16>, vector<16x96xf32> -> vector<16x96xf32>
    %7 = arith.addf %3, %6 : vector<16x96xf32>
    %c0_6 = arith.constant 0 : index
    %c0_7 = arith.constant 0 : index
    %8 = vector.load %arg6[%c0_6, %c0_7] : memref<16x96xf32, #tpu.memory_space<vmem>>, vector<16x96xf32>
    tpu.vector_store %arg6[%c0_6, %c0_7], %7 {strides = array<i32>} : memref<16x96xf32, #tpu.memory_space<vmem>>, vector<16x96xf32>,
    %c0_i32_8 = arith.constant 0 : i32
    %9 = arith.cmpi eq, %arg2, %c0_i32_8 : i32
    %10 = arith.extui %9 : i1 to i32
    %c0_i32_9 = arith.constant 0 : i32
    %11 = arith.cmpi ne, %10, %c0_i32_9 : i32
    scf.if %11 {
      %c0_10 = arith.constant 0 : index
      %c0_11 = arith.constant 0 : index
      %12 = vector.load %arg6[%c0_10, %c0_11] : memref<16x96xf32, #tpu.memory_space<vmem>>, vector<16x96xf32>
      %13 = arith.truncf %12 : vector<16x96xf32> to vector<16x96xbf16>
      %c0_12 = arith.constant 0 : index
      %c0_13 = arith.constant 0 : index
      %14 = vector.load %arg5[%c0_12, %c0_13] : memref<16x96xbf16, #tpu.memory_space<vmem>>, vector<16x96xbf16>
      tpu.vector_store %arg5[%c0_12, %c0_13], %13 {strides = array<i32>} : memref<16x96xbf16, #tpu.memory_space<vmem>>, vector<16x96xbf16>,
    } else {
    }
    return
  }
  func.func @transform_0(%arg0: i32, %arg1: i32, %arg2: i32) -> (i32, i32) {
    %c0_i32 = arith.constant 0 : i32
    return %arg0, %arg2 : i32, i32
  }
  func.func @transform_1(%arg0: i32, %arg1: i32, %arg2: i32) -> (i32, i32) {
    %c0_i32 = arith.constant 0 : i32
    return %arg2, %arg1 : i32, i32
  }
  func.func @transform_2(%arg0: i32, %arg1: i32, %arg2: i32) -> (i32, i32) {
    %c0_i32 = arith.constant 0 : i32
    return %arg0, %arg1 : i32, i32
  }
}

module attributes {stable_mosaic.version = 11 : i64} {
  func.func @_post_attn_ffn_kernel(%arg0: i32, %arg1: memref<16x32xbf16, #tpu.memory_space<vmem>>, %arg2: memref<16x32xbf16, #tpu.memory_space<vmem>>, %arg3: memref<32x32xbf16, #tpu.memory_space<vmem>>, %arg4: memref<32x32xbf16, #tpu.memory_space<vmem>>, %arg5: memref<1x32xf32, #tpu.memory_space<vmem>>, %arg6: memref<1x32xf32, #tpu.memory_space<vmem>>, %arg7: memref<1x32xf32, #tpu.memory_space<vmem>>, %arg8: memref<16x32xf32, #tpu.memory_space<vmem>>, %arg9: memref<16x32xbf16, #tpu.memory_space<vmem>>) attributes {dimension_semantics = [#tpu.dimension_semantics<parallel>], iteration_bounds = array<i64: 1>, scalar_prefetch = 0 : i64, scratch_operands = 0 : i64, tpu.core_type = #tpu.core_type<tc>, window_params = [{transform_indices = @transform_0, window_bounds = array<i64: 16, 32>}, {transform_indices = @transform_1, window_bounds = array<i64: 16, 32>}, {pipeline_mode = #tpu.pipeline_mode<synchronous>, transform_indices = @transform_2, window_bounds = array<i64: 32, 32>}, {pipeline_mode = #tpu.pipeline_mode<synchronous>, transform_indices = @transform_3, window_bounds = array<i64: 32, 32>}, {pipeline_mode = #tpu.pipeline_mode<synchronous>, transform_indices = @transform_4, window_bounds = array<i64: 1, 32>}, {pipeline_mode = #tpu.pipeline_mode<synchronous>, transform_indices = @transform_5, window_bounds = array<i64: 1, 32>}, {pipeline_mode = #tpu.pipeline_mode<synchronous>, transform_indices = @transform_6, window_bounds = array<i64: 1, 32>}, {transform_indices = @transform_7, window_bounds = array<i64: 16, 32>}, {transform_indices = @transform_8, window_bounds = array<i64: 16, 32>}]} {
    %c0 = arith.constant 0 : index
    %c0_0 = arith.constant 0 : index
    %0 = vector.load %arg6[%c0, %c0_0] : memref<1x32xf32, #tpu.memory_space<vmem>>, vector<1x32xf32>
    %c0_1 = arith.constant 0 : index
    %c0_2 = arith.constant 0 : index
    %1 = vector.load %arg7[%c0_1, %c0_2] : memref<1x32xf32, #tpu.memory_space<vmem>>, vector<1x32xf32>
    %c0_3 = arith.constant 0 : index
    %c0_4 = arith.constant 0 : index
    %2 = vector.load %arg1[%c0_3, %c0_4] : memref<16x32xbf16, #tpu.memory_space<vmem>>, vector<16x32xbf16>
    %c0_5 = arith.constant 0 : index
    %c0_6 = arith.constant 0 : index
    %3 = vector.load %arg3[%c0_5, %c0_6] : memref<32x32xbf16, #tpu.memory_space<vmem>>, vector<32x32xbf16>
    %cst = arith.constant dense<0.000000e+00> : vector<16x32xf32>
    %4 = tpu.matmul %2, %3, %cst {dimension_numbers = #tpu.dot_dimension_numbers<[1], [0], [0], [1], [0, 0, 1, 1], [], []>} : vector<16x32xbf16>, vector<32x32xbf16>, vector<16x32xf32> -> vector<16x32xf32>
    %c0_7 = arith.constant 0 : index
    %c0_8 = arith.constant 0 : index
    %5 = vector.load %arg2[%c0_7, %c0_8] : memref<16x32xbf16, #tpu.memory_space<vmem>>, vector<16x32xbf16>
    %6 = arith.extf %5 : vector<16x32xbf16> to vector<16x32xf32>
    %7 = arith.addf %4, %6 : vector<16x32xf32>
    %cst_9 = arith.constant dense<0.000000e+00> : vector<16xf32>
    %8 = vector.multi_reduction <add>, %7, %cst_9 [1] : vector<16x32xf32> to vector<16xf32>
    %9 = vector.shape_cast %8 : vector<16xf32> to vector<16x1xf32>
    %cst_10 = arith.constant 3.200000e+01 : f32
    %10 = vector.broadcast %cst_10 : f32 to vector<16x1xf32>
    %11 = arith.divf %9, %10 : vector<16x1xf32>
    %12 = vector.broadcast %11 : vector<16x1xf32> to vector<16x32xf32>
    %13 = arith.subf %7, %12 : vector<16x32xf32>
    %14 = arith.mulf %13, %13 : vector<16x32xf32>
    %cst_11 = arith.constant dense<0.000000e+00> : vector<16xf32>
    %15 = vector.multi_reduction <add>, %14, %cst_11 [1] : vector<16x32xf32> to vector<16xf32>
    %16 = vector.shape_cast %15 : vector<16xf32> to vector<16x1xf32>
    %cst_12 = arith.constant 3.200000e+01 : f32
    %17 = vector.broadcast %cst_12 : f32 to vector<16x1xf32>
    %18 = arith.divf %16, %17 : vector<16x1xf32>
    %19 = vector.broadcast %11 : vector<16x1xf32> to vector<16x32xf32>
    %20 = arith.subf %7, %19 : vector<16x32xf32>
    %cst_13 = arith.constant 9.99999974E-6 : f32
    %21 = vector.broadcast %cst_13 : f32 to vector<16x1xf32>
    %22 = arith.addf %18, %21 : vector<16x1xf32>
    %23 = math.rsqrt %22 : vector<16x1xf32>
    %24 = vector.broadcast %23 : vector<16x1xf32> to vector<16x32xf32>
    %25 = arith.mulf %20, %24 : vector<16x32xf32>
    %26 = vector.broadcast %0 : vector<1x32xf32> to vector<16x32xf32>
    %27 = arith.mulf %25, %26 : vector<16x32xf32>
    %28 = vector.broadcast %1 : vector<1x32xf32> to vector<16x32xf32>
    %29 = arith.addf %27, %28 : vector<16x32xf32>
    %30 = arith.truncf %29 : vector<16x32xf32> to vector<16x32xbf16>
    %c0_14 = arith.constant 0 : index
    %c0_15 = arith.constant 0 : index
    %31 = vector.load %arg4[%c0_14, %c0_15] : memref<32x32xbf16, #tpu.memory_space<vmem>>, vector<32x32xbf16>
    %cst_16 = arith.constant dense<0.000000e+00> : vector<16x32xf32>
    %32 = tpu.matmul %30, %31, %cst_16 {dimension_numbers = #tpu.dot_dimension_numbers<[1], [0], [0], [1], [0, 0, 1, 1], [], []>} : vector<16x32xbf16>, vector<32x32xbf16>, vector<16x32xf32> -> vector<16x32xf32>
    %c0_17 = arith.constant 0 : index
    %c0_18 = arith.constant 0 : index
    %33 = vector.load %arg5[%c0_17, %c0_18] : memref<1x32xf32, #tpu.memory_space<vmem>>, vector<1x32xf32>
    %34 = vector.broadcast %33 : vector<1x32xf32> to vector<16x32xf32>
    %35 = arith.addf %32, %34 : vector<16x32xf32>
    %cst_19 = arith.constant 0.000000e+00 : f32
    %36 = vector.broadcast %cst_19 : f32 to vector<16x32xf32>
    %37 = arith.maximumf %35, %36 : vector<16x32xf32>
    %38 = arith.addf %37, %29 : vector<16x32xf32>
    %cst_20 = arith.constant dense<0.000000e+00> : vector<16xf32>
    %39 = vector.multi_reduction <add>, %38, %cst_20 [1] : vector<16x32xf32> to vector<16xf32>
    %40 = vector.shape_cast %39 : vector<16xf32> to vector<16x1xf32>
    %cst_21 = arith.constant 3.200000e+01 : f32
    %41 = vector.broadcast %cst_21 : f32 to vector<16x1xf32>
    %42 = arith.divf %40, %41 : vector<16x1xf32>
    %43 = vector.broadcast %42 : vector<16x1xf32> to vector<16x32xf32>
    %44 = arith.subf %38, %43 : vector<16x32xf32>
    %45 = arith.mulf %44, %44 : vector<16x32xf32>
    %cst_22 = arith.constant dense<0.000000e+00> : vector<16xf32>
    %46 = vector.multi_reduction <add>, %45, %cst_22 [1] : vector<16x32xf32> to vector<16xf32>
    %47 = vector.shape_cast %46 : vector<16xf32> to vector<16x1xf32>
    %cst_23 = arith.constant 3.200000e+01 : f32
    %48 = vector.broadcast %cst_23 : f32 to vector<16x1xf32>
    %49 = arith.divf %47, %48 : vector<16x1xf32>
    %50 = vector.broadcast %42 : vector<16x1xf32> to vector<16x32xf32>
    %51 = arith.subf %38, %50 : vector<16x32xf32>
    %cst_24 = arith.constant 9.99999974E-6 : f32
    %52 = vector.broadcast %cst_24 : f32 to vector<16x1xf32>
    %53 = arith.addf %49, %52 : vector<16x1xf32>
    %54 = math.rsqrt %53 : vector<16x1xf32>
    %55 = vector.broadcast %54 : vector<16x1xf32> to vector<16x32xf32>
    %56 = arith.mulf %51, %55 : vector<16x32xf32>
    %57 = vector.broadcast %0 : vector<1x32xf32> to vector<16x32xf32>
    %58 = arith.mulf %56, %57 : vector<16x32xf32>
    %59 = vector.broadcast %1 : vector<1x32xf32> to vector<16x32xf32>
    %60 = arith.addf %58, %59 : vector<16x32xf32>
    %c0_25 = arith.constant 0 : index
    %c0_26 = arith.constant 0 : index
    %61 = vector.load %arg8[%c0_25, %c0_26] : memref<16x32xf32, #tpu.memory_space<vmem>>, vector<16x32xf32>
    tpu.vector_store %arg8[%c0_25, %c0_26], %60 {strides = array<i32>} : memref<16x32xf32, #tpu.memory_space<vmem>>, vector<16x32xf32>,
    %62 = arith.truncf %60 : vector<16x32xf32> to vector<16x32xbf16>
    %c0_27 = arith.constant 0 : index
    %c0_28 = arith.constant 0 : index
    %63 = vector.load %arg9[%c0_27, %c0_28] : memref<16x32xbf16, #tpu.memory_space<vmem>>, vector<16x32xbf16>
    tpu.vector_store %arg9[%c0_27, %c0_28], %62 {strides = array<i32>} : memref<16x32xbf16, #tpu.memory_space<vmem>>, vector<16x32xbf16>,
    return
  }
  func.func @transform_0(%arg0: i32) -> (i32, i32) {
    %c0_i32 = arith.constant 0 : i32
    %c0_i32_0 = arith.constant 0 : i32
    return %arg0, %c0_i32 : i32, i32
  }
  func.func @transform_1(%arg0: i32) -> (i32, i32) {
    %c0_i32 = arith.constant 0 : i32
    %c0_i32_0 = arith.constant 0 : i32
    return %arg0, %c0_i32 : i32, i32
  }
  func.func @transform_2(%arg0: i32) -> (i32, i32) {
    %c0_i32 = arith.constant 0 : i32
    %c0_i32_0 = arith.constant 0 : i32
    %c0_i32_1 = arith.constant 0 : i32
    return %c0_i32, %c0_i32_0 : i32, i32
  }
  func.func @transform_3(%arg0: i32) -> (i32, i32) {
    %c0_i32 = arith.constant 0 : i32
    %c0_i32_0 = arith.constant 0 : i32
    %c0_i32_1 = arith.constant 0 : i32
    return %c0_i32, %c0_i32_0 : i32, i32
  }
  func.func @transform_4(%arg0: i32) -> (i32, i32) {
    %c0_i32 = arith.constant 0 : i32
    %c0_i32_0 = arith.constant 0 : i32
    %c0_i32_1 = arith.constant 0 : i32
    return %c0_i32, %c0_i32_0 : i32, i32
  }
  func.func @transform_5(%arg0: i32) -> (i32, i32) {
    %c0_i32 = arith.constant 0 : i32
    %c0_i32_0 = arith.constant 0 : i32
    %c0_i32_1 = arith.constant 0 : i32
    return %c0_i32, %c0_i32_0 : i32, i32
  }
  func.func @transform_6(%arg0: i32) -> (i32, i32) {
    %c0_i32 = arith.constant 0 : i32
    %c0_i32_0 = arith.constant 0 : i32
    %c0_i32_1 = arith.constant 0 : i32
    return %c0_i32, %c0_i32_0 : i32, i32
  }
  func.func @transform_7(%arg0: i32) -> (i32, i32) {
    %c0_i32 = arith.constant 0 : i32
    %c0_i32_0 = arith.constant 0 : i32
    return %arg0, %c0_i32 : i32, i32
  }
  func.func @transform_8(%arg0: i32) -> (i32, i32) {
    %c0_i32 = arith.constant 0 : i32
    %c0_i32_0 = arith.constant 0 : i32
    return %arg0, %c0_i32 : i32, i32
  }
}

module attributes {stable_mosaic.version = 11 : i64} {
  func.func @_rel_attn_kernel(%arg0: i32, %arg1: i32, %arg2: memref<1x8x1x4x8xbf16, #tpu.memory_space<vmem>>, %arg3: memref<1x8x1x4x8xbf16, #tpu.memory_space<vmem>>, %arg4: memref<1x8x1x4x8xbf16, #tpu.memory_space<vmem>>, %arg5: memref<1x4x8x8xbf16, #tpu.memory_space<vmem>>, %arg6: memref<1x8x8xf32, #tpu.memory_space<vmem>>, %arg7: memref<1x4x8xf32, #tpu.memory_space<vmem>>, %arg8: memref<1x4x8xf32, #tpu.memory_space<vmem>>, %arg9: memref<1x2x4x8xf32, #tpu.memory_space<vmem>>, %arg10: memref<1x8x32xbf16, #tpu.memory_space<vmem>>) attributes {dimension_semantics = [#tpu.dimension_semantics<parallel>, #tpu.dimension_semantics<parallel>], iteration_bounds = array<i64: 2, 1>, scalar_prefetch = 0 : i64, scratch_operands = 0 : i64, tpu.core_type = #tpu.core_type<tc>, window_params = [{transform_indices = @transform_0, window_bounds = array<i64: 1, 8, 1, 4, 8>}, {transform_indices = @transform_1, window_bounds = array<i64: 1, 8, 1, 4, 8>}, {transform_indices = @transform_2, window_bounds = array<i64: 1, 8, 1, 4, 8>}, {transform_indices = @transform_3, window_bounds = array<i64: 1, 4, 8, 8>}, {transform_indices = @transform_4, window_bounds = array<i64: 1, 8, 8>}, {transform_indices = @transform_5, window_bounds = array<i64: 1, 4, 8>}, {transform_indices = @transform_6, window_bounds = array<i64: 1, 4, 8>}, {transform_indices = @transform_7, window_bounds = array<i64: 1, 2, 4, 8>}, {transform_indices = @transform_8, window_bounds = array<i64: 1, 8, 32>}]} {
    %c0 = arith.constant 0 : index
    %c0_0 = arith.constant 0 : index
    %c0_1 = arith.constant 0 : index
    %0 = vector.load %arg6[%c0, %c0_0, %c0_1] : memref<1x8x8xf32, #tpu.memory_space<vmem>>, vector<1x8x8xf32>
    %1 = vector.shape_cast %0 : vector<1x8x8xf32> to vector<8x8xf32>
    %c0_2 = arith.constant 0 : index
    %c0_3 = arith.constant 0 : index
    %c0_4 = arith.constant 0 : index
    %c0_5 = arith.constant 0 : index
    %c0_6 = arith.constant 0 : index
    %2 = vector.load %arg2[%c0_2, %c0_3, %c0_4, %c0_5, %c0_6] : memref<1x8x1x4x8xbf16, #tpu.memory_space<vmem>>, vector<1x8x1x1x8xbf16>
    %3 = vector.shape_cast %2 : vector<1x8x1x1x8xbf16> to vector<8x8xbf16>
    %4 = arith.extf %3 : vector<8x8xbf16> to vector<8x8xf32>
    %c0_7 = arith.constant 0 : index
    %c0_8 = arith.constant 0 : index
    %c0_9 = arith.constant 0 : index
    %c0_10 = arith.constant 0 : index
    %c0_11 = arith.constant 0 : index
    %5 = vector.load %arg3[%c0_7, %c0_8, %c0_9, %c0_10, %c0_11] : memref<1x8x1x4x8xbf16, #tpu.memory_space<vmem>>, vector<1x8x1x1x8xbf16>
    %6 = vector.shape_cast %5 : vector<1x8x1x1x8xbf16> to vector<8x8xbf16>
    %c0_12 = arith.constant 0 : index
    %c0_13 = arith.constant 0 : index
    %c0_14 = arith.constant 0 : index
    %c0_15 = arith.constant 0 : index
    %c0_16 = arith.constant 0 : index
    %7 = vector.load %arg4[%c0_12, %c0_13, %c0_14, %c0_15, %c0_16] : memref<1x8x1x4x8xbf16, #tpu.memory_space<vmem>>, vector<1x8x1x1x8xbf16>
    %8 = vector.shape_cast %7 : vector<1x8x1x1x8xbf16> to vector<8x8xbf16>
    %c0_17 = arith.constant 0 : index
    %c0_18 = arith.constant 0 : index
    %c0_19 = arith.constant 0 : index
    %9 = vector.load %arg7[%c0_17, %c0_18, %c0_19] : memref<1x4x8xf32, #tpu.memory_space<vmem>>, vector<1x1x8xf32>
    %10 = vector.shape_cast %9 : vector<1x1x8xf32> to vector<1x8xf32>
    %c0_20 = arith.constant 0 : index
    %c0_21 = arith.constant 0 : index
    %c0_22 = arith.constant 0 : index
    %11 = vector.load %arg8[%c0_20, %c0_21, %c0_22] : memref<1x4x8xf32, #tpu.memory_space<vmem>>, vector<1x1x8xf32>
    %12 = vector.shape_cast %11 : vector<1x1x8xf32> to vector<1x8xf32>
    %c0_23 = arith.constant 0 : index
    %c0_24 = arith.constant 0 : index
    %c0_25 = arith.constant 0 : index
    %c0_26 = arith.constant 0 : index
    %13 = vector.load %arg9[%c0_23, %c0_24, %c0_25, %c0_26] : memref<1x2x4x8xf32, #tpu.memory_space<vmem>>, vector<1x1x1x8xf32>
    %14 = vector.shape_cast %13 : vector<1x1x1x8xf32> to vector<1x8xf32>
    %c0_27 = arith.constant 0 : index
    %c1 = arith.constant 1 : index
    %c0_28 = arith.constant 0 : index
    %c0_29 = arith.constant 0 : index
    %15 = vector.load %arg9[%c0_27, %c1, %c0_28, %c0_29] : memref<1x2x4x8xf32, #tpu.memory_space<vmem>>, vector<1x1x1x8xf32>
    %16 = vector.shape_cast %15 : vector<1x1x1x8xf32> to vector<1x8xf32>
    %17 = vector.broadcast %10 : vector<1x8xf32> to vector<8x8xf32>
    %18 = arith.addf %4, %17 : vector<8x8xf32>
    %cst = arith.constant 0.353553385 : f32
    %19 = vector.broadcast %cst : f32 to vector<8x8xf32>
    %20 = arith.mulf %18, %19 : vector<8x8xf32>
    %21 = arith.truncf %20 : vector<8x8xf32> to vector<8x8xbf16>
    %cst_30 = arith.constant dense<0.000000e+00> : vector<8x8xf32>
    %22 = tpu.matmul %21, %6, %cst_30 {dimension_numbers = #tpu.dot_dimension_numbers<[1], [1], [0], [0], [0, 0, 1, 0], [], []>} : vector<8x8xbf16>, vector<8x8xbf16>, vector<8x8xf32> -> vector<8x8xf32>
    %23 = vector.broadcast %12 : vector<1x8xf32> to vector<8x8xf32>
    %24 = arith.addf %4, %23 : vector<8x8xf32>
    %cst_31 = arith.constant 0.353553385 : f32
    %25 = vector.broadcast %cst_31 : f32 to vector<8x8xf32>
    %26 = arith.mulf %24, %25 : vector<8x8xf32>
    %27 = vector.broadcast %14 : vector<1x8xf32> to vector<8x8xf32>
    %28 = arith.mulf %26, %27 : vector<8x8xf32>
    %cst_32 = arith.constant dense<0.000000e+00> : vector<8xf32>
    %29 = vector.multi_reduction <add>, %28, %cst_32 [1] : vector<8x8xf32> to vector<8xf32>
    %30 = vector.shape_cast %29 : vector<8xf32> to vector<8x1xf32>
    %31 = vector.broadcast %16 : vector<1x8xf32> to vector<8x8xf32>
    %32 = arith.mulf %26, %31 : vector<8x8xf32>
    %cst_33 = arith.constant dense<0.000000e+00> : vector<8xf32>
    %33 = vector.multi_reduction <add>, %32, %cst_33 [1] : vector<8x8xf32> to vector<8xf32>
    %34 = vector.shape_cast %33 : vector<8xf32> to vector<8x1xf32>
    %35 = arith.subf %30, %34 : vector<8x1xf32>
    %36 = vector.broadcast %35 : vector<8x1xf32> to vector<8x8xf32>
    %37 = arith.mulf %1, %36 : vector<8x8xf32>
    %38 = vector.broadcast %34 : vector<8x1xf32> to vector<8x8xf32>
    %39 = arith.addf %38, %37 : vector<8x8xf32>
    %c0_34 = arith.constant 0 : index
    %c0_35 = arith.constant 0 : index
    %c0_36 = arith.constant 0 : index
    %c0_37 = arith.constant 0 : index
    %40 = vector.load %arg5[%c0_34, %c0_35, %c0_36, %c0_37] : memref<1x4x8x8xbf16, #tpu.memory_space<vmem>>, vector<1x1x8x8xbf16>
    %41 = vector.shape_cast %40 : vector<1x1x8x8xbf16> to vector<8x8xbf16>
    %42 = arith.extf %41 : vector<8x8xbf16> to vector<8x8xf32>
    %43 = arith.addf %22, %42 : vector<8x8xf32>
    %44 = arith.addf %43, %39 : vector<8x8xf32>
    %cst_38 = arith.constant dense<0xFF800000> : vector<8xf32>
    %45 = vector.multi_reduction <maximumf>, %44, %cst_38 [1] : vector<8x8xf32> to vector<8xf32>
    %46 = vector.shape_cast %45 : vector<8xf32> to vector<8x1xf32>
    %47 = vector.broadcast %46 : vector<8x1xf32> to vector<8x8xf32>
    %48 = arith.subf %44, %47 : vector<8x8xf32>
    %49 = math.exp %48 : vector<8x8xf32>
    %cst_39 = arith.constant dense<0.000000e+00> : vector<8xf32>
    %50 = vector.multi_reduction <add>, %49, %cst_39 [1] : vector<8x8xf32> to vector<8xf32>
    %51 = vector.shape_cast %50 : vector<8xf32> to vector<8x1xf32>
    %52 = tpu.reciprocal %51 {approx = true} : vector<8x1xf32> -> vector<8x1xf32>
    %53 = vector.broadcast %52 : vector<8x1xf32> to vector<8x8xf32>
    %54 = arith.mulf %49, %53 : vector<8x8xf32>
    %55 = arith.truncf %54 : vector<8x8xf32> to vector<8x8xbf16>
    %cst_40 = arith.constant dense<0.000000e+00> : vector<8x8xf32>
    %56 = tpu.matmul %55, %8, %cst_40 {dimension_numbers = #tpu.dot_dimension_numbers<[1], [0], [0], [1], [0, 0, 1, 1], [], []>} : vector<8x8xbf16>, vector<8x8xbf16>, vector<8x8xf32> -> vector<8x8xf32>
    %57 = arith.truncf %56 : vector<8x8xf32> to vector<8x8xbf16>
    %c0_41 = arith.constant 0 : index
    %c0_42 = arith.constant 0 : index
    %c0_43 = arith.constant 0 : index
    %58 = vector.load %arg10[%c0_41, %c0_42, %c0_43] : memref<1x8x32xbf16, #tpu.memory_space<vmem>>, vector<1x8x8xbf16>
    %59 = vector.shape_cast %58 : vector<1x8x8xbf16> to vector<8x8xbf16>
    %60 = vector.shape_cast %57 : vector<8x8xbf16> to vector<1x8x8xbf16>
    tpu.vector_store %arg10[%c0_41, %c0_42, %c0_43], %60 {strides = array<i32>} : memref<1x8x32xbf16, #tpu.memory_space<vmem>>, vector<1x8x8xbf16>,
    %c0_44 = arith.constant 0 : index
    %c0_45 = arith.constant 0 : index
    %c0_46 = arith.constant 0 : index
    %c1_47 = arith.constant 1 : index
    %c0_48 = arith.constant 0 : index
    %61 = vector.load %arg2[%c0_44, %c0_45, %c0_46, %c1_47, %c0_48] : memref<1x8x1x4x8xbf16, #tpu.memory_space<vmem>>, vector<1x8x1x1x8xbf16>
    %62 = vector.shape_cast %61 : vector<1x8x1x1x8xbf16> to vector<8x8xbf16>
    %63 = arith.extf %62 : vector<8x8xbf16> to vector<8x8xf32>
    %c0_49 = arith.constant 0 : index
    %c0_50 = arith.constant 0 : index
    %c0_51 = arith.constant 0 : index
    %c1_52 = arith.constant 1 : index
    %c0_53 = arith.constant 0 : index
    %64 = vector.load %arg3[%c0_49, %c0_50, %c0_51, %c1_52, %c0_53] : memref<1x8x1x4x8xbf16, #tpu.memory_space<vmem>>, vector<1x8x1x1x8xbf16>
    %65 = vector.shape_cast %64 : vector<1x8x1x1x8xbf16> to vector<8x8xbf16>
    %c0_54 = arith.constant 0 : index
    %c0_55 = arith.constant 0 : index
    %c0_56 = arith.constant 0 : index
    %c1_57 = arith.constant 1 : index
    %c0_58 = arith.constant 0 : index
    %66 = vector.load %arg4[%c0_54, %c0_55, %c0_56, %c1_57, %c0_58] : memref<1x8x1x4x8xbf16, #tpu.memory_space<vmem>>, vector<1x8x1x1x8xbf16>
    %67 = vector.shape_cast %66 : vector<1x8x1x1x8xbf16> to vector<8x8xbf16>
    %c0_59 = arith.constant 0 : index
    %c1_60 = arith.constant 1 : index
    %c0_61 = arith.constant 0 : index
    %68 = vector.load %arg7[%c0_59, %c1_60, %c0_61] : memref<1x4x8xf32, #tpu.memory_space<vmem>>, vector<1x1x8xf32>
    %69 = vector.shape_cast %68 : vector<1x1x8xf32> to vector<1x8xf32>
    %c0_62 = arith.constant 0 : index
    %c1_63 = arith.constant 1 : index
    %c0_64 = arith.constant 0 : index
    %70 = vector.load %arg8[%c0_62, %c1_63, %c0_64] : memref<1x4x8xf32, #tpu.memory_space<vmem>>, vector<1x1x8xf32>
    %71 = vector.shape_cast %70 : vector<1x1x8xf32> to vector<1x8xf32>
    %c0_65 = arith.constant 0 : index
    %c0_66 = arith.constant 0 : index
    %c1_67 = arith.constant 1 : index
    %c0_68 = arith.constant 0 : index
    %72 = vector.load %arg9[%c0_65, %c0_66, %c1_67, %c0_68] : memref<1x2x4x8xf32, #tpu.memory_space<vmem>>, vector<1x1x1x8xf32>
    %73 = vector.shape_cast %72 : vector<1x1x1x8xf32> to vector<1x8xf32>
    %c0_69 = arith.constant 0 : index
    %c1_70 = arith.constant 1 : index
    %c1_71 = arith.constant 1 : index
    %c0_72 = arith.constant 0 : index
    %74 = vector.load %arg9[%c0_69, %c1_70, %c1_71, %c0_72] : memref<1x2x4x8xf32, #tpu.memory_space<vmem>>, vector<1x1x1x8xf32>
    %75 = vector.shape_cast %74 : vector<1x1x1x8xf32> to vector<1x8xf32>
    %76 = vector.broadcast %69 : vector<1x8xf32> to vector<8x8xf32>
    %77 = arith.addf %63, %76 : vector<8x8xf32>
    %cst_73 = arith.constant 0.353553385 : f32
    %78 = vector.broadcast %cst_73 : f32 to vector<8x8xf32>
    %79 = arith.mulf %77, %78 : vector<8x8xf32>
    %80 = arith.truncf %79 : vector<8x8xf32> to vector<8x8xbf16>
    %cst_74 = arith.constant dense<0.000000e+00> : vector<8x8xf32>
    %81 = tpu.matmul %80, %65, %cst_74 {dimension_numbers = #tpu.dot_dimension_numbers<[1], [1], [0], [0], [0, 0, 1, 0], [], []>} : vector<8x8xbf16>, vector<8x8xbf16>, vector<8x8xf32> -> vector<8x8xf32>
    %82 = vector.broadcast %71 : vector<1x8xf32> to vector<8x8xf32>
    %83 = arith.addf %63, %82 : vector<8x8xf32>
    %cst_75 = arith.constant 0.353553385 : f32
    %84 = vector.broadcast %cst_75 : f32 to vector<8x8xf32>
    %85 = arith.mulf %83, %84 : vector<8x8xf32>
    %86 = vector.broadcast %73 : vector<1x8xf32> to vector<8x8xf32>
    %87 = arith.mulf %85, %86 : vector<8x8xf32>
    %cst_76 = arith.constant dense<0.000000e+00> : vector<8xf32>
    %88 = vector.multi_reduction <add>, %87, %cst_76 [1] : vector<8x8xf32> to vector<8xf32>
    %89 = vector.shape_cast %88 : vector<8xf32> to vector<8x1xf32>
    %90 = vector.broadcast %75 : vector<1x8xf32> to vector<8x8xf32>
    %91 = arith.mulf %85, %90 : vector<8x8xf32>
    %cst_77 = arith.constant dense<0.000000e+00> : vector<8xf32>
    %92 = vector.multi_reduction <add>, %91, %cst_77 [1] : vector<8x8xf32> to vector<8xf32>
    %93 = vector.shape_cast %92 : vector<8xf32> to vector<8x1xf32>
    %94 = arith.subf %89, %93 : vector<8x1xf32>
    %95 = vector.broadcast %94 : vector<8x1xf32> to vector<8x8xf32>
    %96 = arith.mulf %1, %95 : vector<8x8xf32>
    %97 = vector.broadcast %93 : vector<8x1xf32> to vector<8x8xf32>
    %98 = arith.addf %97, %96 : vector<8x8xf32>
    %c0_78 = arith.constant 0 : index
    %c1_79 = arith.constant 1 : index
    %c0_80 = arith.constant 0 : index
    %c0_81 = arith.constant 0 : index
    %99 = vector.load %arg5[%c0_78, %c1_79, %c0_80, %c0_81] : memref<1x4x8x8xbf16, #tpu.memory_space<vmem>>, vector<1x1x8x8xbf16>
    %100 = vector.shape_cast %99 : vector<1x1x8x8xbf16> to vector<8x8xbf16>
    %101 = arith.extf %100 : vector<8x8xbf16> to vector<8x8xf32>
    %102 = arith.addf %81, %101 : vector<8x8xf32>
    %103 = arith.addf %102, %98 : vector<8x8xf32>
    %cst_82 = arith.constant dense<0xFF800000> : vector<8xf32>
    %104 = vector.multi_reduction <maximumf>, %103, %cst_82 [1] : vector<8x8xf32> to vector<8xf32>
    %105 = vector.shape_cast %104 : vector<8xf32> to vector<8x1xf32>
    %106 = vector.broadcast %105 : vector<8x1xf32> to vector<8x8xf32>
    %107 = arith.subf %103, %106 : vector<8x8xf32>
    %108 = math.exp %107 : vector<8x8xf32>
    %cst_83 = arith.constant dense<0.000000e+00> : vector<8xf32>
    %109 = vector.multi_reduction <add>, %108, %cst_83 [1] : vector<8x8xf32> to vector<8xf32>
    %110 = vector.shape_cast %109 : vector<8xf32> to vector<8x1xf32>
    %111 = tpu.reciprocal %110 {approx = true} : vector<8x1xf32> -> vector<8x1xf32>
    %112 = vector.broadcast %111 : vector<8x1xf32> to vector<8x8xf32>
    %113 = arith.mulf %108, %112 : vector<8x8xf32>
    %114 = arith.truncf %113 : vector<8x8xf32> to vector<8x8xbf16>
    %cst_84 = arith.constant dense<0.000000e+00> : vector<8x8xf32>
    %115 = tpu.matmul %114, %67, %cst_84 {dimension_numbers = #tpu.dot_dimension_numbers<[1], [0], [0], [1], [0, 0, 1, 1], [], []>} : vector<8x8xbf16>, vector<8x8xbf16>, vector<8x8xf32> -> vector<8x8xf32>
    %116 = arith.truncf %115 : vector<8x8xf32> to vector<8x8xbf16>
    %c0_85 = arith.constant 0 : index
    %c0_86 = arith.constant 0 : index
    %c8 = arith.constant 8 : index
    %117 = vector.load %arg10[%c0_85, %c0_86, %c8] : memref<1x8x32xbf16, #tpu.memory_space<vmem>>, vector<1x8x8xbf16>
    %118 = vector.shape_cast %117 : vector<1x8x8xbf16> to vector<8x8xbf16>
    %119 = vector.shape_cast %116 : vector<8x8xbf16> to vector<1x8x8xbf16>
    tpu.vector_store %arg10[%c0_85, %c0_86, %c8], %119 {strides = array<i32>} : memref<1x8x32xbf16, #tpu.memory_space<vmem>>, vector<1x8x8xbf16>,
    %c0_87 = arith.constant 0 : index
    %c0_88 = arith.constant 0 : index
    %c0_89 = arith.constant 0 : index
    %c2 = arith.constant 2 : index
    %c0_90 = arith.constant 0 : index
    %120 = vector.load %arg2[%c0_87, %c0_88, %c0_89, %c2, %c0_90] : memref<1x8x1x4x8xbf16, #tpu.memory_space<vmem>>, vector<1x8x1x1x8xbf16>
    %121 = vector.shape_cast %120 : vector<1x8x1x1x8xbf16> to vector<8x8xbf16>
    %122 = arith.extf %121 : vector<8x8xbf16> to vector<8x8xf32>
    %c0_91 = arith.constant 0 : index
    %c0_92 = arith.constant 0 : index
    %c0_93 = arith.constant 0 : index
    %c2_94 = arith.constant 2 : index
    %c0_95 = arith.constant 0 : index
    %123 = vector.load %arg3[%c0_91, %c0_92, %c0_93, %c2_94, %c0_95] : memref<1x8x1x4x8xbf16, #tpu.memory_space<vmem>>, vector<1x8x1x1x8xbf16>
    %124 = vector.shape_cast %123 : vector<1x8x1x1x8xbf16> to vector<8x8xbf16>
    %c0_96 = arith.constant 0 : index
    %c0_97 = arith.constant 0 : index
    %c0_98 = arith.constant 0 : index
    %c2_99 = arith.constant 2 : index
    %c0_100 = arith.constant 0 : index
    %125 = vector.load %arg4[%c0_96, %c0_97, %c0_98, %c2_99, %c0_100] : memref<1x8x1x4x8xbf16, #tpu.memory_space<vmem>>, vector<1x8x1x1x8xbf16>
    %126 = vector.shape_cast %125 : vector<1x8x1x1x8xbf16> to vector<8x8xbf16>
    %c0_101 = arith.constant 0 : index
    %c2_102 = arith.constant 2 : index
    %c0_103 = arith.constant 0 : index
    %127 = vector.load %arg7[%c0_101, %c2_102, %c0_103] : memref<1x4x8xf32, #tpu.memory_space<vmem>>, vector<1x1x8xf32>
    %128 = vector.shape_cast %127 : vector<1x1x8xf32> to vector<1x8xf32>
    %c0_104 = arith.constant 0 : index
    %c2_105 = arith.constant 2 : index
    %c0_106 = arith.constant 0 : index
    %129 = vector.load %arg8[%c0_104, %c2_105, %c0_106] : memref<1x4x8xf32, #tpu.memory_space<vmem>>, vector<1x1x8xf32>
    %130 = vector.shape_cast %129 : vector<1x1x8xf32> to vector<1x8xf32>
    %c0_107 = arith.constant 0 : index
    %c0_108 = arith.constant 0 : index
    %c2_109 = arith.constant 2 : index
    %c0_110 = arith.constant 0 : index
    %131 = vector.load %arg9[%c0_107, %c0_108, %c2_109, %c0_110] : memref<1x2x4x8xf32, #tpu.memory_space<vmem>>, vector<1x1x1x8xf32>
    %132 = vector.shape_cast %131 : vector<1x1x1x8xf32> to vector<1x8xf32>
    %c0_111 = arith.constant 0 : index
    %c1_112 = arith.constant 1 : index
    %c2_113 = arith.constant 2 : index
    %c0_114 = arith.constant 0 : index
    %133 = vector.load %arg9[%c0_111, %c1_112, %c2_113, %c0_114] : memref<1x2x4x8xf32, #tpu.memory_space<vmem>>, vector<1x1x1x8xf32>
    %134 = vector.shape_cast %133 : vector<1x1x1x8xf32> to vector<1x8xf32>
    %135 = vector.broadcast %128 : vector<1x8xf32> to vector<8x8xf32>
    %136 = arith.addf %122, %135 : vector<8x8xf32>
    %cst_115 = arith.constant 0.353553385 : f32
    %137 = vector.broadcast %cst_115 : f32 to vector<8x8xf32>
    %138 = arith.mulf %136, %137 : vector<8x8xf32>
    %139 = arith.truncf %138 : vector<8x8xf32> to vector<8x8xbf16>
    %cst_116 = arith.constant dense<0.000000e+00> : vector<8x8xf32>
    %140 = tpu.matmul %139, %124, %cst_116 {dimension_numbers = #tpu.dot_dimension_numbers<[1], [1], [0], [0], [0, 0, 1, 0], [], []>} : vector<8x8xbf16>, vector<8x8xbf16>, vector<8x8xf32> -> vector<8x8xf32>
    %141 = vector.broadcast %130 : vector<1x8xf32> to vector<8x8xf32>
    %142 = arith.addf %122, %141 : vector<8x8xf32>
    %cst_117 = arith.constant 0.353553385 : f32
    %143 = vector.broadcast %cst_117 : f32 to vector<8x8xf32>
    %144 = arith.mulf %142, %143 : vector<8x8xf32>
    %145 = vector.broadcast %132 : vector<1x8xf32> to vector<8x8xf32>
    %146 = arith.mulf %144, %145 : vector<8x8xf32>
    %cst_118 = arith.constant dense<0.000000e+00> : vector<8xf32>
    %147 = vector.multi_reduction <add>, %146, %cst_118 [1] : vector<8x8xf32> to vector<8xf32>
    %148 = vector.shape_cast %147 : vector<8xf32> to vector<8x1xf32>
    %149 = vector.broadcast %134 : vector<1x8xf32> to vector<8x8xf32>
    %150 = arith.mulf %144, %149 : vector<8x8xf32>
    %cst_119 = arith.constant dense<0.000000e+00> : vector<8xf32>
    %151 = vector.multi_reduction <add>, %150, %cst_119 [1] : vector<8x8xf32> to vector<8xf32>
    %152 = vector.shape_cast %151 : vector<8xf32> to vector<8x1xf32>
    %153 = arith.subf %148, %152 : vector<8x1xf32>
    %154 = vector.broadcast %153 : vector<8x1xf32> to vector<8x8xf32>
    %155 = arith.mulf %1, %154 : vector<8x8xf32>
    %156 = vector.broadcast %152 : vector<8x1xf32> to vector<8x8xf32>
    %157 = arith.addf %156, %155 : vector<8x8xf32>
    %c0_120 = arith.constant 0 : index
    %c2_121 = arith.constant 2 : index
    %c0_122 = arith.constant 0 : index
    %c0_123 = arith.constant 0 : index
    %158 = vector.load %arg5[%c0_120, %c2_121, %c0_122, %c0_123] : memref<1x4x8x8xbf16, #tpu.memory_space<vmem>>, vector<1x1x8x8xbf16>
    %159 = vector.shape_cast %158 : vector<1x1x8x8xbf16> to vector<8x8xbf16>
    %160 = arith.extf %159 : vector<8x8xbf16> to vector<8x8xf32>
    %161 = arith.addf %140, %160 : vector<8x8xf32>
    %162 = arith.addf %161, %157 : vector<8x8xf32>
    %cst_124 = arith.constant dense<0xFF800000> : vector<8xf32>
    %163 = vector.multi_reduction <maximumf>, %162, %cst_124 [1] : vector<8x8xf32> to vector<8xf32>
    %164 = vector.shape_cast %163 : vector<8xf32> to vector<8x1xf32>
    %165 = vector.broadcast %164 : vector<8x1xf32> to vector<8x8xf32>
    %166 = arith.subf %162, %165 : vector<8x8xf32>
    %167 = math.exp %166 : vector<8x8xf32>
    %cst_125 = arith.constant dense<0.000000e+00> : vector<8xf32>
    %168 = vector.multi_reduction <add>, %167, %cst_125 [1] : vector<8x8xf32> to vector<8xf32>
    %169 = vector.shape_cast %168 : vector<8xf32> to vector<8x1xf32>
    %170 = tpu.reciprocal %169 {approx = true} : vector<8x1xf32> -> vector<8x1xf32>
    %171 = vector.broadcast %170 : vector<8x1xf32> to vector<8x8xf32>
    %172 = arith.mulf %167, %171 : vector<8x8xf32>
    %173 = arith.truncf %172 : vector<8x8xf32> to vector<8x8xbf16>
    %cst_126 = arith.constant dense<0.000000e+00> : vector<8x8xf32>
    %174 = tpu.matmul %173, %126, %cst_126 {dimension_numbers = #tpu.dot_dimension_numbers<[1], [0], [0], [1], [0, 0, 1, 1], [], []>} : vector<8x8xbf16>, vector<8x8xbf16>, vector<8x8xf32> -> vector<8x8xf32>
    %175 = arith.truncf %174 : vector<8x8xf32> to vector<8x8xbf16>
    %c0_127 = arith.constant 0 : index
    %c0_128 = arith.constant 0 : index
    %c16 = arith.constant 16 : index
    %176 = vector.load %arg10[%c0_127, %c0_128, %c16] : memref<1x8x32xbf16, #tpu.memory_space<vmem>>, vector<1x8x8xbf16>
    %177 = vector.shape_cast %176 : vector<1x8x8xbf16> to vector<8x8xbf16>
    %178 = vector.shape_cast %175 : vector<8x8xbf16> to vector<1x8x8xbf16>
    tpu.vector_store %arg10[%c0_127, %c0_128, %c16], %178 {strides = array<i32>} : memref<1x8x32xbf16, #tpu.memory_space<vmem>>, vector<1x8x8xbf16>,
    %c0_129 = arith.constant 0 : index
    %c0_130 = arith.constant 0 : index
    %c0_131 = arith.constant 0 : index
    %c3 = arith.constant 3 : index
    %c0_132 = arith.constant 0 : index
    %179 = vector.load %arg2[%c0_129, %c0_130, %c0_131, %c3, %c0_132] : memref<1x8x1x4x8xbf16, #tpu.memory_space<vmem>>, vector<1x8x1x1x8xbf16>
    %180 = vector.shape_cast %179 : vector<1x8x1x1x8xbf16> to vector<8x8xbf16>
    %181 = arith.extf %180 : vector<8x8xbf16> to vector<8x8xf32>
    %c0_133 = arith.constant 0 : index
    %c0_134 = arith.constant 0 : index
    %c0_135 = arith.constant 0 : index
    %c3_136 = arith.constant 3 : index
    %c0_137 = arith.constant 0 : index
    %182 = vector.load %arg3[%c0_133, %c0_134, %c0_135, %c3_136, %c0_137] : memref<1x8x1x4x8xbf16, #tpu.memory_space<vmem>>, vector<1x8x1x1x8xbf16>
    %183 = vector.shape_cast %182 : vector<1x8x1x1x8xbf16> to vector<8x8xbf16>
    %c0_138 = arith.constant 0 : index
    %c0_139 = arith.constant 0 : index
    %c0_140 = arith.constant 0 : index
    %c3_141 = arith.constant 3 : index
    %c0_142 = arith.constant 0 : index
    %184 = vector.load %arg4[%c0_138, %c0_139, %c0_140, %c3_141, %c0_142] : memref<1x8x1x4x8xbf16, #tpu.memory_space<vmem>>, vector<1x8x1x1x8xbf16>
    %185 = vector.shape_cast %184 : vector<1x8x1x1x8xbf16> to vector<8x8xbf16>
    %c0_143 = arith.constant 0 : index
    %c3_144 = arith.constant 3 : index
    %c0_145 = arith.constant 0 : index
    %186 = vector.load %arg7[%c0_143, %c3_144, %c0_145] : memref<1x4x8xf32, #tpu.memory_space<vmem>>, vector<1x1x8xf32>
    %187 = vector.shape_cast %186 : vector<1x1x8xf32> to vector<1x8xf32>
    %c0_146 = arith.constant 0 : index
    %c3_147 = arith.constant 3 : index
    %c0_148 = arith.constant 0 : index
    %188 = vector.load %arg8[%c0_146, %c3_147, %c0_148] : memref<1x4x8xf32, #tpu.memory_space<vmem>>, vector<1x1x8xf32>
    %189 = vector.shape_cast %188 : vector<1x1x8xf32> to vector<1x8xf32>
    %c0_149 = arith.constant 0 : index
    %c0_150 = arith.constant 0 : index
    %c3_151 = arith.constant 3 : index
    %c0_152 = arith.constant 0 : index
    %190 = vector.load %arg9[%c0_149, %c0_150, %c3_151, %c0_152] : memref<1x2x4x8xf32, #tpu.memory_space<vmem>>, vector<1x1x1x8xf32>
    %191 = vector.shape_cast %190 : vector<1x1x1x8xf32> to vector<1x8xf32>
    %c0_153 = arith.constant 0 : index
    %c1_154 = arith.constant 1 : index
    %c3_155 = arith.constant 3 : index
    %c0_156 = arith.constant 0 : index
    %192 = vector.load %arg9[%c0_153, %c1_154, %c3_155, %c0_156] : memref<1x2x4x8xf32, #tpu.memory_space<vmem>>, vector<1x1x1x8xf32>
    %193 = vector.shape_cast %192 : vector<1x1x1x8xf32> to vector<1x8xf32>
    %194 = vector.broadcast %187 : vector<1x8xf32> to vector<8x8xf32>
    %195 = arith.addf %181, %194 : vector<8x8xf32>
    %cst_157 = arith.constant 0.353553385 : f32
    %196 = vector.broadcast %cst_157 : f32 to vector<8x8xf32>
    %197 = arith.mulf %195, %196 : vector<8x8xf32>
    %198 = arith.truncf %197 : vector<8x8xf32> to vector<8x8xbf16>
    %cst_158 = arith.constant dense<0.000000e+00> : vector<8x8xf32>
    %199 = tpu.matmul %198, %183, %cst_158 {dimension_numbers = #tpu.dot_dimension_numbers<[1], [1], [0], [0], [0, 0, 1, 0], [], []>} : vector<8x8xbf16>, vector<8x8xbf16>, vector<8x8xf32> -> vector<8x8xf32>
    %200 = vector.broadcast %189 : vector<1x8xf32> to vector<8x8xf32>
    %201 = arith.addf %181, %200 : vector<8x8xf32>
    %cst_159 = arith.constant 0.353553385 : f32
    %202 = vector.broadcast %cst_159 : f32 to vector<8x8xf32>
    %203 = arith.mulf %201, %202 : vector<8x8xf32>
    %204 = vector.broadcast %191 : vector<1x8xf32> to vector<8x8xf32>
    %205 = arith.mulf %203, %204 : vector<8x8xf32>
    %cst_160 = arith.constant dense<0.000000e+00> : vector<8xf32>
    %206 = vector.multi_reduction <add>, %205, %cst_160 [1] : vector<8x8xf32> to vector<8xf32>
    %207 = vector.shape_cast %206 : vector<8xf32> to vector<8x1xf32>
    %208 = vector.broadcast %193 : vector<1x8xf32> to vector<8x8xf32>
    %209 = arith.mulf %203, %208 : vector<8x8xf32>
    %cst_161 = arith.constant dense<0.000000e+00> : vector<8xf32>
    %210 = vector.multi_reduction <add>, %209, %cst_161 [1] : vector<8x8xf32> to vector<8xf32>
    %211 = vector.shape_cast %210 : vector<8xf32> to vector<8x1xf32>
    %212 = arith.subf %207, %211 : vector<8x1xf32>
    %213 = vector.broadcast %212 : vector<8x1xf32> to vector<8x8xf32>
    %214 = arith.mulf %1, %213 : vector<8x8xf32>
    %215 = vector.broadcast %211 : vector<8x1xf32> to vector<8x8xf32>
    %216 = arith.addf %215, %214 : vector<8x8xf32>
    %c0_162 = arith.constant 0 : index
    %c3_163 = arith.constant 3 : index
    %c0_164 = arith.constant 0 : index
    %c0_165 = arith.constant 0 : index
    %217 = vector.load %arg5[%c0_162, %c3_163, %c0_164, %c0_165] : memref<1x4x8x8xbf16, #tpu.memory_space<vmem>>, vector<1x1x8x8xbf16>
    %218 = vector.shape_cast %217 : vector<1x1x8x8xbf16> to vector<8x8xbf16>
    %219 = arith.extf %218 : vector<8x8xbf16> to vector<8x8xf32>
    %220 = arith.addf %199, %219 : vector<8x8xf32>
    %221 = arith.addf %220, %216 : vector<8x8xf32>
    %cst_166 = arith.constant dense<0xFF800000> : vector<8xf32>
    %222 = vector.multi_reduction <maximumf>, %221, %cst_166 [1] : vector<8x8xf32> to vector<8xf32>
    %223 = vector.shape_cast %222 : vector<8xf32> to vector<8x1xf32>
    %224 = vector.broadcast %223 : vector<8x1xf32> to vector<8x8xf32>
    %225 = arith.subf %221, %224 : vector<8x8xf32>
    %226 = math.exp %225 : vector<8x8xf32>
    %cst_167 = arith.constant dense<0.000000e+00> : vector<8xf32>
    %227 = vector.multi_reduction <add>, %226, %cst_167 [1] : vector<8x8xf32> to vector<8xf32>
    %228 = vector.shape_cast %227 : vector<8xf32> to vector<8x1xf32>
    %229 = tpu.reciprocal %228 {approx = true} : vector<8x1xf32> -> vector<8x1xf32>
    %230 = vector.broadcast %229 : vector<8x1xf32> to vector<8x8xf32>
    %231 = arith.mulf %226, %230 : vector<8x8xf32>
    %232 = arith.truncf %231 : vector<8x8xf32> to vector<8x8xbf16>
    %cst_168 = arith.constant dense<0.000000e+00> : vector<8x8xf32>
    %233 = tpu.matmul %232, %185, %cst_168 {dimension_numbers = #tpu.dot_dimension_numbers<[1], [0], [0], [1], [0, 0, 1, 1], [], []>} : vector<8x8xbf16>, vector<8x8xbf16>, vector<8x8xf32> -> vector<8x8xf32>
    %234 = arith.truncf %233 : vector<8x8xf32> to vector<8x8xbf16>
    %c0_169 = arith.constant 0 : index
    %c0_170 = arith.constant 0 : index
    %c24 = arith.constant 24 : index
    %235 = vector.load %arg10[%c0_169, %c0_170, %c24] : memref<1x8x32xbf16, #tpu.memory_space<vmem>>, vector<1x8x8xbf16>
    %236 = vector.shape_cast %235 : vector<1x8x8xbf16> to vector<8x8xbf16>
    %237 = vector.shape_cast %234 : vector<8x8xbf16> to vector<1x8x8xbf16>
    tpu.vector_store %arg10[%c0_169, %c0_170, %c24], %237 {strides = array<i32>} : memref<1x8x32xbf16, #tpu.memory_space<vmem>>, vector<1x8x8xbf16>,
    return
  }
  func.func @transform_0(%arg0: i32, %arg1: i32) -> (i32, i32, i32, i32, i32) {
    %c0_i32 = arith.constant 0 : i32
    %c0_i32_0 = arith.constant 0 : i32
    %c0_i32_1 = arith.constant 0 : i32
    %c0_i32_2 = arith.constant 0 : i32
    return %arg0, %c0_i32, %c0_i32_0, %arg1, %c0_i32_1 : i32, i32, i32, i32, i32
  }
  func.func @transform_1(%arg0: i32, %arg1: i32) -> (i32, i32, i32, i32, i32) {
    %c0_i32 = arith.constant 0 : i32
    %c1_i32 = arith.constant 1 : i32
    %c0_i32_0 = arith.constant 0 : i32
    %c0_i32_1 = arith.constant 0 : i32
    return %arg0, %c0_i32, %c1_i32, %arg1, %c0_i32_0 : i32, i32, i32, i32, i32
  }
  func.func @transform_2(%arg0: i32, %arg1: i32) -> (i32, i32, i32, i32, i32) {
    %c0_i32 = arith.constant 0 : i32
    %c2_i32 = arith.constant 2 : i32
    %c0_i32_0 = arith.constant 0 : i32
    %c0_i32_1 = arith.constant 0 : i32
    return %arg0, %c0_i32, %c2_i32, %arg1, %c0_i32_0 : i32, i32, i32, i32, i32
  }
  func.func @transform_3(%arg0: i32, %arg1: i32) -> (i32, i32, i32, i32) {
    %c0_i32 = arith.constant 0 : i32
    %c0_i32_0 = arith.constant 0 : i32
    %c0_i32_1 = arith.constant 0 : i32
    return %arg0, %arg1, %c0_i32, %c0_i32_0 : i32, i32, i32, i32
  }
  func.func @transform_4(%arg0: i32, %arg1: i32) -> (i32, i32, i32) {
    %c0_i32 = arith.constant 0 : i32
    %c0_i32_0 = arith.constant 0 : i32
    %c0_i32_1 = arith.constant 0 : i32
    return %arg0, %c0_i32, %c0_i32_0 : i32, i32, i32
  }
  func.func @transform_5(%arg0: i32, %arg1: i32) -> (i32, i32, i32) {
    %c0_i32 = arith.constant 0 : i32
    %c0_i32_0 = arith.constant 0 : i32
    %c0_i32_1 = arith.constant 0 : i32
    return %arg1, %c0_i32, %c0_i32_0 : i32, i32, i32
  }
  func.func @transform_6(%arg0: i32, %arg1: i32) -> (i32, i32, i32) {
    %c0_i32 = arith.constant 0 : i32
    %c0_i32_0 = arith.constant 0 : i32
    %c0_i32_1 = arith.constant 0 : i32
    return %arg1, %c0_i32, %c0_i32_0 : i32, i32, i32
  }
  func.func @transform_7(%arg0: i32, %arg1: i32) -> (i32, i32, i32, i32) {
    %c0_i32 = arith.constant 0 : i32
    %c0_i32_0 = arith.constant 0 : i32
    %c0_i32_1 = arith.constant 0 : i32
    %c0_i32_2 = arith.constant 0 : i32
    return %arg1, %c0_i32, %c0_i32_0, %c0_i32_1 : i32, i32, i32, i32
  }
  func.func @transform_8(%arg0: i32, %arg1: i32) -> (i32, i32, i32) {
    %c0_i32 = arith.constant 0 : i32
    %c0_i32_0 = arith.constant 0 : i32
    return %arg0, %c0_i32, %arg1 : i32, i32, i32
  }
}

</mosaic_0001>

<bundles_post_ra>
// kernel: model_forward.8
= control target key start
LH: loop header
LB: loop body
LE: loop exit
PB: predicated region body
PF: predicated region fallthrough
CT: control target
= control target key end

     0   :  { %7 = vsyncpa [#allocation4], 0  ;;  %s329_s0 = inlined_call_operand.hbm [shape: bf16[16,32], index: 0, kind: input, shape index: {}]   ;;  %s330_s1 = inlined_call_operand.hbm [shape: bf16[32,96], index: 1, kind: input, shape index: {}]   ;;  %s331_s2 = inlined_call_operand.hbm [shape: bf16[16,96], index: 2, kind: output, shape index: {}]  }
   0x1   :  { %8 = vsyncpa [#allocation7], 0 }
   0x2   :  { %9 = vsyncpa [#allocation5], 0  ;;  %s258_s9 = smov [#allocation3]   ;;  %s186_s13 = scalar_lea.hbm %s329_s0, 128 }
   0x3   :  { %s15_s10 = sshll.u32 %s258_s9, 4  ;;  %p187_p0 = scmp.ne.s32.totalorder %s329_s0, %s186_s13  ;;  %s16_s10 = int_to_ptr.vmem [resolvable:$true] %s15_s10 }
   0x4   :  { %p190_p1 = scmp.lt.u32.totalorder %s186_s13, %s329_s0 }
   0x6   :  { %p192_p2 = pnand %p190_p1, %p187_p0 }
   0x8   :  { %195 = shalt.err (!%p192_p2)
}
   0x9   :  { %s196_s18 = scalar_lea.vmem %s16_s10, 128  ;;  %p201_p4 = scmp.lt.s32.totalorder %s16_s10, %s16_s10 }
   0xa   :  { %p197_p3 = scmp.ne.s32.totalorder %s16_s10, %s196_s18  ;;  %p202_p5 = scmp.lt.s32.totalorder %s196_s18, %s196_s18 }
   0xc   :  { %p203_p6 = por %p202_p5, %p201_p4 }
   0xe   :  { %p204_p7 = pnand %p203_p6, %p197_p3 }
  0x10   :  { %207 = shalt.err (!%p204_p7)
}
  0x11   :  { %s259_s19 = smov 64   ;;  %s260_s20 = smov 4  }
  0x12   :  { %21 = dma.hbm_to_vmem [thread:$0]  %s329_s0, 128, %s16_s10, [#allocation4], %s259_s19, %s259_s19, %s260_s20  }
  0x13   :  { %s261_s23 = smov [#allocation6]   ;;  %s208_s27 = scalar_lea.hbm %s330_s1, 256 }
  0x14   :  { %s27_s24 = sshll.u32 %s261_s23, 4  ;;  %p209_p8 = scmp.ne.s32.totalorder %s330_s1, %s208_s27  ;;  %s28_s24 = int_to_ptr.vmem [resolvable:$true] %s27_s24 }
  0x15   :  { %p212_p9 = scmp.lt.u32.totalorder %s208_s27, %s330_s1 }
  0x17   :  { %p214_p10 = pnand %p212_p9, %p209_p8 }
  0x19   :  { %217 = shalt.err (!%p214_p10)
}
  0x1a   :  { %s218_s4 = scalar_lea.vmem %s28_s24, 256  ;;  %p223_p12 = scmp.lt.s32.totalorder %s28_s24, %s28_s24 }
  0x1b   :  { %p219_p11 = scmp.ne.s32.totalorder %s28_s24, %s218_s4  ;;  %p224_p13 = scmp.lt.s32.totalorder %s218_s4, %s218_s4 }
  0x1d   :  { %p225_p0 = por %p224_p13, %p223_p12 }
  0x1f   :  { %p226_p1 = pnand %p225_p0, %p219_p11 }
  0x21   :  { %229 = shalt.err (!%p226_p1)
}
  0x22   :  { %33 = dma.hbm_to_vmem [thread:$0]  %s330_s1, 256, %s28_s24, [#allocation7], %s259_s19, %s259_s19, %s260_s20  }
  0x23   :  { %252 = dma.done.wait [#allocation4], 128  }
  0x24   :  { %253 = vsyncadd [#allocation4], 4294967168 }
  0x25   :  { %254 = dma.done.wait [#allocation7], 256  }
  0x26   :  { %255 = vsyncadd [#allocation7], 4294967040  ;;  %vm45_vm0 = vcmask 785408   ;;  %v262_v0 = vmov 0.0   ;;  %vm263_vm1 = vmmov 0   ;;  %v183_v1 = vld [vmem:[#allocation6] sm:$0xff]  }
  0x27   :  { %46 = vst.msk [vmem:[#allocation2] sm:$0xff] %vm45_vm0, %v262_v0  ;;  %47 = vst.msk [vmem:[#allocation2 + $0x8] sm:$0xff] %vm45_vm0, %v262_v0  ;;  %168 = vmatprep.subr.bf16.mxu0 %v262_v0  ;;  %172 = vmatprep.mubr.msk.bf16.mxu0 %vm263_vm1, %v262_v0  ;;  %v184_v2 = vld [vmem:[#allocation6 + $0x8] sm:$0xff]   ;;  %v185_v3 = vld [vmem:[#allocation3] sm:$0xff]   ;;  %vm73_vm2 = vcmask 261120   ;;  %vm136_vm3 = vcmask 781312  }
  0x28   :  { %169 = vmatpush3.bf16.msra.mxu0 %v183_v1  ;;  %s264_s1 = smov [#allocation8]  }
  0x29   :  { %170 = vmatprep.subr.bf16.mxu0 %v262_v0  ;;  %s144_s6 = sshll.u32 %s264_s1, 4  ;;  %s145_s6 = int_to_ptr.vmem [resolvable:$true] %s144_s6 }
  0x2a   :  { %s230_s7 = scalar_lea.vmem %s145_s6, 128  ;;  %p235_p3 = scmp.lt.s32.totalorder %s145_s6, %s145_s6 }
  0x2b   :  { %p231_p2 = scmp.ne.s32.totalorder %s145_s6, %s230_s7  ;;  %p236_p4 = scmp.lt.s32.totalorder %s230_s7, %s230_s7 }
  0x2c   :  { %171 = vmatpush3.bf16.msra.mxu0 %v184_v2 }
  0x2d   :  { %p237_p5 = por %p236_p4, %p235_p3 }
  0x2e   :  { %v48_v4 = vld [vmem:[#allocation2] sm:$0xff]  ;;  %v49_v6 = vld [vmem:[#allocation2 + $0x8] sm:$0xff] }
  0x2f   :  { %173 = vmatmul.mubr.msk.bf16.vlgmr.msra.gmra.mrb[0].mxu0 %vm73_vm2, %v185_v3  ;;  %p238_p6 = pnand %p237_p5, %p231_p2 }
 0x102   :  { %v111_v5 = vpop.f32.mrb[0].mxu0 }
 0x103   :  { %v118_v7 = vadd.f32 %v111_v5, %v48_v4  ;;  %v174_v8 = vpop.f32.mrb[1].mxu0 }
 0x104   :  { %v114_v9 = vpop.f32.mrb[2].mxu0 }
 0x105   :  { %121 = vst.msk [vmem:[#allocation2] sm:$0xff] %vm45_vm0, %v118_v7  ;;  %v119_v10 = vadd.f32 %v114_v9, %v49_v6  ;;  %v175_v11 = vpop.f32.mrb[3].mxu0 }
 0x107   :  { %122 = vst.msk [vmem:[#allocation2 + $0x8] sm:$0xff] %vm45_vm0, %v119_v10 }
 0x10c   :  { %v126_v12 = vld [vmem:[#allocation2] sm:$0xff] }
 0x10d   :  { %v163_v13 = vpack.c.bf16 %v126_v12, %v126_v12 }
 0x10e   :  { %v127_v14 = vld [vmem:[#allocation2 + $0x8] sm:$0xff] }
 0x10f   :  { %v164_v15 = vpack.c.bf16 %v127_v14, %v127_v14  ;;  %137 = vst.msk [vmem:[#allocation8] sm:$0xf] %vm136_vm3, %v163_v13 }
 0x111   :  { %138 = vst.msk [vmem:[#allocation8 + $0x4] sm:$0xf] %vm136_vm3, %v164_v15 }
 0x112   :  { %241 = shalt.err (!%p238_p6)
}
 0x113   :  { %s242_s10 = scalar_lea.hbm %s331_s2, 128 }
 0x114   :  { %p243_p7 = scmp.ne.s32.totalorder %s331_s2, %s242_s10  ;;  %p246_p8 = scmp.lt.u32.totalorder %s242_s10, %s331_s2 }
 0x116   :  { %p248_p9 = pnand %p246_p8, %p243_p7 }
 0x118   :  { %251 = shalt.err (!%p248_p9)
}
 0x119   :  { %150 = dma.vmem_to_hbm [thread:$0]  %s145_s6, 128, %s331_s2, [#allocation5], %s259_s19, %s259_s19, %s260_s20  }
 0x11a   :  { %256 = dma.done.wait [#allocation5], 128  }
 0x11b   :  { %257 = vsyncadd [#allocation5], 4294967168 }
 0x11c   :  { %154 = vsyncpa [#allocation4], 1 }
 0x11d   :  { %155 = vsyncpa [#allocation7], 1 }
 0x11e   :  { %156 = vsyncpa [#allocation5], 1 }

// kernel: model_forward.7
= control target key start
LH: loop header
LB: loop body
LE: loop exit
PB: predicated region body
PF: predicated region fallthrough
CT: control target
= control target key end

     0   :  { %7 = vsyncpa [#allocation4], 0  ;;  %s329_s0 = inlined_call_operand.hbm [shape: bf16[16,32], index: 0, kind: input, shape index: {}]   ;;  %s330_s1 = inlined_call_operand.hbm [shape: bf16[32,32], index: 1, kind: input, shape index: {}]   ;;  %s331_s2 = inlined_call_operand.hbm [shape: bf16[16,32], index: 2, kind: output, shape index: {}]  }
   0x1   :  { %8 = vsyncpa [#allocation7], 0 }
   0x2   :  { %9 = vsyncpa [#allocation5], 0  ;;  %s257_s9 = smov [#allocation3]   ;;  %s185_s13 = scalar_lea.hbm %s329_s0, 128 }
   0x3   :  { %s15_s10 = sshll.u32 %s257_s9, 4  ;;  %p186_p0 = scmp.ne.s32.totalorder %s329_s0, %s185_s13  ;;  %s16_s10 = int_to_ptr.vmem [resolvable:$true] %s15_s10 }
   0x4   :  { %p189_p1 = scmp.lt.u32.totalorder %s185_s13, %s329_s0 }
   0x6   :  { %p191_p2 = pnand %p189_p1, %p186_p0 }
   0x8   :  { %194 = shalt.err (!%p191_p2)
}
   0x9   :  { %s195_s18 = scalar_lea.vmem %s16_s10, 128  ;;  %p200_p4 = scmp.lt.s32.totalorder %s16_s10, %s16_s10 }
   0xa   :  { %p196_p3 = scmp.ne.s32.totalorder %s16_s10, %s195_s18  ;;  %p201_p5 = scmp.lt.s32.totalorder %s195_s18, %s195_s18 }
   0xc   :  { %p202_p6 = por %p201_p5, %p200_p4 }
   0xe   :  { %p203_p7 = pnand %p202_p6, %p196_p3 }
  0x10   :  { %206 = shalt.err (!%p203_p7)
}
  0x11   :  { %s258_s19 = smov 64   ;;  %s259_s20 = smov 4  }
  0x12   :  { %21 = dma.hbm_to_vmem [thread:$0]  %s329_s0, 128, %s16_s10, [#allocation4], %s258_s19, %s258_s19, %s259_s20  }
  0x13   :  { %s260_s23 = smov [#allocation6]   ;;  %s207_s27 = scalar_lea.hbm %s330_s1, 256 }
  0x14   :  { %s27_s24 = sshll.u32 %s260_s23, 4  ;;  %p208_p8 = scmp.ne.s32.totalorder %s330_s1, %s207_s27  ;;  %s28_s24 = int_to_ptr.vmem [resolvable:$true] %s27_s24 }
  0x15   :  { %p211_p9 = scmp.lt.u32.totalorder %s207_s27, %s330_s1 }
  0x17   :  { %p213_p10 = pnand %p211_p9, %p208_p8 }
  0x19   :  { %216 = shalt.err (!%p213_p10)
}
  0x1a   :  { %s217_s4 = scalar_lea.vmem %s28_s24, 256  ;;  %p222_p12 = scmp.lt.s32.totalorder %s28_s24, %s28_s24 }
  0x1b   :  { %p218_p11 = scmp.ne.s32.totalorder %s28_s24, %s217_s4  ;;  %p223_p13 = scmp.lt.s32.totalorder %s217_s4, %s217_s4 }
  0x1d   :  { %p224_p0 = por %p223_p13, %p222_p12 }
  0x1f   :  { %p225_p1 = pnand %p224_p0, %p218_p11 }
  0x21   :  { %228 = shalt.err (!%p225_p1)
}
  0x22   :  { %33 = dma.hbm_to_vmem [thread:$0]  %s330_s1, 256, %s28_s24, [#allocation7], %s258_s19, %s258_s19, %s259_s20  }
  0x23   :  { %251 = dma.done.wait [#allocation4], 128  }
  0x24   :  { %252 = vsyncadd [#allocation4], 4294967168 }
  0x25   :  { %253 = dma.done.wait [#allocation7], 256  }
  0x26   :  { %254 = vsyncadd [#allocation7], 4294967040  ;;  %vm45_vm0 = vcmask 261120   ;;  %v261_v0 = vmov 0.0   ;;  %vm262_vm1 = vmmov 0   ;;  %v182_v1 = vld [vmem:[#allocation6] sm:$0xff]  }
  0x27   :  { %167 = vmatprep.subr.bf16.mxu0 %v261_v0  ;;  %171 = vmatprep.mubr.msk.bf16.mxu0 %vm262_vm1, %v261_v0  ;;  %46 = vst.msk [vmem:[#allocation2] sm:$0xff] %vm45_vm0, %v261_v0  ;;  %47 = vst.msk [vmem:[#allocation2 + $0x8] sm:$0xff] %vm45_vm0, %v261_v0  ;;  %v183_v2 = vld [vmem:[#allocation6 + $0x8] sm:$0xff]   ;;  %v184_v3 = vld [vmem:[#allocation3] sm:$0xff]   ;;  %vm135_vm2 = vcmask 257024   ;;  %s263_s1 = smov [#allocation8]  }
  0x28   :  { %168 = vmatpush3.bf16.msra.mxu0 %v182_v1  ;;  %s143_s6 = sshll.u32 %s263_s1, 4  ;;  %s144_s6 = int_to_ptr.vmem [resolvable:$true] %s143_s6 }
  0x29   :  { %169 = vmatprep.subr.bf16.mxu0 %v261_v0  ;;  %s229_s7 = scalar_lea.vmem %s144_s6, 128  ;;  %p234_p3 = scmp.lt.s32.totalorder %s144_s6, %s144_s6 }
  0x2a   :  { %p230_p2 = scmp.ne.s32.totalorder %s144_s6, %s229_s7  ;;  %p235_p4 = scmp.lt.s32.totalorder %s229_s7, %s229_s7 }
  0x2c   :  { %170 = vmatpush3.bf16.msra.mxu0 %v183_v2  ;;  %p236_p5 = por %p235_p4, %p234_p3 }
  0x2e   :  { %v48_v4 = vld [vmem:[#allocation2] sm:$0xff]  ;;  %v49_v6 = vld [vmem:[#allocation2 + $0x8] sm:$0xff]  ;;  %p237_p6 = pnand %p236_p5, %p230_p2 }
  0x2f   :  { %172 = vmatmul.mubr.msk.bf16.vlgmr.msra.gmra.mrb[0].mxu0 %vm45_vm0, %v184_v3 }
 0x102   :  { %v111_v5 = vpop.f32.mrb[0].mxu0 }
 0x103   :  { %v118_v7 = vadd.f32 %v111_v5, %v48_v4  ;;  %v173_v8 = vpop.f32.mrb[1].mxu0 }
 0x104   :  { %v114_v9 = vpop.f32.mrb[2].mxu0 }
 0x105   :  { %120 = vst.msk [vmem:[#allocation2] sm:$0xff] %vm45_vm0, %v118_v7  ;;  %v119_v10 = vadd.f32 %v114_v9, %v49_v6  ;;  %v174_v11 = vpop.f32.mrb[3].mxu0 }
 0x107   :  { %121 = vst.msk [vmem:[#allocation2 + $0x8] sm:$0xff] %vm45_vm0, %v119_v10 }
 0x10c   :  { %v125_v12 = vld [vmem:[#allocation2] sm:$0xff] }
 0x10d   :  { %v162_v13 = vpack.c.bf16 %v125_v12, %v125_v12 }
 0x10e   :  { %v126_v14 = vld [vmem:[#allocation2 + $0x8] sm:$0xff] }
 0x10f   :  { %v163_v15 = vpack.c.bf16 %v126_v14, %v126_v14  ;;  %136 = vst.msk [vmem:[#allocation8] sm:$0xf] %vm135_vm2, %v162_v13 }
 0x111   :  { %137 = vst.msk [vmem:[#allocation8 + $0x4] sm:$0xf] %vm135_vm2, %v163_v15 }
 0x112   :  { %240 = shalt.err (!%p237_p6)
}
 0x113   :  { %s241_s10 = scalar_lea.hbm %s331_s2, 128 }
 0x114   :  { %p242_p7 = scmp.ne.s32.totalorder %s331_s2, %s241_s10  ;;  %p245_p8 = scmp.lt.u32.totalorder %s241_s10, %s331_s2 }
 0x116   :  { %p247_p9 = pnand %p245_p8, %p242_p7 }
 0x118   :  { %250 = shalt.err (!%p247_p9)
}
 0x119   :  { %149 = dma.vmem_to_hbm [thread:$0]  %s144_s6, 128, %s331_s2, [#allocation5], %s258_s19, %s258_s19, %s259_s20  }
 0x11a   :  { %255 = dma.done.wait [#allocation5], 128  }
 0x11b   :  { %256 = vsyncadd [#allocation5], 4294967168 }
 0x11c   :  { %153 = vsyncpa [#allocation4], 1 }
 0x11d   :  { %154 = vsyncpa [#allocation7], 1 }
 0x11e   :  { %155 = vsyncpa [#allocation5], 1 }

// kernel: model_forward.10
= control target key start
LH: loop header
LB: loop body
LE: loop exit
PB: predicated region body
PF: predicated region fallthrough
CT: control target
= control target key end

     0   :  { %14 = vsyncpa [#allocation3], 0  ;;  %s884_s0 = inlined_call_operand.hbm [shape: bf16[16,32], index: 0, kind: input, shape index: {}]   ;;  %s885_s1 = inlined_call_operand.hbm [shape: bf16[16,32], index: 1, kind: input, shape index: {}]   ;;  %s886_s2 = inlined_call_operand.hbm [shape: bf16[32,32], index: 2, kind: input, shape index: {}]   ;;  %s887_s3 = inlined_call_operand.hbm [shape: bf16[32,32], index: 3, kind: input, shape index: {}]   ;;  %s888_s4 = inlined_call_operand.hbm [shape: f32[1,32], index: 4, kind: input, shape index: {}]   ;;  %s889_s5 = inlined_call_operand.hbm [shape: f32[1,32], index: 5, kind: input, shape index: {}]   ;;  %s890_s6 = inlined_call_operand.hbm [shape: f32[1,32], index: 6, kind: input, shape index: {}]   ;;  %s891_s7 = inlined_call_operand.hbm [shape: f32[16,32], index: 7, kind: output, shape index: {0}]   ;;  %s892_s8 = inlined_call_operand.hbm [shape: bf16[16,32], index: 8, kind: output, shape index: {1}]  }
   0x1   :  { %15 = vsyncpa [#allocation6], 0 }
   0x2   :  { %16 = vsyncpa [#allocation9], 0 }
   0x3   :  { %17 = vsyncpa [#allocation12], 0 }
   0x4   :  { %18 = vsyncpa [#allocation4], 0 }
   0x5   :  { %19 = vsyncpa [#allocation16], 0  ;;  %s666_s27 = smov [#allocation5]   ;;  %s667_s29 = smov [#allocation8]  }
   0x6   :  { %s37_s28 = sshll.u32 %s666_s27, 4  ;;  %s61_s30 = sshll.u32 %s667_s29, 4  ;;  %s38_s28 = int_to_ptr.vmem [resolvable:$true] %s37_s28  ;;  %s726_s30 = int_to_ptr.vmem [resolvable:$true] %s61_s30 }
   0x7   :  { %s456_s11 = scalar_lea.hbm %s885_s1, 128 }
   0x8   :  { %p457_p0 = scmp.ne.s32.totalorder %s885_s1, %s456_s11  ;;  %p460_p1 = scmp.lt.u32.totalorder %s456_s11, %s885_s1 }
   0xa   :  { %p462_p2 = pnand %p460_p1, %p457_p0 }
   0xc   :  { %465 = shalt.err (!%p462_p2)
}
   0xd   :  { %s466_s16 = scalar_lea.vmem %s38_s28, 128  ;;  %p471_p4 = scmp.lt.s32.totalorder %s38_s28, %s38_s28 }
   0xe   :  { %p467_p3 = scmp.ne.s32.totalorder %s38_s28, %s466_s16  ;;  %p472_p5 = scmp.lt.s32.totalorder %s466_s16, %s466_s16 }
  0x10   :  { %p473_p6 = por %p472_p5, %p471_p4 }
  0x12   :  { %p474_p7 = pnand %p473_p6, %p467_p3 }
  0x14   :  { %477 = shalt.err (!%p474_p7)
}
  0x15   :  { %s668_s17 = smov 64   ;;  %s669_s18 = smov 4  }
  0x16   :  { %43 = dma.hbm_to_vmem [thread:$0]  %s885_s1, 128, %s38_s28, [#allocation6], %s668_s17, %s668_s17, %s669_s18  }
  0x17   :  { %s478_s23 = scalar_lea.hbm %s887_s3, 256 }
  0x18   :  { %p479_p8 = scmp.ne.s32.totalorder %s887_s3, %s478_s23  ;;  %p482_p9 = scmp.lt.u32.totalorder %s478_s23, %s887_s3 }
  0x1a   :  { %p484_p10 = pnand %p482_p9, %p479_p8 }
  0x1c   :  { %487 = shalt.err (!%p484_p10)
}
  0x1d   :  { %s488_s29 = scalar_lea.vmem %s726_s30, 256  ;;  %p493_p12 = scmp.lt.s32.totalorder %s726_s30, %s726_s30 }
  0x1e   :  { %p489_p11 = scmp.ne.s32.totalorder %s726_s30, %s488_s29  ;;  %p494_p13 = scmp.lt.s32.totalorder %s488_s29, %s488_s29 }
  0x20   :  { %p495_p0 = por %p494_p13, %p493_p12 }
  0x22   :  { %p496_p1 = pnand %p495_p0, %p489_p11 }
  0x24   :  { %499 = shalt.err (!%p496_p1)
}
  0x25   :  { %67 = dma.hbm_to_vmem [thread:$0]  %s887_s3, 256, %s726_s30, [#allocation9], %s668_s17, %s668_s17, %s669_s18  }
  0x26   :  { %s670_s9 = smov [#allocation11]   ;;  %s671_s11 = smov [#allocation2]  }
  0x27   :  { %s84_s10 = sshll.u32 %s670_s9, 4  ;;  %s25_s12 = sshll.u32 %s671_s11, 4  ;;  %s85_s10 = int_to_ptr.vmem [resolvable:$true] %s84_s10  ;;  %s763_s12 = int_to_ptr.vmem [resolvable:$true] %s25_s12 }
  0x28   :  { %s500_s15 = scalar_lea.hbm %s889_s5, 16 }
  0x29   :  { %p501_p2 = scmp.ne.s32.totalorder %s889_s5, %s500_s15  ;;  %p504_p3 = scmp.lt.u32.totalorder %s500_s15, %s889_s5 }
  0x2b   :  { %p506_p4 = pnand %p504_p3, %p501_p2 }
  0x2d   :  { %509 = shalt.err (!%p506_p4)
}
  0x2e   :  { %s510_s3 = scalar_lea.vmem %s85_s10, 16  ;;  %s514_s30 = scalar_lea.vmem %s85_s10, 32 }
  0x2f   :  { %p511_p5 = scmp.ne.s32.totalorder %s85_s10, %s510_s3  ;;  %p515_p6 = scmp.lt.s32.totalorder %s85_s10, %s85_s10 }
  0x30   :  { %p516_p7 = scmp.lt.s32.totalorder %s514_s30, %s510_s3 }
  0x32   :  { %p517_p8 = por %p516_p7, %p515_p6 }
  0x34   :  { %p518_p9 = pnand %p517_p8, %p511_p5 }
  0x36   :  { %521 = shalt.err (!%p518_p9)
}
  0x37   :  { %87 = dma.hbm_to_vmem [thread:$0]  %s889_s5, 16, %s85_s10, [#allocation12]  }
  0x38   :  { %s522_s26 = scalar_lea.hbm %s884_s0, 128 }
  0x39   :  { %p523_p10 = scmp.ne.s32.totalorder %s884_s0, %s522_s26  ;;  %p526_p11 = scmp.lt.u32.totalorder %s522_s26, %s884_s0 }
  0x3b   :  { %p528_p12 = pnand %p526_p11, %p523_p10 }
  0x3d   :  { %531 = shalt.err (!%p528_p12)
}
  0x3e   :  { %s532_s9 = scalar_lea.vmem %s763_s12, 128  ;;  %p537_p0 = scmp.lt.s32.totalorder %s763_s12, %s763_s12 }
  0x3f   :  { %p533_p13 = scmp.ne.s32.totalorder %s763_s12, %s532_s9  ;;  %p538_p1 = scmp.lt.s32.totalorder %s532_s9, %s532_s9 }
  0x41   :  { %p539_p2 = por %p538_p1, %p537_p0 }
  0x43   :  { %p540_p3 = pnand %p539_p2, %p533_p13 }
  0x45   :  { %543 = shalt.err (!%p540_p3)
}
  0x46   :  { %31 = dma.hbm_to_vmem [thread:$0]  %s884_s0, 128, %s763_s12, [#allocation3], %s668_s17, %s668_s17, %s669_s18  }
  0x47   :  { %s672_s11 = smov [#allocation7]   ;;  %s673_s14 = smov [#allocation10]  }
  0x48   :  { %s49_s13 = sshll.u32 %s672_s11, 4  ;;  %s74_s15 = sshll.u32 %s673_s14, 4  ;;  %s50_s13 = int_to_ptr.vmem [resolvable:$true] %s49_s13  ;;  %s75_s15 = int_to_ptr.vmem [resolvable:$true] %s74_s15 }
  0x49   :  { %s544_s20 = scalar_lea.hbm %s886_s2, 256 }
  0x4a   :  { %p545_p4 = scmp.ne.s32.totalorder %s886_s2, %s544_s20  ;;  %p548_p5 = scmp.lt.u32.totalorder %s544_s20, %s886_s2 }
  0x4c   :  { %p550_p6 = pnand %p548_p5, %p545_p4 }
  0x4e   :  { %553 = shalt.err (!%p550_p6)
}
  0x4f   :  { %s554_s0 = scalar_lea.vmem %s50_s13, 256  ;;  %p559_p8 = scmp.lt.s32.totalorder %s50_s13, %s50_s13 }
  0x50   :  { %p555_p7 = scmp.ne.s32.totalorder %s50_s13, %s554_s0  ;;  %p560_p9 = scmp.lt.s32.totalorder %s554_s0, %s554_s0 }
  0x52   :  { %p561_p10 = por %p560_p9, %p559_p8 }
  0x54   :  { %p562_p11 = pnand %p561_p10, %p555_p7 }
  0x56   :  { %565 = shalt.err (!%p562_p11)
}
  0x57   :  { %55 = dma.hbm_to_vmem [thread:$0]  %s886_s2, 256, %s50_s13, [#allocation6], %s668_s17, %s668_s17, %s669_s18  }
  0x58   :  { %s566_s26 = scalar_lea.hbm %s888_s4, 16 }
  0x59   :  { %p567_p12 = scmp.ne.s32.totalorder %s888_s4, %s566_s26  ;;  %p570_p13 = scmp.lt.u32.totalorder %s566_s26, %s888_s4 }
  0x5b   :  { %p572_p0 = pnand %p570_p13, %p567_p12 }
  0x5d   :  { %575 = shalt.err (!%p572_p0)
}
  0x5e   :  { %s576_s9 = scalar_lea.vmem %s75_s15, 16  ;;  %s580_s5 = scalar_lea.vmem %s75_s15, 32 }
  0x5f   :  { %p577_p1 = scmp.ne.s32.totalorder %s75_s15, %s576_s9  ;;  %p581_p2 = scmp.lt.s32.totalorder %s75_s15, %s75_s15 }
  0x60   :  { %p582_p3 = scmp.lt.s32.totalorder %s580_s5, %s576_s9 }
  0x62   :  { %p583_p4 = por %p582_p3, %p581_p2 }
  0x64   :  { %p584_p5 = pnand %p583_p4, %p577_p1 }
  0x66   :  { %587 = shalt.err (!%p584_p5)
}
  0x67   :  { %77 = dma.hbm_to_vmem [thread:$0]  %s888_s4, 16, %s75_s15, [#allocation9]  }
  0x68   :  { %s674_s11 = smov [#allocation13]   ;;  %s588_s19 = scalar_lea.hbm %s890_s6, 16 }
  0x69   :  { %s94_s13 = sshll.u32 %s674_s11, 4  ;;  %p589_p6 = scmp.ne.s32.totalorder %s890_s6, %s588_s19  ;;  %s95_s13 = int_to_ptr.vmem [resolvable:$true] %s94_s13 }
  0x6a   :  { %p592_p7 = scmp.lt.u32.totalorder %s588_s19, %s890_s6 }
  0x6c   :  { %p594_p8 = pnand %p592_p7, %p589_p6 }
  0x6e   :  { %597 = shalt.err (!%p594_p8)
}
  0x6f   :  { %s598_s22 = scalar_lea.vmem %s95_s13, 16  ;;  %s602_s4 = scalar_lea.vmem %s95_s13, 32 }
  0x70   :  { %p599_p9 = scmp.ne.s32.totalorder %s95_s13, %s598_s22  ;;  %p603_p10 = scmp.lt.s32.totalorder %s95_s13, %s95_s13 }
  0x71   :  { %p604_p11 = scmp.lt.s32.totalorder %s602_s4, %s598_s22 }
  0x73   :  { %p605_p12 = por %p604_p11, %p603_p10 }
  0x75   :  { %p606_p13 = pnand %p605_p12, %p599_p9 }
  0x77   :  { %609 = shalt.err (!%p606_p13)
}
  0x78   :  { %97 = dma.hbm_to_vmem [thread:$0]  %s890_s6, 16, %s95_s13, [#allocation12]  }
  0x79   :  { %654 = dma.done.wait [#allocation3], 128  }
  0x7a   :  { %655 = vsyncadd [#allocation3], 4294967168 }
  0x7b   :  { %656 = dma.done.wait [#allocation6], 384  }
  0x7c   :  { %657 = vsyncadd [#allocation6], 4294966912 }
  0x7d   :  { %658 = dma.done.wait [#allocation9], 272  }
  0x7e   :  { %659 = vsyncadd [#allocation9], 4294967024 }
  0x7f   :  { %660 = dma.done.wait [#allocation12], 32  }
  0x80   :  { %661 = vsyncadd [#allocation12], 4294967264  ;;  %v675_v0 = vmov 0.0   ;;  %vm676_vm0 = vmmov 0   ;;  %v443_v1 = vld [vmem:[#allocation7] sm:$0xff]   ;;  %v444_v2 = vld [vmem:[#allocation7 + $0x8] sm:$0xff]  }
  0x81   :  { %412 = vmatprep.subr.bf16.mxu0 %v675_v0  ;;  %416 = vmatprep.mubr.msk.bf16.mxu0 %vm676_vm0, %v675_v0  ;;  %v445_v3 = vld [vmem:[#allocation2] sm:$0xff]   ;;  %vm149_vm1 = vcmask 261120   ;;  %v403_v4 = vld [vmem:[#allocation5] sm:$0xff]   ;;  %v392_v35 = vld [vmem:[#allocation11] ss:$0 sm:$0xff]  ;;  %s677_s6 = smov [#allocation14]  }
  0x82   :  { %420 = vmatprep.subr.bf16.mxu1 %v675_v0  ;;  %424 = vmatprep.mubr.msk.bf16.mxu1 %vm676_vm0, %v675_v0  ;;  %v404_v5 = vunpack.c.l.bf16 %v403_v4  ;;  %v405_v6 = vunpack.c.h.bf16 %v403_v4  ;;  %v446_v25 = vld [vmem:[#allocation8] sm:$0xff]   ;;  %v447_v26 = vld [vmem:[#allocation8 + $0x8] sm:$0xff]   ;;  %v393_v39 = vld [vmem:[#allocation13] ss:$0 sm:$0xff]  ;;  %s357_s12 = sshll.u32 %s677_s6, 4  ;;  %vm349_vm2 = vcmask 257024   ;;  %s358_s12 = int_to_ptr.vmem [resolvable:$true] %s357_s12 }
  0x83   :  { %413 = vmatpush3.bf16.msra.mxu0 %v443_v1  ;;  %421 = vmatpush3.bf16.msra.mxu1 %v446_v25  ;;  %v394_v44 = vld [vmem:[#allocation10] ss:$0 sm:$0xff]  ;;  %s678_s23 = smov [#allocation15]   ;;  %s610_s25 = scalar_lea.vmem %s358_s12, 256 }
  0x84   :  { %414 = vmatprep.subr.bf16.mxu0 %v675_v0  ;;  %422 = vmatprep.subr.bf16.mxu1 %v675_v0  ;;  %s369_s24 = sshll.u32 %s678_s23, 4  ;;  %p611_p0 = scmp.ne.s32.totalorder %s358_s12, %s610_s25  ;;  %s849_s24 = int_to_ptr.vmem [resolvable:$true] %s369_s24 }
  0x85   :  { %p615_p1 = scmp.lt.s32.totalorder %s358_s12, %s358_s12  ;;  %p616_p2 = scmp.lt.s32.totalorder %s610_s25, %s610_s25 }
  0x87   :  { %415 = vmatpush3.bf16.msra.mxu0 %v444_v2  ;;  %423 = vmatpush3.bf16.msra.mxu1 %v447_v26  ;;  %p617_p3 = por %p616_p2, %p615_p1 }
  0x89   :  { %p618_p4 = pnand %p617_p3, %p611_p0 }
  0x8a   :  { %417 = vmatmul.mubr.msk.bf16.vlgmr.msra.gmra.mrb[0].mxu0 %vm149_vm1, %v445_v3 }
 0x15d   :  { %v187_v7 = vpop.f32.mrb[0].mxu0 }
 0x15e   :  { %v188_v8 = vadd.f32 %v404_v5, %v187_v7  ;;  %v418_v9 = vpop.f32.mrb[1].mxu0 }
 0x15f   :  { %v190_v10 = vpop.f32.mrb[2].mxu0 }
 0x160   :  { %v191_v11 = vadd.f32 %v405_v6, %v190_v10  ;;  %v419_v12 = vpop.f32.mrb[3].mxu0  ;;  %v194_v13 = vsel %vm149_vm1, %v188_v8, 0.0 }
 0x161   :  { %195 = vadd.xlane.f32.xlu0 %v194_v13 }
 0x162   :  { %v197_v14 = vsel %vm149_vm1, %v191_v11, 0.0 }
 0x165   :  { %198 = vadd.xlane.f32.xlu0 %v197_v14 }
 0x1ee   :  { %v196_v15 = vpop.xlane.xlu0 %195 }
 0x1ef   :  { %v201_v16 = vmul.f32 0.03125, %v196_v15 }
 0x1f1   :  { %v203_v17 = vsub.f32 %v188_v8, %v201_v16 }
 0x1f2   :  { %v199_v18 = vpop.xlane.xlu0 %198 }
 0x1f3   :  { %v202_v19 = vmul.f32 0.03125, %v199_v18  ;;  %v205_v20 = vmul.f32 %v203_v17, %v203_v17 }
 0x1f5   :  { %v204_v21 = vsub.f32 %v191_v11, %v202_v19  ;;  %v207_v22 = vsel %vm149_vm1, %v205_v20, 0.0 }
 0x1f6   :  { %208 = vadd.xlane.f32.xlu1 %v207_v22 }
 0x1f7   :  { %v206_v23 = vmul.f32 %v204_v21, %v204_v21 }
 0x1f9   :  { %v210_v24 = vsel %vm149_vm1, %v206_v23, 0.0 }
 0x1fa   :  { %211 = vadd.xlane.f32.xlu1 %v210_v24 }
 0x283   :  { %v209_v27 = vpop.xlane.xlu1 %208 }
 0x284   :  { %v213_v28 = vmul.f32 0.03125, %v209_v27 }
 0x286   :  { %v215_v29 = vadd.f32 1e-05, %v213_v28 }
 0x287   :  { %v212_v30 = vpop.xlane.xlu1 %211 }
 0x288   :  { %448 = vrsqrt.f32 %v215_v29  ;;  %v214_v31 = vmul.f32 0.03125, %v212_v30 }
 0x28a   :  { %v216_v32 = vadd.f32 1e-05, %v214_v31 }
 0x28c   :  { %450 = vrsqrt.f32 %v216_v32 }
 0x292   :  { %v449_v33 = vpop.eup %448 }
 0x293   :  { %v219_v34 = vmul.f32 %v449_v33, %v203_v17 }
 0x295   :  { %v227_v38 = vmul.f32 %v392_v35, %v219_v34 }
 0x296   :  { %v451_v36 = vpop.eup %450 }
 0x297   :  { %v220_v37 = vmul.f32 %v451_v36, %v204_v21  ;;  %v235_v41 = vadd.f32 %v393_v39, %v227_v38 }
 0x299   :  { %v228_v40 = vmul.f32 %v392_v35, %v220_v37 }
 0x29b   :  { %v236_v42 = vadd.f32 %v393_v39, %v228_v40 }
 0x29d   :  { %v237_v43 = vpack.c.bf16 %v236_v42, %v235_v41 }
 0x29f   :  { %425 = vmatmul.mubr.msk.bf16.vlgmr.msra.gmra.mrb[0].mxu1 %vm149_vm1, %v237_v43 }
 0x372   :  { %v298_v45 = vpop.f32.mrb[0].mxu1 }
 0x373   :  { %v299_v46 = vadd.f32 %v394_v44, %v298_v45  ;;  %v426_v47 = vpop.f32.mrb[1].mxu1 }
 0x374   :  { %v301_v48 = vpop.f32.mrb[2].mxu1 }
 0x375   :  { %v305_v49 = vmax.f32 %v299_v46, 0.0  ;;  %v302_v50 = vadd.f32 %v394_v44, %v301_v48  ;;  %v427_v51 = vpop.f32.mrb[3].mxu1 }
 0x377   :  { %v306_v52 = vmax.f32 %v302_v50, 0.0  ;;  %v307_v53 = vadd.f32 %v305_v49, %v235_v41 }
 0x379   :  { %v309_v54 = vsel %vm149_vm1, %v307_v53, 0.0  ;;  %v308_v55 = vadd.f32 %v306_v52, %v236_v42 }
 0x37a   :  { %310 = vadd.xlane.f32.xlu0 %v309_v54 }
 0x37b   :  { %v312_v56 = vsel %vm149_vm1, %v308_v55, 0.0 }
 0x37c   :  { %313 = vadd.xlane.f32.xlu1 %v312_v56 }
 0x407   :  { %v311_v57 = vpop.xlane.xlu0 %310 }
 0x408   :  { %v315_v58 = vmul.f32 0.03125, %v311_v57 }
 0x409   :  { %v314_v59 = vpop.xlane.xlu1 %313 }
 0x40a   :  { %v317_v60 = vsub.f32 %v307_v53, %v315_v58  ;;  %v316_v61 = vmul.f32 0.03125, %v314_v59 }
 0x40c   :  { %v318_v62 = vsub.f32 %v308_v55, %v316_v61  ;;  %v319_v63 = vmul.f32 %v317_v60, %v317_v60 }
 0x40e   :  { %v321_v0 = vsel %vm149_vm1, %v319_v63, 0.0  ;;  %v320_v1 = vmul.f32 %v318_v62, %v318_v62 }
 0x40f   :  { %322 = vadd.xlane.f32.xlu0 %v321_v0 }
 0x410   :  { %v324_v2 = vsel %vm149_vm1, %v320_v1, 0.0 }
 0x411   :  { %325 = vadd.xlane.f32.xlu1 %v324_v2 }
 0x49c   :  { %v323_v3 = vpop.xlane.xlu0 %322 }
 0x49d   :  { %v327_v4 = vmul.f32 0.03125, %v323_v3 }
 0x49e   :  { %v326_v5 = vpop.xlane.xlu1 %325 }
 0x49f   :  { %v329_v6 = vadd.f32 1e-05, %v327_v4  ;;  %v328_v7 = vmul.f32 0.03125, %v326_v5 }
 0x4a1   :  { %452 = vrsqrt.f32 %v329_v6  ;;  %v330_v8 = vadd.f32 1e-05, %v328_v7 }
 0x4a3   :  { %454 = vrsqrt.f32 %v330_v8 }
 0x4ab   :  { %v453_v9 = vpop.eup %452 }
 0x4ac   :  { %v333_v10 = vmul.f32 %v453_v9, %v317_v60 }
 0x4ad   :  { %v455_v11 = vpop.eup %454 }
 0x4ae   :  { %v335_v12 = vmul.f32 %v392_v35, %v333_v10  ;;  %v334_v13 = vmul.f32 %v455_v11, %v318_v62 }
 0x4b0   :  { %v336_v14 = vmul.f32 %v392_v35, %v334_v13  ;;  %v337_v15 = vadd.f32 %v393_v39, %v335_v12 }
 0x4b2   :  { %v338_v16 = vadd.f32 %v393_v39, %v336_v14  ;;  %339 = vst.msk [vmem:[#allocation14] sm:$0xff] %vm149_vm1, %v337_v15  ;;  %v400_v17 = vpack.c.bf16 %v337_v15, %v337_v15 }
 0x4b4   :  { %340 = vst.msk [vmem:[#allocation14 + $0x8] sm:$0xff] %vm149_vm1, %v338_v16  ;;  %v401_v18 = vpack.c.bf16 %v338_v16, %v338_v16 }
 0x4b5   :  { %350 = vst.msk [vmem:[#allocation15] sm:$0xf] %vm349_vm2, %v400_v17 }
 0x4b6   :  { %621 = shalt.err (!%p618_p4)
}
 0x4b7   :  { %s622_s29 = scalar_lea.hbm %s891_s7, 256 }
 0x4b8   :  { %p623_p5 = scmp.ne.s32.totalorder %s891_s7, %s622_s29  ;;  %p626_p6 = scmp.lt.u32.totalorder %s622_s29, %s891_s7 }
 0x4ba   :  { %p628_p7 = pnand %p626_p6, %p623_p5 }
 0x4bc   :  { %631 = shalt.err (!%p628_p7)
}
 0x4bd   :  { %s679_s2 = smov 128   ;;  %s680_s10 = smov 8   ;;  %351 = vst.msk [vmem:[#allocation15 + $0x4] sm:$0xf] %vm349_vm2, %v401_v18 }
 0x4be   :  { %363 = dma.vmem_to_hbm [thread:$0]  %s358_s12, 256, %s891_s7, [#allocation4], %s679_s2, %s679_s2, %s680_s10  }
 0x4bf   :  { %s632_s14 = scalar_lea.vmem %s849_s24, 128  ;;  %p637_p9 = scmp.lt.s32.totalorder %s849_s24, %s849_s24 }
 0x4c0   :  { %p633_p8 = scmp.ne.s32.totalorder %s849_s24, %s632_s14  ;;  %p638_p10 = scmp.lt.s32.totalorder %s632_s14, %s632_s14 }
 0x4c2   :  { %p639_p11 = por %p638_p10, %p637_p9 }
 0x4c4   :  { %p640_p12 = pnand %p639_p11, %p633_p8 }
 0x4c6   :  { %643 = shalt.err (!%p640_p12)
}
 0x4c7   :  { %s644_s20 = scalar_lea.hbm %s892_s8, 128 }
 0x4c8   :  { %p645_p13 = scmp.ne.s32.totalorder %s892_s8, %s644_s20  ;;  %p648_p0 = scmp.lt.u32.totalorder %s644_s20, %s892_s8 }
 0x4ca   :  { %p650_p1 = pnand %p648_p0, %p645_p13 }
 0x4cc   :  { %653 = shalt.err (!%p650_p1)
}
 0x4cd   :  { %375 = dma.vmem_to_hbm [thread:$0]  %s849_s24, 128, %s892_s8, [#allocation16], %s668_s17, %s668_s17, %s669_s18  }
 0x4ce   :  { %662 = dma.done.wait [#allocation4], 256  }
 0x4cf   :  { %663 = vsyncadd [#allocation4], 4294967040 }
 0x4d0   :  { %664 = dma.done.wait [#allocation16], 128  }
 0x4d1   :  { %665 = vsyncadd [#allocation16], 4294967168 }
 0x4d2   :  { %382 = vsyncpa [#allocation3], 1 }
 0x4d3   :  { %383 = vsyncpa [#allocation6], 1 }
 0x4d4   :  { %384 = vsyncpa [#allocation9], 1 }
 0x4d5   :  { %385 = vsyncpa [#allocation12], 1 }
 0x4d6   :  { %386 = vsyncpa [#allocation4], 1 }
 0x4d7   :  { %387 = vsyncpa [#allocation16], 1 }

// kernel: model_forward.9
= control target key start
LH: loop header
LB: loop body
LE: loop exit
PB: predicated region body
PF: predicated region fallthrough
CT: control target
= control target key end

     0   :  { %s5268_s0 = inlined_call_operand.hbm [shape: bf16[2,8,3,4,8], index: 0, kind: input, shape index: {}, may-alias: {0,1,2}]   ;;  %s5269_s1 = inlined_call_operand.hbm [shape: bf16[2,8,3,4,8], index: 1, kind: input, shape index: {}, may-alias: {0,1,2}]   ;;  %s5270_s2 = inlined_call_operand.hbm [shape: bf16[2,8,3,4,8], index: 2, kind: input, shape index: {}, may-alias: {0,1,2}]   ;;  %s5271_s3 = inlined_call_operand.hbm [shape: bf16[2,4,8,8], index: 3, kind: input, shape index: {}]   ;;  %s5272_s4 = inlined_call_operand.hbm [shape: f32[2,8,8], index: 4, kind: input, shape index: {}]   ;;  %s5273_s5 = inlined_call_operand.hbm [shape: f32[1,4,8], index: 5, kind: input, shape index: {}]   ;;  %s5274_s6 = inlined_call_operand.hbm [shape: f32[1,4,8], index: 6, kind: input, shape index: {}]   ;;  %s5275_s7 = inlined_call_operand.hbm [shape: f32[1,2,4,8], index: 7, kind: input, shape index: {}]   ;;  %s5276_s8 = inlined_call_operand.hbm [shape: bf16[2,8,32], index: 8, kind: output, shape index: {}]  }
   0x1   :  { %5346 = sst [smem:[#allocation49_spill]] %s5269_s1 }
   0x2   :  { %5347 = sst [smem:[#allocation50_spill]] %s5271_s3 }
   0x3   :  { %5348 = sst [smem:[#allocation51_spill]] %s5273_s5 }
   0x4   :  { %5349 = sst [smem:[#allocation52_spill]] %s5276_s8 }
   0x5   :  { %13 = vsyncpa [#allocation3], 0 }
   0x6   :  { %15 = vsyncpa [#allocation3 + $0x1], 0 }
   0x7   :  { %16 = vsyncpa [#allocation6], 0 }
   0x8   :  { %18 = vsyncpa [#allocation6 + $0x1], 0 }
   0x9   :  { %19 = vsyncpa [#allocation9], 0 }
   0xa   :  { %21 = vsyncpa [#allocation9 + $0x1], 0 }
   0xb   :  { %22 = vsyncpa [#allocation12], 0 }
   0xc   :  { %23 = vsyncpa [#allocation15], 0 }
   0xd   :  { %24 = vsyncpa [#allocation4], 0 }
   0xe   :  { %26 = vsyncpa [#allocation4 + $0x1], 0  ;;  %s4007_s27 = smov 0   ;;  %s4009_s28 = smov 0  }
   0xf   :  { %s4011_s29 = smov 0   ;;  %s4013_s30 = smov 0  }
  0x10   :  { %s4015_s9 = smov 0   ;;  %s4017_s10 = smov 0  }
  0x11 LB: > { %5350 = sst [smem:[#allocation23_spill]] %s3921_s27  ;;  %s4038_s11 = sadd.s32 4294967295, %s3941_s10   ;;  %s3941_s10 = sphi %s4017_s10, %s32_s10   ;;  %s3937_s9 = sphi %s4015_s9, %s5483_s9   ;;  %s3933_s30 = sphi %s4013_s30, %s5482_s30   ;;  %s3929_s29 = sphi %s4011_s29, %s5480_s29   ;;  %s3925_s28 = sphi %s4009_s28, %s5479_s28   ;;  %s3921_s27 = sphi %s4007_s27, %s5478_s27  }
  0x12   : > { %5351 = sst [smem:[#allocation24_spill]] %s3925_s28  ;;  %s3273_s12 = sadd.s32 4294967294, %s3941_s10  }
  0x13   : > { %5352 = sst [smem:[#allocation25_spill]] %s3929_s29  ;;  %p60_p0 = scmp.ne.s32.totalorder %s3929_s29, %s3925_s28 }
  0x14   : > { %5353 = sst [smem:[#allocation26_spill]] %s3933_s30  ;;  %p61_p1 = scmp.eq.s32.totalorder %s3941_s10, 0 }
  0x15   : > { %5354 = sst [smem:[#allocation27_spill]] %s4038_s11  ;;  %p66_p2 = scmp.ne.s32.totalorder %s3925_s28, %s3921_s27 }
  0x16   : > { %p5280_p3 = scmp.eq.s32.totalorder %s4038_s11, 0  ;;  %p280_p4 = scmp.eq.s32.totalorder %s4038_s11, 1 }
  0x17   : > { %p4049_p5 = por %p61_p1, %p60_p0  ;;  %p286_p6 = scmp.eq.s32.totalorder %s3273_s12, 1 }
  0x18   : > { %p4055_p7 = por %p5280_p3, %p66_p2  ;;  %p4059_p8 = por %p280_p4, %p60_p0 }
  0x19   : > { %p4063_p9 = por %p286_p6, %p66_p2  ;;  %p3274_p10 = scmp.ge.s32.totalorder %s3941_s10, 1 }
  0x1a   : > { %s5356_s15 = scalar_select %p4055_p7, 1, 0 }
  0x1b   : > { %s5358_s16 = scalar_select %p4059_p8, 1, 0 }
  0x1c   : > { %5357 = sst [smem:[#allocation28_spill]] %s5356_s15  ;;  %p293_p11 = scmp.lt.s32.totalorder %s3941_s10, 3 }
  0x1d   : > { %5359 = sst [smem:[#allocation29_spill]] %s5358_s16  ;;  %s3943_s19 = smov [#allocation11]  }
  0x1e   : > { %s5360_s17 = scalar_select %p4063_p9, 1, 0 }
  0x1f   : > { %p4070_p13 = pnand %p3274_p10, %p293_p11  ;;  %s308_s20 = sshll.u32 %s3943_s19, 4  ;;  %s309_s20 = int_to_ptr.vmem [resolvable:$true] %s308_s20 }
  0x20   : > { %5361 = sst [smem:[#allocation30_spill]] %s5360_s17  ;;  %p3524_p1 = scmp.lt.s32.totalorder %s3941_s10, 2 }
  0x21   : > { %s5362_s18 = scalar_select %p4070_p13, 1, 0 }
  0x22   : > { %p3491_p0 = pneg %p4070_p13  ;;  %p4079_p4 = pnand %p3524_p1, %p4049_p5 }
  0x23   : > { %s44_s23 = sadd.s32 1, %s3937_s9  ;;  %s4095_s25 = sand.u32 1, %s3929_s29  }
  0x24   : > { %s5363_s21 = scalar_select %p4079_p4, 1, 0 }
  0x25   : > { %p4085_p2 = pnand %p3491_p0, %p5280_p3  ;;  %p4090_p6 = scmp.ge.s32.totalorder %s44_s23, 2 }
  0x26   : > { %s5366_s5 = sld [smem:[#allocation51_spill]] }
  0x27   : > { %s5364_s22 = scalar_select %p4085_p2, 1, 0 }
  0x28   : > { %s5365_s24 = scalar_select %p4090_p6, 1, 0 }
  0x29   : > { %p4105_p10 = pneg %p4085_p2 }
  0x2b   : > { %s5367_s17 = scalar_select %p4105_p10, 1, 0 }
  0x2c   : > { %s3607_s14 = scalar_lea.hbm %s5366_s5, 64 }
  0x2d   : > { %p3608_p5 = scmp.ne.s32.totalorder %s5366_s5, %s3607_s14  ;;  %p3614_p0 = scmp.lt.u32.totalorder %s3607_s14, %s5366_s5 }
  0x2f   : > { %p3610_p11 = pnand %p4105_p10, %p3608_p5 }
  0x31   : > { %p3611_p1 = pneg %p3610_p11 }
  0x33   : > { %p3616_p12 = pnand %p3614_p0, %p3611_p1 }
  0x35   : > { %3619 = shalt.err (!%p3616_p12)
}
  0x36   : > { %s3620_s26 = scalar_lea.vmem %s309_s20, 64  ;;  %p3628_p7 = scmp.lt.s32.totalorder %s309_s20, %s309_s20 }
  0x37   : > { %p3621_p3 = scmp.ne.s32.totalorder %s309_s20, %s3620_s26  ;;  %p3629_p13 = scmp.lt.s32.totalorder %s3620_s26, %s3620_s26 }
  0x39   : > { %p3623_p9 = pnand %p3621_p3, %p4105_p10  ;;  %p3630_p4 = por %p3629_p13, %p3628_p7 }
  0x3b   : > { %p3624_p8 = pneg %p3623_p9 }
  0x3d   : > { %p3631_p6 = pnand %p3630_p4, %p3624_p8 }
  0x3f   : > { %3634 = shalt.err (!%p3631_p6)
}
  0x40   : > { %3494 = dma.hbm_to_vmem [thread:$0]  (!%p4085_p2), %s5366_s5, 64, %s309_s20, [#allocation12]  }
  0x41   : > { %p5368_p3 = scmp.ne.s32.totalorder %s5365_s24, 0  ;;  %s4126_s8 = sshll.u32 %s4095_s25, 4 }
  0x42   : > { %s4129_s27 = smul.u32 768, %s3937_s9  ;;  %s5293_s19 = sand.u32 1, %s3941_s10  }
  0x43   : > { %s5485_s23 = smov (%p5368_p3, %s44_s23), 0  ;;  %s5370_s26 = sadd.s32 1, %s3929_s29 }
  0x44   : > { %5369 = sst [smem:[#allocation31_spill]] %s5485_s23  ;;  %s48_s14 = ssub.s32 %s3937_s9, %s5485_s23 }
  0x45   : > { %p51_p7 = scmp.eq.s32.totalorder %s48_s14, 0  ;;  %s5372_s1 = sld [smem:[#allocation49_spill]] }
  0x46   : > { %s374_s24 = scalar_lea.vmem [#allocation5], %s4126_s8  ;;  %s4150_s23 = scalar_lea.sflag [#allocation6], %s5293_s19 }
  0x47   : > { %s4137_s13 = scalar_select %p51_p7, %s3929_s29, %s5370_s26  }
  0x48   : > { %s383_s5 = sshll.u32 %s374_s24, 4  ;;  %p5373_p9 = scmp.ne.s32.totalorder %s5363_s21, 0  ;;  %s4146_s5 = int_to_ptr.vmem [resolvable:$true] %s383_s5 }
  0x49   : > { %5371 = sst [smem:[#allocation32_spill]] %s4137_s13 }
  0x4a   : > { %p4155_p12 = pneg %p5373_p9 }
  0x4b   : > { %s3112_s20 = scalar_lea.hbm %s5372_s1, %s4129_s27  ;;  %s3640_s24 = scalar_lea.hbm %s5372_s1, 1536 }
  0x4c   : > { %s4144_s30 = scalar_lea.hbm %s3112_s20, 32  ;;  %s3665_s14 = scalar_lea.hbm %s3112_s20, 288 }
  0x4d   : > { %p3636_p8 = scmp.ne.s32.totalorder %s4144_s30, %s3665_s14  ;;  %p3641_p6 = scmp.lt.u32.totalorder %s4144_s30, %s5372_s1 }
  0x4e   : > { %p3642_p5 = scmp.lt.u32.totalorder %s3640_s24, %s3665_s14  ;;  %p3644_p1 = scmp.lt.u32.totalorder %s3665_s14, %s4144_s30 }
  0x4f   : > { %p3638_p13 = pnand %p4155_p12, %p3636_p8 }
  0x50   : > { %p3643_p11 = por %p3642_p5, %p3641_p6 }
  0x51   : > { %p3639_p4 = pneg %p3638_p13 }
  0x52   : > { %p3645_p0 = por %p3644_p1, %p3643_p11 }
  0x54   : > { %p3646_p3 = pnand %p3645_p0, %p3639_p4 }
  0x56   : > { %3649 = shalt.err (!%p3646_p3)
}
  0x57   : > { %s3650_s20 = scalar_lea.vmem %s4146_s5, 256  ;;  %s3944_s16 = smov [#allocation5]  }
  0x58   : > { %p3651_p7 = scmp.ne.s32.totalorder %s4146_s5, %s3650_s20  ;;  %s3655_s12 = sshll.u32 %s3944_s16, 4  ;;  %s3656_s12 = int_to_ptr.vmem [resolvable:$false] %s3655_s12 }
  0x59   : > { %s3657_s29 = scalar_lea.vmem %s3656_s12, 512  ;;  %p3658_p2 = scmp.lt.s32.totalorder %s4146_s5, %s3656_s12 }
  0x5a   : > { %p3653_p8 = pnand %p3651_p7, %p4155_p12  ;;  %p3659_p10 = scmp.lt.s32.totalorder %s3657_s29, %s3650_s20 }
  0x5c   : > { %p3654_p13 = pneg %p3653_p8  ;;  %p3660_p6 = por %p3659_p10, %p3658_p2 }
  0x5e   : > { %p3661_p5 = pnand %p3660_p6, %p3654_p13 }
  0x60   : > { %3664 = shalt.err (!%p3661_p5)
}
  0x61   : > { %s5299_s13 = smov 96   ;;  %s5301_s14 = smov 32  }
  0x62   : > { %s5303_s24 = smov 2   ;;  %s3398_s20 = sshll.u32 %s3937_s9, 8 }
  0x63   : > { %3507 = dma.hbm_to_vmem [thread:$0]  (!%p5373_p9), %s4144_s30, 256, %s4146_s5, %s4150_s23, %s5299_s13, %s5301_s14, %s5303_s24  }
  0x64   : > { %s420_s16 = scalar_lea.vmem [#allocation8], %s4126_s8  ;;  %s5375_s3 = sld [smem:[#allocation50_spill]] }
  0x65   : > { %s429_s12 = sshll.u32 %s420_s16, 4  ;;  %s5376_s11 = sand.u32 1, %s3941_s10   ;;  %s4189_s12 = int_to_ptr.vmem [resolvable:$true] %s429_s12 }
  0x66   : > { %s4193_s15 = scalar_lea.sflag [#allocation9], %s5376_s11 }
  0x6a   : > { %s4187_s1 = scalar_lea.hbm %s5375_s3, %s3398_s20  ;;  %s3671_s19 = scalar_lea.hbm %s5375_s3, 512 }
  0x6b   : > { %s3666_s28 = scalar_lea.hbm %s4187_s1, 256  ;;  %p3672_p11 = scmp.lt.u32.totalorder %s4187_s1, %s5375_s3 }
  0x6c   : > { %p3667_p2 = scmp.ne.s32.totalorder %s4187_s1, %s3666_s28  ;;  %p3673_p1 = scmp.lt.u32.totalorder %s3671_s19, %s3666_s28 }
  0x6d   : > { %p3675_p3 = scmp.lt.u32.totalorder %s3666_s28, %s4187_s1 }
  0x6e   : > { %p3669_p10 = pnand %p3667_p2, %p4155_p12  ;;  %p3674_p0 = por %p3673_p1, %p3672_p11 }
  0x70   : > { %p3670_p4 = pneg %p3669_p10  ;;  %p3676_p7 = por %p3675_p3, %p3674_p0 }
  0x72   : > { %p3677_p8 = pnand %p3676_p7, %p3670_p4 }
  0x74   : > { %3680 = shalt.err (!%p3677_p8)
}
  0x75   : > { %s3681_s11 = scalar_lea.vmem %s4189_s12, 256  ;;  %s3948_s29 = smov [#allocation8]  }
  0x76   : > { %p3682_p13 = scmp.ne.s32.totalorder %s4189_s12, %s3681_s11  ;;  %s3686_s5 = sshll.u32 %s3948_s29, 4  ;;  %s3687_s5 = int_to_ptr.vmem [resolvable:$false] %s3686_s5 }
  0x77   : > { %s3688_s30 = scalar_lea.vmem %s3687_s5, 512  ;;  %p3689_p2 = scmp.lt.s32.totalorder %s4189_s12, %s3687_s5 }
  0x78   : > { %p3684_p6 = pnand %p3682_p13, %p4155_p12  ;;  %p3690_p10 = scmp.lt.s32.totalorder %s3688_s30, %s3681_s11 }
  0x7a   : > { %p3685_p5 = pneg %p3684_p6  ;;  %p3691_p11 = por %p3690_p10, %p3689_p2 }
  0x7c   : > { %p3692_p1 = pnand %p3691_p11, %p3685_p5 }
  0x7e   : > { %3695 = shalt.err (!%p3692_p1)
}
  0x7f   : > { %s3949_s28 = smov 64   ;;  %s3950_s19 = smov 4  }
  0x80   : > { %3513 = dma.hbm_to_vmem [thread:$0]  (!%p5373_p9), %s4187_s1, 256, %s4189_s12, %s4193_s15, %s3949_s28, %s3949_s28, %s3950_s19  }
  0x81   : > { %s3951_s20 = smov [#allocation13]   ;;  %s3952_s29 = smov [#allocation14]  }
  0x82   : > { %s321_s16 = sshll.u32 %s3951_s20, 4  ;;  %s334_s5 = sshll.u32 %s3952_s29, 4  ;;  %s322_s16 = int_to_ptr.vmem [resolvable:$true] %s321_s16  ;;  %s4220_s5 = int_to_ptr.vmem [resolvable:$true] %s334_s5 }
  0x83   : > { %s3696_s13 = scalar_lea.hbm %s5274_s6, 64  ;;  %p5377_p0 = scmp.ne.s32.totalorder %s5367_s17, 0 }
  0x84   : > { %p3697_p4 = scmp.ne.s32.totalorder %s5274_s6, %s3696_s13  ;;  %p3703_p8 = scmp.lt.u32.totalorder %s3696_s13, %s5274_s6 }
  0x86   : > { %p3699_p3 = pnand %p3697_p4, %p5377_p0 }
  0x88   : > { %p3700_p7 = pneg %p3699_p3 }
  0x8a   : > { %p3705_p13 = pnand %p3703_p8, %p3700_p7 }
  0x8c   : > { %3708 = shalt.err (!%p3705_p13)
}
  0x8d   : > { %s3709_s12 = scalar_lea.vmem %s322_s16, 64  ;;  %p3717_p10 = scmp.lt.s32.totalorder %s322_s16, %s322_s16 }
  0x8e   : > { %p3710_p6 = scmp.ne.s32.totalorder %s322_s16, %s3709_s12  ;;  %p3718_p11 = scmp.lt.s32.totalorder %s3709_s12, %s3709_s12 }
  0x90   : > { %p3712_p5 = pnand %p3710_p6, %p5377_p0  ;;  %p3719_p1 = por %p3718_p11, %p3717_p10 }
  0x92   : > { %p3713_p2 = pneg %p3712_p5 }
  0x94   : > { %p3720_p9 = pnand %p3719_p1, %p3713_p2 }
  0x96   : > { %3723 = shalt.err (!%p3720_p9)
}
  0x97   : > { %p5378_p4 = scmp.ne.s32.totalorder %s5364_s22, 0  ;;  %s3724_s20 = scalar_lea.hbm %s5275_s7, 128 }
  0x98   : > { %p3725_p3 = scmp.ne.s32.totalorder %s5275_s7, %s3724_s20  ;;  %p3731_p9 = scmp.lt.u32.totalorder %s3724_s20, %s5275_s7 }
  0x99   : > { %3497 = dma.hbm_to_vmem [thread:$0]  (!%p5378_p4), %s5274_s6, 64, %s322_s16, [#allocation12]  }
  0x9a   : > { %p3727_p7 = pnand %p3725_p3, %p5377_p0 }
  0x9c   : > { %p3728_p8 = pneg %p3727_p7 }
  0x9e   : > { %p3733_p13 = pnand %p3731_p9, %p3728_p8 }
  0xa0   : > { %3736 = shalt.err (!%p3733_p13)
}
  0xa1   : > { %s3737_s16 = scalar_lea.vmem %s4220_s5, 128  ;;  %p3745_p10 = scmp.lt.s32.totalorder %s4220_s5, %s4220_s5 }
  0xa2   : > { %p3738_p6 = scmp.ne.s32.totalorder %s4220_s5, %s3737_s16  ;;  %p3746_p11 = scmp.lt.s32.totalorder %s3737_s16, %s3737_s16 }
  0xa4   : > { %p3740_p5 = pnand %p3738_p6, %p5377_p0  ;;  %p3747_p1 = por %p3746_p11, %p3745_p10 }
  0xa6   : > { %p3741_p2 = pneg %p3740_p5 }
  0xa8   : > { %p3748_p3 = pnand %p3747_p1, %p3741_p2 }
  0xaa   : > { %3751 = shalt.err (!%p3748_p3)
}
  0xab   : > { %3500 = dma.hbm_to_vmem [thread:$0]  (!%p5378_p4), %s5275_s7, 128, %s4220_s5, [#allocation15], %s3949_s28, %s3949_s28, %s3950_s19  }
  0xac   : > { %s4270_s3 = scalar_lea.hbm %s5268_s0, %s4129_s27  ;;  %s352_s22 = scalar_lea.vmem [#allocation2], %s4126_s8 }
  0xad   : > { %s360_s13 = sshll.u32 %s352_s22, 4  ;;  %s349_s20 = scalar_lea.sflag [#allocation3], %s4095_s25  ;;  %s4273_s13 = int_to_ptr.vmem [resolvable:$true] %s360_s13 }
  0xae   : > { %s3752_s29 = scalar_lea.hbm %s4270_s3, 256  ;;  %s3757_s5 = scalar_lea.hbm %s5268_s0, 1536 }
  0xaf   : > { %p3753_p0 = scmp.ne.s32.totalorder %s4270_s3, %s3752_s29  ;;  %p3758_p4 = scmp.lt.u32.totalorder %s4270_s3, %s5268_s0 }
  0xb0   : > { %p3759_p9 = scmp.lt.u32.totalorder %s3757_s5, %s3752_s29  ;;  %p3761_p6 = scmp.lt.u32.totalorder %s3752_s29, %s4270_s3 }
  0xb1   : > { %p3755_p7 = pnand %p3753_p0, %p4155_p12 }
  0xb2   : > { %p3760_p13 = por %p3759_p9, %p3758_p4 }
  0xb3   : > { %p3756_p8 = pneg %p3755_p7 }
  0xb4   : > { %p3762_p5 = por %p3761_p6, %p3760_p13 }
  0xb6   : > { %p3763_p2 = pnand %p3762_p5, %p3756_p8 }
  0xb8   : > { %3766 = shalt.err (!%p3763_p2)
}
  0xb9   : > { %s3767_s1 = scalar_lea.vmem %s4273_s13, 256  ;;  %s3953_s16 = smov [#allocation2]  }
  0xba   : > { %p3768_p10 = scmp.ne.s32.totalorder %s4273_s13, %s3767_s1  ;;  %s3772_s12 = sshll.u32 %s3953_s16, 4  ;;  %s3773_s12 = int_to_ptr.vmem [resolvable:$false] %s3772_s12 }
  0xbb   : > { %s3774_s14 = scalar_lea.vmem %s3773_s12, 512  ;;  %p3775_p3 = scmp.lt.s32.totalorder %s4273_s13, %s3773_s12 }
  0xbc   : > { %p3770_p11 = pnand %p3768_p10, %p4155_p12  ;;  %p3776_p0 = scmp.lt.s32.totalorder %s3774_s14, %s3767_s1 }
  0xbe   : > { %p3771_p1 = pneg %p3770_p11  ;;  %p3777_p7 = por %p3776_p0, %p3775_p3 }
  0xc0   : > { %p3778_p4 = pnand %p3777_p7, %p3771_p1 }
  0xc2   : > { %3781 = shalt.err (!%p3778_p4)
}
  0xc3   : > { %p5379_p8 = scmp.ne.s32.totalorder %s5363_s21, 0  ;;  %s5380_s17 = smov 2  }
  0xc4   : > { %s5381_s24 = smov 32   ;;  %s5382_s22 = smov 96  }
  0xc5   : > { %3504 = dma.hbm_to_vmem [thread:$0]  (!%p5379_p8), %s4270_s3, 256, %s4273_s13, %s349_s20, %s5382_s22, %s5381_s24, %s5380_s17  }
  0xc6   : > { %s3120_s19 = scalar_lea.hbm %s5270_s2, %s4129_s27  ;;  %s397_s5 = scalar_lea.vmem [#allocation7], %s4126_s8 }
  0xc7   : > { %s406_s11 = sshll.u32 %s397_s5, 4  ;;  %s4307_s30 = scalar_lea.hbm %s3120_s19, 64  ;;  %s4309_s11 = int_to_ptr.vmem [resolvable:$true] %s406_s11 }
  0xc8   : > { %s3812_s1 = scalar_lea.hbm %s3120_s19, 320  ;;  %s3787_s13 = scalar_lea.hbm %s5270_s2, 1536 }
  0xc9   : > { %p3783_p9 = scmp.ne.s32.totalorder %s4307_s30, %s3812_s1  ;;  %p3788_p5 = scmp.lt.u32.totalorder %s4307_s30, %s5270_s2 }
  0xca   : > { %p3789_p2 = scmp.lt.u32.totalorder %s3787_s13, %s3812_s1  ;;  %p3791_p11 = scmp.lt.u32.totalorder %s3812_s1, %s4307_s30 }
  0xcb   : > { %p3785_p13 = pnand %p3783_p9, %p4155_p12 }
  0xcc   : > { %p3790_p10 = por %p3789_p2, %p3788_p5 }
  0xcd   : > { %p3786_p6 = pneg %p3785_p13 }
  0xce   : > { %p3792_p1 = por %p3791_p11, %p3790_p10 }
  0xd0   : > { %p3793_p3 = pnand %p3792_p1, %p3786_p6 }
  0xd2   : > { %3796 = shalt.err (!%p3793_p3)
}
  0xd3   : > { %s3797_s8 = scalar_lea.vmem %s4309_s11, 256  ;;  %s3954_s12 = smov [#allocation7]  }
  0xd4   : > { %p3798_p0 = scmp.ne.s32.totalorder %s4309_s11, %s3797_s8  ;;  %s3802_s14 = sshll.u32 %s3954_s12, 4  ;;  %s3803_s14 = int_to_ptr.vmem [resolvable:$false] %s3802_s14 }
  0xd5   : > { %s3804_s29 = scalar_lea.vmem %s3803_s14, 512  ;;  %p3805_p9 = scmp.lt.s32.totalorder %s4309_s11, %s3803_s14 }
  0xd6   : > { %p3800_p7 = pnand %p3798_p0, %p4155_p12  ;;  %p3806_p13 = scmp.lt.s32.totalorder %s3804_s29, %s3797_s8 }
  0xd8   : > { %p3801_p4 = pneg %p3800_p7  ;;  %p3807_p5 = por %p3806_p13, %p3805_p9 }
  0xda   : > { %p3808_p2 = pnand %p3807_p5, %p3801_p4 }
  0xdc   : > { %3811 = shalt.err (!%p3808_p2)
}
  0xdd   : > { %3510 = dma.hbm_to_vmem [thread:$0]  (!%p5379_p8), %s4307_s30, 256, %s4309_s11, %s4150_s23, %s5382_s22, %s5381_s24, %s5380_s17  }
  0xde   : > { %s3288_s28 = sshll.u32 %s4095_s25, 3  ;;  %s3289_s19 = sshll.u32 %s3937_s9, 7 }
  0xdf   : > { %s4340_s16 = scalar_lea.hbm %s5272_s4, %s3289_s19  ;;  %s443_s3 = scalar_lea.vmem [#allocation10], %s3288_s28 }
  0xe0   : > { %s450_s13 = sshll.u32 %s443_s3, 4  ;;  %s3813_s20 = scalar_lea.hbm %s4340_s16, 128  ;;  %s451_s13 = int_to_ptr.vmem [resolvable:$true] %s450_s13 }
  0xe1   : > { %p3814_p6 = scmp.ne.s32.totalorder %s4340_s16, %s3813_s20  ;;  %s3818_s17 = scalar_lea.hbm %s5272_s4, 256 }
  0xe2   : > { %p3819_p1 = scmp.lt.u32.totalorder %s4340_s16, %s5272_s4  ;;  %p3820_p3 = scmp.lt.u32.totalorder %s3818_s17, %s3813_s20 }
  0xe3   : > { %p3816_p10 = pnand %p3814_p6, %p4155_p12  ;;  %p3822_p7 = scmp.lt.u32.totalorder %s3813_s20, %s4340_s16 }
  0xe4   : > { %p3821_p0 = por %p3820_p3, %p3819_p1 }
  0xe5   : > { %p3817_p11 = pneg %p3816_p10 }
  0xe6   : > { %p3823_p4 = por %p3822_p7, %p3821_p0 }
  0xe8   : > { %p3824_p9 = pnand %p3823_p4, %p3817_p11 }
  0xea   : > { %3827 = shalt.err (!%p3824_p9)
}
  0xeb   : > { %s3828_s11 = scalar_lea.vmem %s451_s13, 128  ;;  %s3955_s30 = smov [#allocation10]  }
  0xec   : > { %p3829_p13 = scmp.ne.s32.totalorder %s451_s13, %s3828_s11  ;;  %s3833_s27 = sshll.u32 %s3955_s30, 4  ;;  %s3834_s27 = int_to_ptr.vmem [resolvable:$false] %s3833_s27 }
  0xed   : > { %s3835_s8 = scalar_lea.vmem %s3834_s27, 256  ;;  %p3836_p6 = scmp.lt.s32.totalorder %s451_s13, %s3834_s27 }
  0xee   : > { %p3831_p5 = pnand %p3829_p13, %p4155_p12  ;;  %p3837_p10 = scmp.lt.s32.totalorder %s3835_s8, %s3828_s11 }
  0xf0   : > { %p3832_p2 = pneg %p3831_p5  ;;  %p3838_p8 = por %p3837_p10, %p3836_p6 }
  0xf2   : > { %p3839_p1 = pnand %p3838_p8, %p3832_p2 }
  0xf4   : > { %3842 = shalt.err (!%p3839_p1)
}
  0xf5   : > { %p5383_p3 = scmp.ne.s32.totalorder %s5363_s21, 0  ;;  %p5384_p11 = scmp.ne.s32.totalorder %s5362_s18, 0 }
  0xf7   : > { %3516 = dma.hbm_to_vmem [thread:$0]  (!%p5383_p3), %s4340_s16, 128, %s451_s13, %s4193_s15  }
  0xf8   : > { %459 = sbr.rel (%p5384_p11) target bundleno = 1751 (0x6d7), region = 52 }
  0xff   : > { %s5385_s26 = sld [smem:[#allocation24_spill]]  ;;  %s5386_s12 = sld [smem:[#allocation28_spill]] }
 0x105   : > { %s4363_s14 = sand.u32 1, %s5385_s26   ;;  %p5387_p12 = scmp.ne.s32.totalorder %s5386_s12, 0 }
 0x106   : > { %s3291_s29 = sshll.u32 %s4363_s14, 4  ;;  %s462_s28 = scalar_lea.sflag [#allocation3], %s4363_s14 }
 0x107   : > { %s4367_s19 = scalar_lea.vmem [#allocation2], %s3291_s29 }
 0x108   : > { %3896 = dma.done.wait (%p5387_p12), %s462_s28, 256  }
 0x109   : > { %3898 = vsyncadd (%p5387_p12), %s462_s28, 4294967040  ;;  %s5388_s21 = sld [smem:[#allocation27_spill]]  ;;  %s4374_s5 = scalar_lea.vmem [#allocation5], %s3291_s29 }
 0x10f   : > { %s470_s15 = sand.u32 1, %s5388_s21  }
 0x110   : > { %s471_s18 = scalar_lea.sflag [#allocation6], %s470_s15 }
 0x111   : > { %3900 = dma.done.wait (%p5387_p12), %s471_s18, 512  }
 0x112   : > { %3902 = vsyncadd (%p5387_p12), %s471_s18, 4294966784  ;;  %s4380_s1 = scalar_lea.vmem [#allocation7], %s3291_s29  ;;  %s489_s16 = scalar_lea.sflag [#allocation9], %s470_s15 }
 0x113   : > { %s4382_s3 = scalar_lea.vmem [#allocation8], %s3291_s29 }
 0x114   : > { %3904 = dma.done.wait (%p5387_p12), %s489_s16, 384  }
 0x115   : > { %3906 = vsyncadd (%p5387_p12), %s489_s16, 4294966912  ;;  %s3295_s13 = sshll.u32 %s4363_s14, 3  ;;  %p5389_p8 = scmp.eq.s32.totalorder %s5388_s21, 0 }
 0x116   : > { %s4389_s20 = scalar_lea.vmem [#allocation10], %s3295_s13 }
 0x117   : > { %3908 = dma.done.wait (%p5389_p8), [#allocation12], 128   ;;  %p5390_p0 = pmov %p5389_p8 }
 0x119   : > { %3910 = vsyncadd (%p5390_p0), [#allocation12], 4294967168  ;;  %p5391_p7 = pmov %p5390_p0 }
 0x11a   : > { %p5392_p4 = pmov %p5390_p0 }
 0x11b   : > { %3912 = dma.done.wait (%p5391_p7), [#allocation15], 128  }
 0x11c   : > { %3914 = vsyncadd (%p5392_p4), [#allocation15], 4294967168  ;;  %v5307_v0 = vmov 0.0   ;;  %v722_v1 = vlaneseq  ;;  %vm3957_vm0 = vmmov 0   ;;  %vm754_vm1 = vcmask 1041409   ;;  %s3299_s23 = sshll.u32 %s4363_s14, 2 }
 0x11d   : > { %3418 = vmatprep.subr.bf16.mxu0 %v5307_v0  ;;  %3424 = vmatprep.subr.bf16.mxu1 %v5307_v0  ;;  %vm756_vm2 = vcmask 1042434   ;;  %vm758_vm3 = vcmask 1043459   ;;  %vm760_vm4 = vcmask 1044484   ;;  %vm762_vm5 = vcmask 1045509   ;;  %v4411_v4 = vld [vmem:[%s4367_s19] sm:$0x1] }
 0x11e   : > { %3420 = vmatprep.mubr.msk.bf16.mxu0 %vm3957_vm0, %v5307_v0  ;;  %3426 = vmatprep.mubr.msk.bf16.mxu1 %vm3957_vm0, %v5307_v0  ;;  %v4405_v2 = vshrl.u32 %v722_v1, 7  ;;  %v4408_v3 = vld.sshfl [vmem:[%s4374_s5] sm:$0x1 pattern:$0x76325410]  ;;  %vm764_vm6 = vcmask 1046534   ;;  %v577_v20 = vunpack.c.l.bf16 %v4411_v4 }
 0x11f   : > { %v4414_v5 = vld.sshfl [vmem:[%s4374_s5 + $0x2] sm:$0x1 pattern:$0x76325410]  ;;  %vm766_vm7 = vcmask 1047559   ;;  %v952_v8 = vunpack.c.l.b16 %v4408_v3  ;;  %vm769_vm8 = vcmask 64512  }
 0x120   : > { %v4417_v6 = vld [vmem:[%s4367_s19 + $0x2] sm:$0x1]  ;;  %v4420_v7 = vld.sshfl [vmem:[%s4374_s5 + $0x4] sm:$0x1 pattern:$0x76325410]  ;;  %v953_v9 = vunpack.c.l.b16 %v4414_v5 }
 0x121   : > { %v4425_v10 = vld [vmem:[%s4367_s19 + $0x4] sm:$0x1]  ;;  %v4428_v11 = vld.sshfl [vmem:[%s4374_s5 + $0x6] sm:$0x1 pattern:$0x76325410]  ;;  %v954_v12 = vunpack.c.l.b16 %v4420_v7  ;;  %v578_v26 = vunpack.c.l.bf16 %v4417_v6 }
 0x122   : > { %v4432_v13 = vld [vmem:[%s4367_s19 + $0x6] sm:$0x1]  ;;  %v4435_v14 = vld.sshfl [vmem:[%s4374_s5 + $0x8] sm:$0x1 pattern:$0x76325410]  ;;  %v955_v15 = vunpack.c.l.b16 %v4428_v11  ;;  %v579_v31 = vunpack.c.l.bf16 %v4425_v10 }
 0x123   : > { %v960_v16 = vrot.slane %v953_v9, 7  ;;  %v4441_v17 = vld.sshfl [vmem:[%s4374_s5 + $0xa] sm:$0x1 pattern:$0x76325410]  ;;  %v956_v18 = vunpack.c.l.b16 %v4435_v14  ;;  %v962_v19 = vrot.slane %v954_v12, 6  ;;  %v580_v37 = vunpack.c.l.bf16 %v4432_v13 }
 0x124   : > { %v4448_v21 = vsub.s32 0, %v4405_v2  ;;  %v4451_v22 = vld.sshfl [vmem:[%s4374_s5 + $0xc] sm:$0x1 pattern:$0x76325410]  ;;  %v957_v23 = vunpack.c.l.b16 %v4441_v17  ;;  %v964_v25 = vrot.slane %v955_v15, 5 }
 0x125   : > { %v961_v24 = vsel %vm754_vm1, %v960_v16, %v952_v8  ;;  %v4461_v27 = vld.sshfl [vmem:[%s4374_s5 + $0xe] sm:$0x1 pattern:$0x76325410]  ;;  %v958_v28 = vunpack.c.l.b16 %v4451_v22  ;;  %v966_v30 = vrot.slane %v956_v18, 4  ;;  %vm1124_vm9 = vcmask 1043456  }
 0x126   : > { %v963_v29 = vsel %vm756_vm2, %v962_v19, %v961_v24  ;;  %v959_v32 = vunpack.c.l.b16 %v4461_v27  ;;  %v968_v34 = vrot.slane %v957_v23, 3  ;;  %v573_v35 = vld [vmem:[%s4367_s19 + $0x8] sm:$0x1]  ;;  %v4474_v36 = vld [vmem:[%s4367_s19 + $0xa] sm:$0x1]  ;;  %vm1363_vm10 = vcmask 64513  }
 0x127   : > { %v965_v33 = vsel %vm758_vm3, %v964_v25, %v963_v29  ;;  %v970_v39 = vrot.slane %v958_v28, 2  ;;  %v4481_v40 = vld [vmem:[%s4367_s19 + $0xc] sm:$0x1]  ;;  %v4484_v41 = vld [vmem:[%s4367_s19 + $0xe] sm:$0x1]  ;;  %v581_v42 = vunpack.c.l.bf16 %v573_v35  ;;  %v582_v43 = vunpack.c.l.bf16 %v4474_v36  ;;  %s5136_s25 = scalar_lea.vmem [#allocation16], %s3299_s23 }
 0x128   : > { %v967_v38 = vsel %vm760_vm4, %v966_v30, %v965_v33  ;;  %v972_v45 = vrot.slane %v959_v32, 1  ;;  %v583_v46 = vunpack.c.l.bf16 %v4481_v40  ;;  %v584_v47 = vunpack.c.l.bf16 %v4484_v41  ;;  %v3300_v48 = vld [vmem:[#allocation11] ss:$0 sm:$0xff]  ;;  %v4493_v53 = vld [vmem:[#allocation13] ss:$0 sm:$0xff]  ;;  %s3958_s17 = smov 8  }
 0x129   : > { %v969_v44 = vsel %vm762_vm5, %v968_v34, %v967_v38  ;;  %v611_v50 = vcombine.high %v3300_v48, %v3300_v48  ;;  %v612_v51 = vrot.slane %v3300_v48, 1  ;;  %v613_v52 = vrot.slane %v3300_v48, 2  ;;  %v4668_v3 = vld.sshfl [vmem:[%s4374_s5] sm:$0x2 pattern:$0x76325410] }
 0x12a   : > { %v971_v49 = vsel %vm764_vm6, %v970_v39, %v969_v44  ;;  %v614_v55 = vrot.slane %v3300_v48, 3  ;;  %v626_v56 = vadd.f32 %v3300_v48, %v577_v20  ;;  %v4498_v57 = vcombine.high %v4493_v53, %v4493_v53  ;;  %v4682_v11 = vld [vmem:[%s4367_s19 + $0x2] sm:$0x2]  ;;  %s3959_s24 = smov 16   ;;  %s5469_s22 = sld [smem:[#allocation26_spill]] }
 0x12b   : > { %v973_v54 = vsel %vm766_vm7, %v972_v45, %v971_v49  ;;  %v615_v59 = vrot.slane %v611_v50, 1  ;;  %v616_v60 = vrot.slane %v611_v50, 2  ;;  %v617_v61 = vrot.slane %v611_v50, 3  ;;  %s3960_s11 = smov 24   ;;  %s5470_s30 = sld [smem:[#allocation29_spill]] }
 0x12c   : > { %v974_v58 = vpack.c.b16 %v973_v54, %v973_v54  ;;  %v627_v62 = vadd.f32 %v612_v51, %v578_v26  ;;  %v628_v63 = vadd.f32 %v613_v52, %v579_v31  ;;  %v629_v1 = vadd.f32 %v614_v55, %v580_v37  ;;  %s3061_s8 = sshll.u32 %s5136_s25, 4  ;;  %s5471_s29 = sld [smem:[#allocation52_spill]]  ;;  %s5220_s8 = int_to_ptr.vmem [resolvable:$true] %s3061_s8 }
 0x12d   : > { %v630_v4 = vadd.f32 %v611_v50, %v581_v42  ;;  %v631_v19 = vadd.f32 %v615_v59, %v582_v43  ;;  %v632_v24 = vadd.f32 %v616_v60, %v583_v46  ;;  %v633_v25 = vadd.f32 %v617_v61, %v584_v47  ;;  %s3047_s21 = scalar_lea.sflag [#allocation4], %s4363_s14  ;;  %s3843_s15 = scalar_lea.vmem %s5220_s8, 64 }
 0x12e   : > { %v979_v16 = vsel %vm769_vm8, %v974_v58, 0  ;;  %v634_v29 = vmul.f32 0.35355338, %v626_v56  ;;  %v635_v30 = vmul.f32 0.35355338, %v627_v62  ;;  %v670_v34 = vadd.f32 %v4493_v53, %v577_v20  ;;  %p3844_p9 = scmp.ne.s32.totalorder %s5220_s8, %s3843_s15  ;;  %s3961_s18 = smov [#allocation16]  }
 0x12f   : > { %3419 = vmatpush3.bf16.xpose.msra.mxu0 %v979_v16  ;;  %v636_v33 = vmul.f32 0.35355338, %v628_v63  ;;  %v637_v35 = vmul.f32 0.35355338, %v629_v1  ;;  %v638_v38 = vmul.f32 0.35355338, %v630_v4  ;;  %v674_v44 = vadd.f32 %v4498_v57, %v581_v42 }
 0x130   : > { %v639_v39 = vmul.f32 0.35355338, %v631_v19  ;;  %3436 = vmatprep.subr.bf16.mxu0 %v5307_v0  ;;  %v640_v45 = vmul.f32 0.35355338, %v632_v24  ;;  %v641_v48 = vmul.f32 0.35355338, %v633_v25  ;;  %v642_v49 = vpack.c.bf16 %v634_v29, %v634_v29 }
 0x131   : > { %v643_v50 = vpack.c.bf16 %v635_v30, %v635_v30  ;;  %v644_v51 = vpack.c.bf16 %v636_v33, %v636_v33  ;;  %v645_v52 = vpack.c.bf16 %v637_v35, %v637_v35  ;;  %v646_v54 = vpack.c.bf16 %v638_v38, %v638_v38  ;;  %s3395_s27 = sshll.u32 %s5469_s22, 6  ;;  %p5473_p13 = scmp.ne.s32.totalorder %s5470_s30, 0 }
 0x132   : > { %v647_v55 = vpack.c.bf16 %v639_v39, %v639_v39  ;;  %v648_v56 = vpack.c.bf16 %v640_v45, %v640_v45  ;;  %v649_v58 = vpack.c.bf16 %v641_v48, %v641_v48  ;;  %v865_v59 = vunpack.c.l.b16 %v642_v49  ;;  %s5218_s28 = scalar_lea.hbm %s5471_s29, %s3395_s27 }
 0x133   : > { %v866_v60 = vunpack.c.l.b16 %v643_v50  ;;  %v867_v20 = vunpack.c.l.b16 %v644_v51  ;;  %v868_v61 = vunpack.c.l.b16 %v645_v52  ;;  %v869_v62 = vunpack.c.l.b16 %v646_v54  ;;  %p3845_p5 = pnand %p3844_p9, %p5473_p13 }
 0x134   : > { %v870_v63 = vunpack.c.l.b16 %v647_v55  ;;  %v871_v1 = vunpack.c.l.b16 %v648_v56  ;;  %v872_v42 = vunpack.c.l.b16 %v649_v58  ;;  %v656_v16 = vrot.slane %v4493_v53, 1  ;;  %v3302_v56 = vld [vmem:[#allocation14] ss:$0 sm:$0xff] }
 0x135   : > { %v873_v4 = vrot.slane %v866_v60, 7  ;;  %v875_v19 = vrot.slane %v867_v20, 6  ;;  %v877_v24 = vrot.slane %v868_v61, 5  ;;  %v879_v25 = vrot.slane %v869_v62, 4  ;;  %p3846_p2 = pneg %p3845_p5 }
 0x136   : > { %v881_v29 = vrot.slane %v870_v63, 3  ;;  %v883_v33 = vrot.slane %v871_v1, 2  ;;  %v885_v35 = vrot.slane %v872_v42, 1  ;;  %v657_v38 = vrot.slane %v4493_v53, 2 }
 0x137   : > { %v874_v30 = vsel %vm754_vm1, %v873_v4, %v865_v59  ;;  %v658_v45 = vrot.slane %v4493_v53, 3  ;;  %v659_v48 = vrot.slane %v4498_v57, 1  ;;  %v660_v49 = vrot.slane %v4498_v57, 2 }
 0x138   : > { %v876_v39 = vsel %vm756_vm2, %v875_v19, %v874_v30  ;;  %v661_v51 = vrot.slane %v4498_v57, 3  ;;  %v671_v52 = vadd.f32 %v656_v16, %v578_v26  ;;  %v672_v54 = vadd.f32 %v657_v38, %v579_v31  ;;  %v3303_v31 = vld [vmem:[#allocation14 + $0x4] ss:$0 sm:$0xff] }
 0x139   : > { %v878_v50 = vsel %vm758_vm3, %v877_v24, %v876_v39  ;;  %v673_v53 = vadd.f32 %v658_v45, %v580_v37  ;;  %v675_v58 = vadd.f32 %v659_v48, %v582_v43  ;;  %v676_v59 = vadd.f32 %v660_v49, %v583_v46 }
 0x13a   : > { %v880_v55 = vsel %vm760_vm4, %v879_v25, %v878_v50  ;;  %v677_v6 = vadd.f32 %v661_v51, %v584_v47  ;;  %v678_v26 = vmul.f32 0.35355338, %v670_v34  ;;  %v679_v10 = vmul.f32 0.35355338, %v671_v52 }
 0x13b   : > { %v882_v57 = vsel %vm762_vm5, %v881_v29, %v880_v55  ;;  %v680_v20 = vmul.f32 0.35355338, %v672_v54  ;;  %v681_v61 = vmul.f32 0.35355338, %v673_v53  ;;  %v682_v13 = vmul.f32 0.35355338, %v674_v44 }
 0x13c   : > { %v884_v60 = vsel %vm764_vm6, %v883_v33, %v882_v57  ;;  %v683_v36 = vmul.f32 0.35355338, %v675_v58  ;;  %v684_v43 = vmul.f32 0.35355338, %v676_v59  ;;  %v685_v62 = vmul.f32 0.35355338, %v677_v6 }
 0x13d   : > { %v886_v37 = vsel %vm766_vm7, %v885_v35, %v884_v60  ;;  %v691_v46 = vcombine.high %v3302_v56, %v3302_v56  ;;  %v692_v63 = vrot.slane %v3302_v56, 1  ;;  %v693_v1 = vrot.slane %v3302_v56, 2 }
 0x13e   : > { %v887_v40 = vpack.c.b16 %v886_v37, %v886_v37  ;;  %v694_v42 = vrot.slane %v3302_v56, 3  ;;  %v706_v41 = vmul.f32 %v3302_v56, %v678_v26  ;;  %v778_v47 = vcombine.high %v3303_v31, %v3303_v31 }
 0x13f   : > { %v779_v34 = vrot.slane %v3303_v31, 1  ;;  %v695_v4 = vrot.slane %v691_v46, 1  ;;  %v696_v16 = vrot.slane %v691_v46, 2  ;;  %v697_v19 = vrot.slane %v691_v46, 3 }
 0x140   : > { %3421 = vmatmul.mubr.msk.bf16.vlgmr.msra.gmra.mrb[0].mxu0 %vm769_vm8, %v887_v40  ;;  %v707_v24 = vmul.f32 %v692_v63, %v679_v10  ;;  %v708_v44 = vmul.f32 %v693_v1, %v680_v20  ;;  %v709_v25 = vmul.f32 %v694_v42, %v681_v61  ;;  %v710_v29 = vmul.f32 %v691_v46, %v682_v13 }
 0x141   : > { %v725_v30 = vrot.slane %v706_v41, %v4448_v21  ;;  %3438 = vmatprep.mubr.msk.bf16.mxu0 %vm3957_vm0, %v5307_v0  ;;  %v711_v33 = vmul.f32 %v695_v4, %v683_v36  ;;  %v712_v35 = vmul.f32 %v696_v16, %v684_v43  ;;  %v713_v38 = vmul.f32 %v697_v19, %v685_v62 }
 0x142   : > { %v729_v39 = vrot.slane %v707_v24, %v4448_v21  ;;  %v733_v45 = vrot.slane %v708_v44, %v4448_v21  ;;  %v737_v48 = vrot.slane %v709_v25, %v4448_v21  ;;  %v741_v49 = vrot.slane %v710_v29, %v4448_v21 }
 0x143   : > { %v780_v50 = vrot.slane %v3303_v31, 2  ;;  %v745_v51 = vrot.slane %v711_v33, %v4448_v21  ;;  %v749_v52 = vrot.slane %v712_v35, %v4448_v21  ;;  %v753_v54 = vrot.slane %v713_v38, %v4448_v21 }
 0x144   : > { %v755_v55 = vsel %vm754_vm1, %v729_v39, %v725_v30  ;;  %v781_v53 = vrot.slane %v3303_v31, 3  ;;  %v782_v58 = vrot.slane %v778_v47, 1  ;;  %v783_v59 = vrot.slane %v778_v47, 2 }
 0x145   : > { %v757_v56 = vsel %vm756_vm2, %v733_v45, %v755_v55  ;;  %v784_v6 = vrot.slane %v778_v47, 3  ;;  %v793_v60 = vmul.f32 %v3303_v31, %v678_v26  ;;  %v794_v37 = vmul.f32 %v779_v34, %v679_v10 }
 0x146   : > { %v759_v57 = vsel %vm758_vm3, %v737_v48, %v757_v56  ;;  %v795_v46 = vmul.f32 %v780_v50, %v680_v20  ;;  %v796_v63 = vmul.f32 %v781_v53, %v681_v61  ;;  %v797_v1 = vmul.f32 %v778_v47, %v682_v13  ;;  %v568_v48 = vld [vmem:[%s4389_s20] sm:$0xff] }
 0x147   : > { %v761_v40 = vsel %vm760_vm4, %v741_v49, %v759_v57  ;;  %v798_v41 = vmul.f32 %v782_v58, %v683_v36  ;;  %v799_v4 = vmul.f32 %v783_v59, %v684_v43  ;;  %v800_v16 = vmul.f32 %v784_v6, %v685_v62  ;;  %v855_v49 = vld [vmem:[%s4382_s3] sm:$0xf] }
 0x148   : > { %v763_v42 = vsel %vm762_vm5, %v745_v51, %v761_v40  ;;  %v812_v24 = vrot.slane %v793_v60, %v4448_v21  ;;  %v816_v44 = vrot.slane %v794_v37, %v4448_v21  ;;  %v820_v25 = vrot.slane %v795_v46, %v4448_v21  ;;  %v3314_v46 = vld.sshfl [vmem:[%s4380_s1 + $0x2] sm:$0x1 pattern:$0x76325410] }
 0x149   : > { %v765_v19 = vsel %vm764_vm6, %v749_v52, %v763_v42  ;;  %v824_v10 = vrot.slane %v796_v63, %v4448_v21  ;;  %v828_v31 = vrot.slane %v797_v1, %v4448_v21  ;;  %v832_v61 = vrot.slane %v798_v41, %v4448_v21  ;;  %v3315_v63 = vld.sshfl [vmem:[%s4380_s1 + $0x4] sm:$0x1 pattern:$0x76325410] }
 0x14a   : > { %v767_v26 = vsel %vm766_vm7, %v753_v54, %v765_v19  ;;  %v841_v13 = vsel %vm754_vm1, %v816_v44, %v812_v24  ;;  %v836_v36 = vrot.slane %v799_v4, %v4448_v21  ;;  %v840_v62 = vrot.slane %v800_v16, %v4448_v21  ;;  %v3313_v42 = vld.sshfl [vmem:[%s4380_s1] sm:$0x1 pattern:$0x76325410] }
 0x14b   : > { %v770_v20 = vsel %vm769_vm8, %v767_v26, 0.0  ;;  %v842_v43 = vsel %vm756_vm2, %v820_v25, %v841_v13  ;;  %v856_v21 = vunpack.c.l.bf16 %v855_v49  ;;  %v1099_v1 = vunpack.c.l.b16 %v3314_v46  ;;  %v3316_v4 = vld.sshfl [vmem:[%s4380_s1 + $0x6] sm:$0x1 pattern:$0x76325410] }
 0x14c   : > { %771 = vadd.xlane.f32.xlu0 %v770_v20  ;;  %v843_v47 = vsel %vm758_vm3, %v824_v10, %v842_v43  ;;  %v1100_v41 = vunpack.c.l.b16 %v3315_v63  ;;  %v1098_v16 = vunpack.c.l.b16 %v3313_v42  ;;  %v3317_v24 = vld.sshfl [vmem:[%s4380_s1 + $0x8] sm:$0x1 pattern:$0x76325410]  ;;  %v1101_v44 = vunpack.c.l.b16 %v3316_v4  ;;  %v4600_v49 = vld [vmem:[%s4367_s19 + $0x4] sm:$0x1] }
 0x14d   : > { %v844_v34 = vsel %vm760_vm4, %v828_v31, %v843_v47  ;;  %v1106_v19 = vrot.slane %v1099_v1, 7  ;;  %v3318_v26 = vld.sshfl [vmem:[%s4380_s1 + $0xa] sm:$0x1 pattern:$0x76325410]  ;;  %v1102_v10 = vunpack.c.l.b16 %v3317_v24  ;;  %v2191_v5 = vunpack.c.l.b16 %v4668_v3 }
 0x14e   : > { %v845_v29 = vsel %vm762_vm5, %v832_v61, %v844_v34  ;;  %v1108_v25 = vrot.slane %v1100_v41, 6  ;;  %v3319_v20 = vld.sshfl [vmem:[%s4380_s1 + $0xc] sm:$0x1 pattern:$0x76325410]  ;;  %v1103_v61 = vunpack.c.l.b16 %v3318_v26  ;;  %vm1367_vm11 = vcmask 57344  }
 0x14f   : > { %v846_v30 = vsel %vm764_vm6, %v836_v36, %v845_v29  ;;  %v1107_v31 = vsel %vm754_vm1, %v1106_v19, %v1098_v16  ;;  %v1110_v36 = vrot.slane %v1101_v44, 5  ;;  %v3320_v43 = vld.sshfl [vmem:[%s4380_s1 + $0xe] sm:$0x1 pattern:$0x76325410]  ;;  %v1112_v47 = vrot.slane %v1102_v10, 4 }
 0x150   : > { %v847_v33 = vsel %vm766_vm7, %v840_v62, %v846_v30  ;;  %v1109_v13 = vsel %vm756_vm2, %v1108_v25, %v1107_v31  ;;  %v1104_v62 = vunpack.c.l.b16 %v3319_v20  ;;  %v1105_v34 = vunpack.c.l.b16 %v3320_v43  ;;  %v4626_v42 = vld [vmem:[%s4367_s19 + $0xe] sm:$0x1] }
 0x151   : > { %v849_v35 = vsel %vm769_vm8, %v847_v33, 0.0  ;;  %v1111_v29 = vsel %vm758_vm3, %v1110_v36, %v1109_v13  ;;  %v1114_v30 = vrot.slane %v1103_v61, 3  ;;  %v5315_v24 = vunpack.c.l.bf16 %v4626_v42 }
 0x152   : > { %850 = vadd.xlane.f32.xlu0 %v849_v35  ;;  %v1113_v33 = vsel %vm760_vm4, %v1112_v47, %v1111_v29  ;;  %v1116_v35 = vrot.slane %v1104_v62, 2  ;;  %v2199_v17 = vrot.slane %v2191_v5, 2  ;;  %vm1988_vm12 = vcmask 64514  }
 0x153   : > { %vm1992_vm13 = vcmask 58368   ;;  %vm2613_vm14 = vcmask 64515   ;;  %vm2617_vm15 = vcmask 59392  }
 0x1d9   : > { %v772_v38 = vpop.xlane.xlu0 %771 }
 0x1df   : > { %v851_v39 = vpop.xlane.xlu0 %850 }
 0x1e0   : > { %v852_v45 = vsub.f32 %v772_v38, %v851_v39  ;;  %v3322_v38 = vld [vmem:[#allocation11 + $0x1] ss:$0 sm:$0xff] }
 0x1e1   : > { %v1214_v63 = vrot.slane %v3322_v38, 1  ;;  %v1215_v4 = vrot.slane %v3322_v38, 2 }
 0x1e2   : > { %v853_v50 = vmul.f32 %v852_v45, %v568_v48  ;;  %v1118_v45 = vrot.slane %v1105_v34, 1  ;;  %v4597_v48 = vld [vmem:[%s4367_s19] sm:$0x1] }
 0x1e4   : > { %v854_v52 = vadd.f32 %v853_v50, %v851_v39  ;;  %v1115_v39 = vsel %vm762_vm5, %v1114_v30, %v1113_v33 }
 0x1e5   : > { %v1117_v50 = vsel %vm764_vm6, %v1116_v35, %v1115_v39 }
 0x213   : > { %v1015_v51 = vpop.f32.mrb[0].mxu0 }
 0x214   : > { %v1016_v54 = vadd.f32 %v1015_v51, %v856_v21  ;;  %v3422_v55 = vpop.f32.mrb[1].mxu0  ;;  %v4604_v21 = vld [vmem:[%s4367_s19 + $0x2] sm:$0x1]  ;;  %v4607_v51 = vld [vmem:[%s4367_s19 + $0x6] sm:$0x1] }
 0x215   : > { %v1018_v56 = vpop.f32.mrb[2].mxu0  ;;  %v4611_v55 = vld [vmem:[%s4367_s19 + $0x8] sm:$0x1] }
 0x216   : > { %v3423_v53 = vpop.f32.mrb[3].mxu0  ;;  %v1021_v58 = vadd.f32 %v1016_v54, %v854_v52  ;;  %v1212_v52 = vcombine.high %v3322_v38, %v3322_v38  ;;  %v1119_v54 = vsel %vm766_vm7, %v1118_v45, %v1117_v50  ;;  %v5327_v46 = vunpack.c.l.bf16 %v4611_v55 }
 0x217   : > { %v1120_v56 = vpack.c.b16 %v1119_v54, %v1119_v54  ;;  %v4614_v53 = vld [vmem:[%s4367_s19 + $0xa] sm:$0x1] }
 0x218   : > { %v1022_v59 = vsel %vm769_vm8, %v1021_v58, -inf  ;;  %v5326_v41 = vunpack.c.l.bf16 %v4614_v53  ;;  %v1216_v16 = vrot.slane %v1212_v52, 7  ;;  %v1217_v44 = vrot.slane %v1212_v52, 1 }
 0x219   : > { %1023 = vmax.xlane.f32.xlu1 %v1022_v59  ;;  %v5329_v59 = vunpack.c.l.bf16 %v4600_v49  ;;  %v1126_v1 = vsel %vm1124_vm9, %v1120_v56, 0  ;;  %v1218_v25 = vrot.slane %v1212_v52, 2 }
 0x21a   : > { %3425 = vmatpush3.bf16.msra.mxu1 %v1126_v1  ;;  %v1231_v61 = vadd.f32 %v1216_v16, %v5327_v46  ;;  %v1232_v13 = vadd.f32 %v1212_v52, %v5326_v41 }
 0x21b   : > { %3430 = vmatprep.subr.bf16.mxu1 %v5307_v0  ;;  %v1229_v31 = vadd.f32 %v1214_v63, %v5329_v59  ;;  %v1234_v43 = vadd.f32 %v1218_v25, %v5315_v24  ;;  %v5410_v59 = vunpack.c.l.bf16 %v4600_v49 }
 0x21c   : > { %v1239_v30 = vmul.f32 0.35355338, %v1231_v61  ;;  %v1240_v33 = vmul.f32 0.35355338, %v1232_v13 }
 0x21d   : > { %v1237_v34 = vmul.f32 0.35355338, %v1229_v31  ;;  %v1242_v39 = vmul.f32 0.35355338, %v1234_v43 }
 0x21e   : > { %v1247_v56 = vpack.c.bf16 %v1239_v30, %v1239_v30  ;;  %v1248_v52 = vpack.c.bf16 %v1240_v33, %v1240_v33 }
 0x21f   : > { %v1245_v50 = vpack.c.bf16 %v1237_v34, %v1237_v34  ;;  %v1250_v63 = vpack.c.bf16 %v1242_v39, %v1242_v39 }
 0x220   : > { %v1483_v25 = vunpack.c.l.b16 %v1247_v56  ;;  %v1578_v56 = vrot.slane %v955_v15, 6  ;;  %v3346_v15 = vld [vmem:[#allocation11 + $0x2] ss:$0 sm:$0xff] }
 0x221   : > { %v1481_v16 = vunpack.c.l.b16 %v1245_v50  ;;  %v1486_v31 = vunpack.c.l.b16 %v1250_v63  ;;  %v1576_v50 = vrot.slane %v954_v12, 7  ;;  %v1582_v63 = vrot.slane %v957_v23, 4 }
 0x223   : > { %v1489_v61 = vrot.slane %v1481_v16, 7  ;;  %v1499_v30 = vrot.slane %v1486_v31, 2  ;;  %v5313_v16 = vunpack.c.l.bf16 %v4682_v11  ;;  %v4707_v31 = vld [vmem:[%s4367_s19 + $0x4] sm:$0x2] }
 0x2a6   : > { %v1024_v57 = vpop.xlane.xlu1 %1023 }
 0x2a7   : > { %v1025_v6 = vsub.f32 %v1021_v58, %v1024_v57  ;;  %v1179_v58 = vunpack.c.l.bf16 %v4597_v48  ;;  %v1213_v57 = vrot.slane %v3322_v38, 7 }
 0x2a9   : > { %v1026_v60 = vmul.f32 1.442695, %v1025_v6  ;;  %v4619_v6 = vld [vmem:[%s4367_s19 + $0xc] sm:$0x1]  ;;  %v1227_v26 = vadd.f32 %v1213_v57, %v1179_v58 }
 0x2aa   : > { %v5325_v19 = vunpack.c.l.bf16 %v4619_v6 }
 0x2ab   : > { %3590 = vpow2.f32 %v1026_v60  ;;  %v5330_v60 = vunpack.c.l.bf16 %v4604_v21  ;;  %v1235_v62 = vmul.f32 0.35355338, %v1227_v26  ;;  %v1484_v26 = vunpack.c.l.b16 %v1248_v52 }
 0x2ac   : > { %v1233_v36 = vadd.f32 %v1217_v44, %v5325_v19  ;;  %v4850_v19 = vld [vmem:[%s4367_s19 + $0xe] sm:$0x2] }
 0x2ad   : > { %v1228_v10 = vadd.f32 %v3322_v38, %v5330_v60  ;;  %v1243_v38 = vpack.c.bf16 %v1235_v62, %v1235_v62  ;;  %v1495_v62 = vrot.slane %v1484_v26, 4  ;;  %v4695_v26 = vld.sshfl [vmem:[%s4374_s5 + $0x4] sm:$0x2 pattern:$0x76325410] }
 0x2ae   : > { %v1241_v35 = vmul.f32 0.35355338, %v1233_v36  ;;  %v1493_v36 = vrot.slane %v1483_v25, 5  ;;  %v1839_v25 = vrot.slane %v3346_v15, 7 }
 0x2af   : > { %v1236_v47 = vmul.f32 0.35355338, %v1228_v10  ;;  %v1479_v1 = vunpack.c.l.b16 %v1243_v38  ;;  %v1574_v38 = vrot.slane %v952_v8, 1 }
 0x2b0   : > { %v1249_v57 = vpack.c.bf16 %v1241_v35, %v1241_v35  ;;  %v4671_v8 = vld.sshfl [vmem:[%s4374_s5 + $0x2] sm:$0x2 pattern:$0x76325410] }
 0x2b1   : > { %v1244_v45 = vpack.c.bf16 %v1236_v47, %v1236_v47  ;;  %v5310_v12 = vunpack.c.l.b16 %v4671_v8 }
 0x2b2   : > { %v1485_v10 = vunpack.c.l.b16 %v1249_v57  ;;  %v1580_v57 = vrot.slane %v956_v18, 5  ;;  %v1584_v18 = vrot.slane %v958_v28, 3  ;;  %v4703_v28 = vld.sshfl [vmem:[%s4374_s5 + $0x8] sm:$0x2 pattern:$0x76325410] }
 0x2b3   : > { %v2200_v23 = vrot.slane %v5310_v12, 1  ;;  %5396 = vst [vmem:[#allocation36_spill] sm:$0xff] %v4703_v28 }
 0x2b4   : > { %v1497_v34 = vrot.slane %v1485_v10, 3 }
 0x2b5   : > { %v4579_v37 = vpop.eup %3590 }
 0x2b6   : > { %5393 = vst [vmem:[#allocation33_spill] sm:$0xff] %v4579_v37  ;;  %v1028_v40 = vsel %vm769_vm8, %v4579_v37, 0.0  ;;  %v5413_v37 = vunpack.c.l.bf16 %v4611_v55 }
 0x2b7   : > { %1029 = vadd.xlane.f32.xlu1 %v1028_v40  ;;  %v5328_v40 = vunpack.c.l.bf16 %v4607_v51 }
 0x2b9   : > { %v1230_v20 = vadd.f32 %v1215_v4, %v5328_v40  ;;  %v1480_v4 = vunpack.c.l.b16 %v1244_v45  ;;  %v5409_v40 = vunpack.c.l.bf16 %v4604_v21 }
 0x2bb   : > { %v1238_v29 = vmul.f32 0.35355338, %v1230_v20  ;;  %v1487_v20 = vrot.slane %v1479_v1, 1 }
 0x2bc   : > { %v4690_v1 = vld.sshfl [vmem:[%s4374_s5 + $0x6] sm:$0x2 pattern:$0x76325410] }
 0x2bd   : > { %v1246_v54 = vpack.c.bf16 %v1238_v29, %v1238_v29  ;;  %v1488_v43 = vsel %vm754_vm1, %v1480_v4, %v1487_v20  ;;  %5395 = vst [vmem:[#allocation35_spill] sm:$0xff] %v4690_v1  ;;  %v5309_v10 = vunpack.c.l.b16 %v4690_v1  ;;  %v4710_v20 = vld [vmem:[%s4367_s19 + $0x6] sm:$0x2] }
 0x2be   : > { %v1490_v47 = vsel %vm756_vm2, %v1489_v61, %v1488_v43  ;;  %v4713_v61 = vld [vmem:[%s4367_s19 + $0x8] sm:$0x2]  ;;  %v4717_v43 = vld [vmem:[%s4367_s19 + $0xa] sm:$0x2] }
 0x2bf   : > { %v1482_v44 = vunpack.c.l.b16 %v1246_v54  ;;  %v1575_v54 = vsel %vm754_vm1, %v953_v9, %v1574_v38  ;;  %v4679_v9 = vld [vmem:[%s4367_s19] sm:$0x2]  ;;  %v2203_v38 = vrot.slane %v5309_v10, 7  ;;  %v5322_v27 = vunpack.c.l.bf16 %v4713_v61 }
 0x2c0   : > { %v1577_v52 = vsel %vm756_vm2, %v1576_v50, %v1575_v54  ;;  %v5314_v4 = vunpack.c.l.bf16 %v4679_v9  ;;  %v5324_v50 = vunpack.c.l.bf16 %v4707_v31  ;;  %v5323_v54 = vunpack.c.l.bf16 %v4710_v20 }
 0x2c1   : > { %v1491_v13 = vrot.slane %v1482_v44, 6  ;;  %v1579_v7 = vsel %vm758_vm3, %v1578_v56, %v1577_v52  ;;  %v1838_v44 = vrot.slane %v3346_v15, 6  ;;  %v5321_v56 = vunpack.c.l.bf16 %v4717_v43 }
 0x2c2   : > { %v1581_v14 = vsel %vm760_vm4, %v1580_v57, %v1579_v7  ;;  %v1840_v52 = vrot.slane %v3346_v15, 1 }
 0x2c3   : > { %v1492_v29 = vsel %vm758_vm3, %v1491_v13, %v1490_v47  ;;  %v1583_v22 = vsel %vm762_vm5, %v1582_v63, %v1581_v14  ;;  %v1837_v13 = vcombine.high %v3346_v15, %v3346_v15  ;;  %v1853_v47 = vadd.f32 %v1839_v25, %v5313_v16  ;;  %v4748_v25 = vld.sshfl [vmem:[%s4374_s5 + $0xc] sm:$0x2 pattern:$0x76325410] }
 0x2c4   : > { %v1494_v33 = vsel %vm760_vm4, %v1493_v36, %v1492_v29  ;;  %v5312_v36 = vunpack.c.l.b16 %v4695_v26  ;;  %v1586_v29 = vrot.slane %v959_v32, 2  ;;  %v4740_v32 = vld [vmem:[%s4367_s19 + $0xe] sm:$0x2]  ;;  %5398 = vst [vmem:[#allocation38_spill] sm:$0xff] %v4748_v25 }
 0x2c5   : > { %v1496_v35 = vsel %vm762_vm5, %v1495_v62, %v1494_v33  ;;  %v1852_v62 = vadd.f32 %v1838_v44, %v5314_v4  ;;  %v5311_v33 = vunpack.c.l.b16 %v4703_v28  ;;  %v1841_v57 = vrot.slane %v1837_v13, 6 }
 0x2c6   : > { %v1498_v39 = vsel %vm764_vm6, %v1497_v34, %v1496_v35  ;;  %v1585_v34 = vsel %vm764_vm6, %v1584_v18, %v1583_v22  ;;  %v2201_v35 = vsel %vm754_vm1, %v2200_v23, %v2199_v17  ;;  %v1842_v7 = vrot.slane %v1837_v13, 7  ;;  %v4753_v22 = vld.sshfl [vmem:[%s4374_s5 + $0xe] sm:$0x2 pattern:$0x76325410] }
 0x2c7   : > { %v4657_v45 = vsel %vm766_vm7, %v1499_v30, %v1498_v39  ;;  %v4727_v30 = vld.sshfl [vmem:[%s4374_s5 + $0xa] sm:$0x2 pattern:$0x76325410]  ;;  %v4734_v39 = vld [vmem:[%s4367_s19 + $0xc] sm:$0x2]  ;;  %v2202_v63 = vsel %vm756_vm2, %v5312_v36, %v2201_v35  ;;  %v1587_v44 = vsel %vm766_vm7, %v1586_v29, %v1585_v34  ;;  %v5317_v10 = vunpack.c.l.bf16 %v4740_v32 }
 0x2c8   : > { %5394 = vst [vmem:[#allocation34_spill] sm:$0xff] %v4657_v45  ;;  %5397 = vst [vmem:[#allocation37_spill] sm:$0xff] %v4727_v30  ;;  %v1860_v14 = vmul.f32 0.35355338, %v1852_v62  ;;  %v1861_v18 = vmul.f32 0.35355338, %v1853_v47  ;;  %v5316_v17 = vunpack.c.l.b16 %v4727_v30  ;;  %v5319_v23 = vunpack.c.l.bf16 %v4734_v39 }
 0x2c9   : > { %5399 = vst [vmem:[#allocation39_spill] sm:$0xff] %v4753_v22  ;;  %v2205_v0 = vrot.slane %v5311_v33, 6  ;;  %v1843_v12 = vrot.slane %v1837_v13, 1  ;;  %v1854_v62 = vadd.f32 %v3346_v15, %v5324_v50  ;;  %v2204_v47 = vsel %vm758_vm3, %v2203_v38, %v2202_v63  ;;  %v4779_v63 = vld [vmem:[%s4367_s19] sm:$0x2]  ;;  %s3847_s5 = sshll.u32 %s3961_s18, 4  ;;  %s3848_s5 = int_to_ptr.vmem [resolvable:$false] %s3847_s5 }
 0x2ca   : > { %v1855_v34 = vadd.f32 %v1840_v52, %v5323_v54  ;;  %v1856_v29 = vadd.f32 %v1841_v57, %v5322_v27  ;;  %v1857_v35 = vadd.f32 %v1842_v7, %v5321_v56  ;;  %v1588_v33 = vpack.c.b16 %v1587_v44, %v1587_v44  ;;  %v4841_v56 = vld [vmem:[%s4367_s19 + $0xc] sm:$0x2]  ;;  %p3850_p6 = scmp.lt.s32.totalorder %s5220_s8, %s3848_s5 }
 0x2cb   : > { %v5318_v36 = vunpack.c.l.b16 %v4748_v25  ;;  %v1868_v16 = vpack.c.bf16 %v1860_v14, %v1860_v14  ;;  %v1869_v4 = vpack.c.bf16 %v1861_v18, %v1861_v18  ;;  %v5320_v24 = vunpack.c.l.b16 %v4753_v22  ;;  %v4781_v14 = vld [vmem:[#allocation11 + $0x3] ss:$0 sm:$0xff]  ;;  %v3324_v25 = vld [vmem:[#allocation14 + $0x1] ss:$0 sm:$0xff] }
 0x2cc   : > { %v2207_v15 = vrot.slane %v5316_v17, 5  ;;  %v1858_v38 = vadd.f32 %v1837_v13, %v5319_v23  ;;  %v2206_v52 = vsel %vm760_vm4, %v2205_v0, %v2204_v47  ;;  %v1859_v57 = vadd.f32 %v1843_v12, %v5317_v10  ;;  %v4790_v13 = vld [vmem:[%s4367_s19 + $0x2] sm:$0x2] }
 0x2cd   : > { %v4776_v7 = vmul.f32 0.35355338, %v1854_v62  ;;  %v4783_v18 = vmul.f32 0.35355338, %v1855_v34  ;;  %v4785_v44 = vmul.f32 0.35355338, %v1856_v29  ;;  %v4799_v62 = vunpack.c.l.b16 %v1868_v16 }
 0x2ce   : > { %v4787_v17 = vmul.f32 0.35355338, %v1857_v35  ;;  %v4793_v0 = vsel %vm769_vm8, %v1588_v33, 0  ;;  %v4797_v12 = vrot.slane %v5318_v36, 4  ;;  %v4801_v47 = vunpack.c.l.b16 %v1869_v4  ;;  %v4804_v34 = vld [vmem:[%s4367_s19 + $0x4] sm:$0x2] }
 0x2cf   : > { %5400 = vst [vmem:[#allocation40_spill] sm:$0xff] %v4776_v7  ;;  %5401 = vst [vmem:[#allocation41_spill] sm:$0xff] %v4785_v44  ;;  %v3323_v29 = vld [vmem:[#allocation13 + $0x1] ss:$0 sm:$0xff]  ;;  %v4807_v35 = vsel %vm762_vm5, %v2207_v15, %v2206_v52  ;;  %v4811_v33 = vrot.slane %v5320_v24, 3  ;;  %v4817_v16 = vrot.slane %v2191_v5, 3  ;;  %v5332_v52 = vunpack.c.l.bf16 %v4779_v63 }
 0x2d0   : > { %5402 = vst [vmem:[#allocation42_spill] sm:$0xff] %v4787_v17  ;;  %5403 = vst [vmem:[#allocation43_spill] sm:$0xff] %v4793_v0  ;;  %v4813_v10 = vmul.f32 0.35355338, %v1858_v38  ;;  %v4820_v4 = vld [vmem:[%s4367_s19 + $0x6] sm:$0x2]  ;;  %v4843_v23 = vcombine.high %v3323_v29, %v3323_v29  ;;  %v1272_v22 = vadd.f32 %v3323_v29, %v5409_v40  ;;  %v5414_v5 = vunpack.c.l.bf16 %v4614_v53 }
 0x2d1   : > { %5404 = vst [vmem:[#allocation44_spill] sm:$0xff] %v4799_v62  ;;  %5405 = vst [vmem:[#allocation45_spill] sm:$0xff] %v4801_v47  ;;  %v4822_v36 = vmul.f32 0.35355338, %v1859_v57  ;;  %v4827_v15 = vld [vmem:[%s4367_s19 + $0x8] sm:$0x2]  ;;  %v4880_v21 = vcombine.high %v4781_v14, %v4781_v14 }
 0x2d2   : > { %5406 = vst [vmem:[#allocation46_spill] sm:$0xff] %v4811_v33  ;;  %5407 = vst [vmem:[#allocation47_spill] sm:$0xff] %v4813_v10  ;;  %v2463_v24 = vrot.slane %v4781_v14, 5  ;;  %v4838_v57 = vld [vmem:[%s4367_s19 + $0xa] sm:$0x2]  ;;  %v2464_v41 = vrot.slane %v4781_v14, 6  ;;  %v5412_v33 = vunpack.c.l.bf16 %v4607_v51  ;;  %v1276_v48 = vadd.f32 %v4843_v23, %v5414_v5  ;;  %s5472_s19 = smov %s5471_s29 }
 0x2d3   : > { %5408 = vst [vmem:[#allocation48_spill] sm:$0xff] %v4822_v36  ;;  %v1257_v46 = vrot.slane %v3323_v29, 7  ;;  %v1258_v27 = vrot.slane %v3323_v29, 1  ;;  %v2465_v50 = vrot.slane %v4781_v14, 7  ;;  %v1259_v38 = vrot.slane %v3323_v29, 2 }
 0x2d4   : > { %v2477_v54 = vadd.f32 %v2463_v24, %v5332_v52  ;;  %v1260_v60 = vrot.slane %v4843_v23, 7  ;;  %v1261_v3 = vrot.slane %v4843_v23, 1  ;;  %v5411_v24 = vunpack.c.l.bf16 %v4790_v13 }
 0x2d5   : > { %v1271_v45 = vadd.f32 %v1257_v46, %v1179_v58  ;;  %v1273_v0 = vadd.f32 %v1258_v27, %v5410_v59  ;;  %v1274_v30 = vadd.f32 %v1259_v38, %v5412_v33  ;;  %v5415_v58 = vunpack.c.l.bf16 %v4619_v6 }
 0x2d6   : > { %v2478_v52 = vadd.f32 %v2464_v41, %v5411_v24  ;;  %v1275_v1 = vadd.f32 %v1260_v60, %v5413_v37  ;;  %v4882_v49 = vmul.f32 0.35355338, %v2477_v54  ;;  %v1280_v40 = vmul.f32 0.35355338, %v1272_v22 }
 0x2d7   : > { %v1277_v59 = vadd.f32 %v1261_v3, %v5415_v58  ;;  %v5416_v51 = vunpack.c.l.bf16 %v4804_v34  ;;  %v1279_v55 = vmul.f32 0.35355338, %v1271_v45  ;;  %v1281_v37 = vmul.f32 0.35355338, %v1273_v0 }
 0x2d8   : > { %v1282_v60 = vmul.f32 0.35355338, %v1274_v30  ;;  %v1283_v53 = vmul.f32 0.35355338, %v1275_v1  ;;  %v1284_v41 = vmul.f32 0.35355338, %v1276_v48  ;;  %v1292_v29 = vcombine.high %v3324_v25, %v3324_v25 }
 0x2d9   : > { %v4888_v46 = vadd.f32 %v2465_v50, %v5416_v51  ;;  %v1285_v27 = vmul.f32 0.35355338, %v1277_v59  ;;  %v4890_v33 = vmul.f32 0.35355338, %v2478_v52  ;;  %v1293_v38 = vrot.slane %v3324_v25, 7 }
 0x2da   : > { %v1294_v54 = vrot.slane %v3324_v25, 1  ;;  %v1295_v5 = vrot.slane %v3324_v25, 2  ;;  %v1296_v24 = vrot.slane %v1292_v29, 7  ;;  %v1297_v6 = vrot.slane %v1292_v29, 1  ;;  %v3325_v52 = vld [vmem:[#allocation14 + $0x5] ss:$0 sm:$0xff] }
 0x2db   : > { %v1308_v3 = vmul.f32 %v3324_v25, %v1280_v40  ;;  %v1312_v22 = vmul.f32 %v1292_v29, %v1284_v41  ;;  %v1307_v58 = vmul.f32 %v1293_v38, %v1279_v55  ;;  %v4893_v45 = vsub.s32 1, %v4405_v2 }
 0x2dc   : > { %v1309_v28 = vmul.f32 %v1294_v54, %v1281_v37  ;;  %v1310_v50 = vmul.f32 %v1295_v5, %v1282_v60  ;;  %v1311_v30 = vmul.f32 %v1296_v24, %v1283_v53  ;;  %v1313_v1 = vmul.f32 %v1297_v6, %v1285_v27 }
 0x2dd   : > { %v1262_v0 = vrot.slane %v4843_v23, 2  ;;  %v1326_v48 = vrot.slane %v1307_v58, %v4893_v45  ;;  %v1330_v59 = vrot.slane %v1308_v3, %v4893_v45  ;;  %v1346_v54 = vrot.slane %v1312_v22, %v4893_v45 }
 0x2de   : > { %v1334_v51 = vrot.slane %v1309_v28, %v4893_v45  ;;  %v1338_v25 = vrot.slane %v1310_v50, %v4893_v45  ;;  %v1342_v38 = vrot.slane %v1311_v30, %v4893_v45  ;;  %v1350_v5 = vrot.slane %v1313_v1, %v4893_v45 }
 0x2df   : > { %v5417_v24 = vunpack.c.l.bf16 %v4626_v42  ;;  %v1355_v23 = vsel %vm756_vm2, %v1330_v59, %v1326_v48  ;;  %v1298_v17 = vrot.slane %v1292_v29, 2  ;;  %v1376_v58 = vcombine.high %v3325_v52, %v3325_v52 }
 0x2e0   : > { %v1356_v3 = vsel %vm758_vm3, %v1334_v51, %v1355_v23  ;;  %v1377_v28 = vrot.slane %v3325_v52, 7  ;;  %v1378_v44 = vrot.slane %v3325_v52, 1  ;;  %v1379_v30 = vrot.slane %v3325_v52, 2 }
 0x2e1   : > { %v1278_v6 = vadd.f32 %v1262_v0, %v5417_v24  ;;  %v1357_v50 = vsel %vm760_vm4, %v1338_v25, %v1356_v3  ;;  %v1380_v10 = vrot.slane %v1376_v58, 7  ;;  %v1381_v22 = vrot.slane %v1376_v58, 1  ;;  %v3347_v25 = vld [vmem:[#allocation13 + $0x2] ss:$0 sm:$0xff] }
 0x2e2   : > { %v1358_v1 = vsel %vm762_vm5, %v1342_v38, %v1357_v50  ;;  %v1391_v42 = vmul.f32 %v1377_v28, %v1279_v55  ;;  %v1392_v0 = vmul.f32 %v3325_v52, %v1280_v40  ;;  %v1393_v29 = vmul.f32 %v1378_v44, %v1281_v37 }
 0x2e3   : > { %v1286_v36 = vmul.f32 0.35355338, %v1278_v6  ;;  %v1359_v48 = vsel %vm764_vm6, %v1346_v54, %v1358_v1  ;;  %v1394_v59 = vmul.f32 %v1379_v30, %v1282_v60  ;;  %v1395_v24 = vmul.f32 %v1380_v10, %v1283_v53 }
 0x2e4   : > { %v1360_v51 = vsel %vm766_vm7, %v1350_v5, %v1359_v48  ;;  %v1396_v23 = vmul.f32 %v1376_v58, %v1284_v41  ;;  %v1397_v62 = vmul.f32 %v1381_v22, %v1285_v27  ;;  %v1410_v7 = vrot.slane %v1391_v42, %v4893_v45 }
 0x2e5   : > { %v1314_v47 = vmul.f32 %v1298_v17, %v1286_v36  ;;  %v1364_v3 = vsel %vm1363_vm10, %v1360_v51, 0.0  ;;  %v1414_v17 = vrot.slane %v1392_v0, %v4893_v45  ;;  %v1418_v40 = vrot.slane %v1393_v29, %v4893_v45 }
 0x2e6   : > { %1365 = vadd.xlane.f32.xlu0 %v1364_v3  ;;  %v1422_v10 = vrot.slane %v1394_v59, %v4893_v45  ;;  %v1426_v55 = vrot.slane %v1395_v24, %v4893_v45  ;;  %v1434_v37 = vrot.slane %v1397_v62, %v4893_v45  ;;  %v1382_v53 = vrot.slane %v1376_v58, 2  ;;  %v3348_v59 = vld [vmem:[#allocation14 + $0x2] ss:$0 sm:$0xff] }
 0x2e7   : > { %v1354_v6 = vrot.slane %v1314_v47, %v4893_v45  ;;  %v1430_v47 = vrot.slane %v1396_v23, %v4893_v45  ;;  %v1439_v60 = vsel %vm756_vm2, %v1414_v17, %v1410_v7  ;;  %v1881_v41 = vcombine.high %v3347_v25, %v3347_v25 }
 0x2e8   : > { %v1440_v27 = vsel %vm758_vm3, %v1418_v40, %v1439_v60  ;;  %v1882_v52 = vrot.slane %v3347_v25, 6  ;;  %v1883_v38 = vrot.slane %v3347_v25, 7  ;;  %v1884_v54 = vrot.slane %v3347_v25, 1 }
 0x2e9   : > { %v1368_v44 = vsel %vm1367_vm11, %v1354_v6, 0.0  ;;  %v1441_v5 = vsel %vm760_vm4, %v1422_v10, %v1440_v27  ;;  %v1398_v28 = vmul.f32 %v1382_v53, %v1286_v36  ;;  %v1885_v50 = vrot.slane %v1881_v41, 6 }
 0x2ea   : > { %1369 = vadd.xlane.f32.xlu1 %v1368_v44  ;;  %v1886_v30 = vrot.slane %v1881_v41, 7  ;;  %v1442_v22 = vsel %vm762_vm5, %v1426_v55, %v1441_v5  ;;  %v5418_v1 = vunpack.c.l.bf16 %v4679_v9  ;;  %v5419_v62 = vunpack.c.l.bf16 %v4682_v11 }
 0x2eb   : > { %v5420_v58 = vunpack.c.l.bf16 %v4707_v31  ;;  %v1443_v48 = vsel %vm764_vm6, %v1430_v47, %v1442_v22  ;;  %v1438_v29 = vrot.slane %v1398_v28, %v4893_v45  ;;  %v5421_v36 = vunpack.c.l.bf16 %v4710_v20 }
 0x2ec   : > { %v1896_v42 = vadd.f32 %v1882_v52, %v5418_v1  ;;  %v1897_v7 = vadd.f32 %v1883_v38, %v5419_v62  ;;  %v5422_v51 = vunpack.c.l.bf16 %v4713_v61  ;;  %v1444_v9 = vsel %vm766_vm7, %v1434_v37, %v1443_v48 }
 0x2ed   : > { %v1898_v0 = vadd.f32 %v3347_v25, %v5420_v58  ;;  %v1899_v24 = vadd.f32 %v1884_v54, %v5421_v36  ;;  %v5423_v23 = vunpack.c.l.bf16 %v4717_v43  ;;  %v1447_v31 = vsel %vm1363_vm10, %v1444_v9, 0.0 }
 0x2ee   : > { %v1900_v6 = vadd.f32 %v1885_v50, %v5422_v51  ;;  %v1904_v3 = vmul.f32 0.35355338, %v1896_v42  ;;  %v1905_v17 = vmul.f32 0.35355338, %v1897_v7  ;;  %v1450_v25 = vsel %vm1367_vm11, %v1438_v29, 0.0  ;;  %1448 = vadd.xlane.f32.xlu0 %v1447_v31 }
 0x2ef   : > { %v1901_v11 = vadd.f32 %v1886_v30, %v5423_v23  ;;  %v1906_v40 = vmul.f32 0.35355338, %v1898_v0  ;;  %v1907_v45 = vmul.f32 0.35355338, %v1899_v24  ;;  %1451 = vadd.xlane.f32.xlu1 %v1450_v25  ;;  %v1917_v10 = vcombine.high %v3348_v59, %v3348_v59  ;;  %v3349_v42 = vld [vmem:[#allocation14 + $0x6] ss:$0 sm:$0xff] }
 0x2f0   : > { %v1908_v20 = vmul.f32 0.35355338, %v1900_v6  ;;  %v1918_v61 = vrot.slane %v3348_v59, 6  ;;  %v1919_v55 = vrot.slane %v3348_v59, 7  ;;  %v1920_v47 = vrot.slane %v3348_v59, 1 }
 0x2f1   : > { %v1909_v44 = vmul.f32 0.35355338, %v1901_v11  ;;  %v1934_v37 = vmul.f32 %v3348_v59, %v1906_v40  ;;  %v4943_v43 = vsub.s32 2, %v4405_v2  ;;  %v1921_v60 = vrot.slane %v1917_v10, 6 }
 0x2f2   : > { %v1922_v53 = vrot.slane %v1917_v10, 7  ;;  %v1932_v27 = vmul.f32 %v1918_v61, %v1904_v3  ;;  %v1933_v52 = vmul.f32 %v1919_v55, %v1905_v17  ;;  %v1935_v38 = vmul.f32 %v1920_v47, %v1907_v45 }
 0x2f3   : > { %v1959_v54 = vrot.slane %v1934_v37, %v4943_v43  ;;  %v1887_v5 = vrot.slane %v1881_v41, 1  ;;  %v1936_v28 = vmul.f32 %v1921_v60, %v1908_v20  ;;  %v5424_v22 = vunpack.c.l.bf16 %v4734_v39 }
 0x2f4   : > { %v1937_v50 = vmul.f32 %v1922_v53, %v1909_v44  ;;  %v1951_v30 = vrot.slane %v1932_v27, %v4943_v43  ;;  %v1955_v62 = vrot.slane %v1933_v52, %v4943_v43  ;;  %v1963_v7 = vrot.slane %v1935_v38, %v4943_v43 }
 0x2f5   : > { %v1902_v1 = vadd.f32 %v1881_v41, %v5424_v22  ;;  %v5425_v58 = vunpack.c.l.bf16 %v4740_v32  ;;  %v1923_v48 = vrot.slane %v1917_v10, 1  ;;  %v1967_v29 = vrot.slane %v1936_v28, %v4943_v43 }
 0x2f6   : > { %v1971_v59 = vrot.slane %v1937_v50, %v4943_v43  ;;  %v1980_v24 = vsel %vm758_vm3, %v1955_v62, %v1951_v30  ;;  %v2001_v39 = vcombine.high %v3349_v42, %v3349_v42  ;;  %v2002_v41 = vrot.slane %v3349_v42, 6  ;;  %v3371_v50 = vld [vmem:[#allocation13 + $0x3] ss:$0 sm:$0xff] }
 0x2f7   : > { %v1903_v0 = vadd.f32 %v1887_v5, %v5425_v58  ;;  %v1910_v36 = vmul.f32 0.35355338, %v1902_v1  ;;  %v1981_v6 = vsel %vm760_vm4, %v1959_v54, %v1980_v24  ;;  %v2003_v23 = vrot.slane %v3349_v42, 7 }
 0x2f8   : > { %v2004_v11 = vrot.slane %v3349_v42, 1  ;;  %v1982_v32 = vsel %vm762_vm5, %v1963_v7, %v1981_v6  ;;  %v2005_v25 = vrot.slane %v2001_v39, 6  ;;  %v2006_v61 = vrot.slane %v2001_v39, 7 }
 0x2f9   : > { %v1911_v51 = vmul.f32 0.35355338, %v1903_v0  ;;  %v1938_v9 = vmul.f32 %v1917_v10, %v1910_v36  ;;  %v1983_v55 = vsel %vm764_vm6, %v1967_v29, %v1982_v32  ;;  %v2016_v37 = vmul.f32 %v2002_v41, %v1904_v3 }
 0x2fa   : > { %v2017_v60 = vmul.f32 %v2003_v23, %v1905_v17  ;;  %v1984_v53 = vsel %vm766_vm7, %v1971_v59, %v1983_v55  ;;  %v2018_v52 = vmul.f32 %v3349_v42, %v1906_v40  ;;  %v2019_v38 = vmul.f32 %v2004_v11, %v1907_v45 }
 0x2fb   : > { %v1939_v31 = vmul.f32 %v1923_v48, %v1911_v51  ;;  %v1975_v47 = vrot.slane %v1938_v9, %v4943_v43  ;;  %v1989_v10 = vsel %vm1988_vm12, %v1984_v53, 0.0  ;;  %v2020_v54 = vmul.f32 %v2005_v25, %v1908_v20 }
 0x2fc   : > { %v2021_v5 = vmul.f32 %v2006_v61, %v1909_v44  ;;  %v2035_v28 = vrot.slane %v2016_v37, %v4943_v43  ;;  %1990 = vadd.xlane.f32.xlu0 %v1989_v10  ;;  %v2039_v22 = vrot.slane %v2017_v60, %v4943_v43  ;;  %v2043_v3 = vrot.slane %v2018_v52, %v4943_v43 }
 0x2fd   : > { %v1979_v27 = vrot.slane %v1939_v31, %v4943_v43  ;;  %v2047_v17 = vrot.slane %v2019_v38, %v4943_v43  ;;  %v2051_v40 = vrot.slane %v2020_v54, %v4943_v43  ;;  %v2007_v20 = vrot.slane %v2001_v39, 1 }
 0x2fe   : > { %v2055_v45 = vrot.slane %v2021_v5, %v4943_v43  ;;  %v2064_v44 = vsel %vm758_vm3, %v2039_v22, %v2035_v28  ;;  %v2022_v42 = vmul.f32 %v2001_v39, %v1910_v36  ;;  %v2506_v62 = vcombine.high %v3371_v50, %v3371_v50  ;;  %v3372_v36 = vld [vmem:[#allocation14 + $0x3] ss:$0 sm:$0xff] }
 0x2ff   : > { %v1985_v30 = vsel %vm754_vm1, %v1979_v27, %v1975_v47  ;;  %v2507_v7 = vrot.slane %v3371_v50, 5  ;;  %v2065_v58 = vsel %vm760_vm4, %v2043_v3, %v2064_v44  ;;  %v2023_v0 = vmul.f32 %v2007_v20, %v1911_v51 }
 0x300   : > { %v1993_v1 = vsel %vm1992_vm13, %v1985_v30, 0.0  ;;  %v2508_v48 = vrot.slane %v3371_v50, 6  ;;  %v2509_v29 = vrot.slane %v3371_v50, 7  ;;  %v2066_v59 = vsel %vm762_vm5, %v2047_v17, %v2065_v58 }
 0x301   : > { %1994 = vadd.xlane.f32.xlu1 %v1993_v1  ;;  %v2059_v24 = vrot.slane %v2022_v42, %v4943_v43  ;;  %v2510_v41 = vrot.slane %v2506_v62, 5  ;;  %v5426_v6 = vunpack.c.l.bf16 %v4779_v63  ;;  %v2067_v23 = vsel %vm764_vm6, %v2051_v40, %v2066_v59 }
 0x302   : > { %v2063_v11 = vrot.slane %v2023_v0, %v4943_v43  ;;  %v5427_v39 = vunpack.c.l.bf16 %v4790_v13  ;;  %v5428_v51 = vunpack.c.l.bf16 %v4804_v34  ;;  %v2068_v25 = vsel %vm766_vm7, %v2055_v45, %v2067_v23 }
 0x303   : > { %v2521_v9 = vadd.f32 %v2507_v7, %v5426_v6  ;;  %v5429_v61 = vunpack.c.l.bf16 %v4820_v4  ;;  %v5430_v47 = vunpack.c.l.bf16 %v4827_v15  ;;  %v2072_v60 = vsel %vm1988_vm12, %v2068_v25, 0.0 }
 0x304   : > { %v2522_v32 = vadd.f32 %v2508_v48, %v5427_v39  ;;  %v2523_v31 = vadd.f32 %v2509_v29, %v5428_v51  ;;  %v2069_v43 = vsel %vm754_vm1, %v2063_v11, %v2059_v24  ;;  %2073 = vadd.xlane.f32.xlu0 %v2072_v60  ;;  %v2542_v38 = vcombine.high %v3372_v36, %v3372_v36  ;;  %v3373_v24 = vld [vmem:[#allocation14 + $0x7] ss:$0 sm:$0xff] }
 0x305   : > { %v2524_v55 = vadd.f32 %v3371_v50, %v5429_v61  ;;  %v2525_v63 = vadd.f32 %v2510_v41, %v5430_v47  ;;  %v2529_v37 = vmul.f32 0.35355338, %v2521_v9  ;;  %v2075_v13 = vsel %vm1992_vm13, %v2069_v43, 0.0 }
 0x306   : > { %v2530_v53 = vmul.f32 0.35355338, %v2522_v32  ;;  %v2531_v27 = vmul.f32 0.35355338, %v2523_v31  ;;  %2076 = vadd.xlane.f32.xlu1 %v2075_v13  ;;  %v2543_v10 = vrot.slane %v3372_v36, 5  ;;  %v2544_v54 = vrot.slane %v3372_v36, 6 }
 0x307   : > { %v2532_v34 = vmul.f32 0.35355338, %v2524_v55  ;;  %v2533_v52 = vmul.f32 0.35355338, %v2525_v63  ;;  %v2545_v5 = vrot.slane %v3372_v36, 7  ;;  %v4992_v28 = vsub.s32 3, %v4405_v2 }
 0x308   : > { %v2546_v50 = vrot.slane %v2542_v38, 5  ;;  %v2511_v22 = vrot.slane %v2506_v62, 6  ;;  %v2557_v3 = vmul.f32 %v2543_v10, %v2529_v37  ;;  %v2558_v17 = vmul.f32 %v2544_v54, %v2530_v53 }
 0x309   : > { %v2560_v30 = vmul.f32 %v3372_v36, %v2532_v34  ;;  %v2559_v1 = vmul.f32 %v2545_v5, %v2531_v27  ;;  %v2512_v40 = vrot.slane %v2506_v62, 7  ;;  %v5431_v44 = vunpack.c.l.bf16 %v4838_v57 }
 0x30a   : > { %v2561_v45 = vmul.f32 %v2546_v50, %v2533_v52  ;;  %v5432_v7 = vunpack.c.l.bf16 %v4850_v19  ;;  %v2576_v2 = vrot.slane %v2557_v3, %v4992_v28  ;;  %v2580_v0 = vrot.slane %v2558_v17, %v4992_v28 }
 0x30b   : > { %v2588_v20 = vrot.slane %v2560_v30, %v4992_v28  ;;  %v2526_v42 = vadd.f32 %v2511_v22, %v5431_v44  ;;  %v2584_v48 = vrot.slane %v2559_v1, %v4992_v28  ;;  %v5433_v29 = vunpack.c.l.bf16 %v4841_v56 }
 0x30c   : > { %v2528_v58 = vadd.f32 %v2506_v62, %v5432_v7  ;;  %v2592_v41 = vrot.slane %v2561_v45, %v4992_v28  ;;  %v2547_v23 = vrot.slane %v2542_v38, 6  ;;  %v2605_v11 = vsel %vm760_vm4, %v2580_v0, %v2576_v2 }
 0x30d   : > { %v2527_v59 = vadd.f32 %v2512_v40, %v5433_v29  ;;  %v2534_v6 = vmul.f32 0.35355338, %v2526_v42  ;;  %v2548_v39 = vrot.slane %v2542_v38, 7  ;;  %v2606_v62 = vsel %vm762_vm5, %v2584_v48, %v2605_v11 }
 0x30e   : > { %v2536_v9 = vmul.f32 0.35355338, %v2528_v58  ;;  %v2626_v31 = vcombine.high %v3373_v24, %v3373_v24  ;;  %v2607_v25 = vsel %vm764_vm6, %v2588_v20, %v2606_v62  ;;  %v2627_v55 = vrot.slane %v3373_v24, 5 }
 0x30f   : > { %v2535_v36 = vmul.f32 0.35355338, %v2527_v59  ;;  %v2562_v32 = vmul.f32 %v2547_v23, %v2534_v6  ;;  %v2628_v47 = vrot.slane %v3373_v24, 6  ;;  %v2608_v63 = vsel %vm766_vm7, %v2592_v41, %v2607_v25 }
 0x310   : > { %v2564_v51 = vmul.f32 %v2542_v38, %v2536_v9  ;;  %v2629_v13 = vrot.slane %v3373_v24, 7  ;;  %v2614_v10 = vsel %vm2613_vm14, %v2608_v63, 0.0  ;;  %v2630_v5 = vrot.slane %v2626_v31, 5  ;;  %v5439_v63 = vld [vmem:[#allocation40_spill] sm:$0xff] }
 0x311   : > { %v2563_v61 = vmul.f32 %v2548_v39, %v2535_v36  ;;  %v2596_v60 = vrot.slane %v2562_v32, %v4992_v28  ;;  %v2641_v50 = vmul.f32 %v2627_v55, %v2529_v37  ;;  %2615 = vadd.xlane.f32.xlu0 %v2614_v10  ;;  %v2642_v38 = vmul.f32 %v2628_v47, %v2530_v53 }
 0x312   : > { %v2604_v43 = vrot.slane %v2564_v51, %v4992_v28  ;;  %v2643_v30 = vmul.f32 %v2629_v13, %v2531_v27  ;;  %v2644_v22 = vmul.f32 %v3373_v24, %v2532_v34  ;;  %v2631_v3 = vrot.slane %v2626_v31, 6 }
 0x313   : > { %v2600_v54 = vrot.slane %v2563_v61, %v4992_v28  ;;  %v2645_v1 = vmul.f32 %v2630_v5, %v2533_v52  ;;  %v2660_v40 = vrot.slane %v2641_v50, %v4992_v28  ;;  %v2632_v45 = vrot.slane %v2626_v31, 7 }
 0x314   : > { %v2664_v44 = vrot.slane %v2642_v38, %v4992_v28  ;;  %v2668_v42 = vrot.slane %v2643_v30, %v4992_v28  ;;  %v2672_v7 = vrot.slane %v2644_v22, %v4992_v28  ;;  %v2646_v27 = vmul.f32 %v2631_v3, %v2534_v6  ;;  %v5447_v22 = vld [vmem:[#allocation41_spill] sm:$0xff] }
 0x315   : > { %v2609_v17 = vsel %vm754_vm1, %v2600_v54, %v2596_v60  ;;  %v2676_v53 = vrot.slane %v2645_v1, %v4992_v28  ;;  %v2647_v34 = vmul.f32 %v2632_v45, %v2535_v36  ;;  %v5434_v52 = vunpack.c.l.b16 %v4671_v8  ;;  %v5449_v45 = vld [vmem:[#allocation48_spill] sm:$0xff] }
 0x316   : > { %v2610_v20 = vsel %vm756_vm2, %v2604_v43, %v2609_v17  ;;  %v2466_v0 = vrot.slane %v4880_v21, 5  ;;  %v2689_v48 = vsel %vm760_vm4, %v2664_v44, %v2660_v40  ;;  %v2648_v29 = vmul.f32 %v2626_v31, %v2536_v9  ;;  %v5450_v44 = vld [vmem:[#allocation42_spill] sm:$0xff] }
 0x317   : > { %v2618_v37 = vsel %vm2617_vm15, %v2610_v20, 0.0  ;;  %v2825_v2 = vrot.slane %v5434_v52, 2  ;;  %v2690_v59 = vsel %vm762_vm5, %v2668_v42, %v2689_v48  ;;  %v2680_v24 = vrot.slane %v2646_v27, %v4992_v28  ;;  %v5452_v27 = vld [vmem:[#allocation36_spill] sm:$0xff] }
 0x318   : > { %2619 = vadd.xlane.f32.xlu1 %v2618_v37  ;;  %v2684_v41 = vrot.slane %v2647_v34, %v4992_v28  ;;  %v2467_v6 = vrot.slane %v4880_v21, 6  ;;  %v2487_v23 = vmul.f32 0.35355338, %v4888_v46  ;;  %v2691_v8 = vsel %vm764_vm6, %v2672_v7, %v2690_v59 }
 0x319   : > { %v2688_v11 = vrot.slane %v2648_v29, %v4992_v28  ;;  %v2493_v36 = vpack.c.bf16 %v4882_v49, %v4882_v49  ;;  %v2494_v9 = vpack.c.bf16 %v4890_v33, %v4890_v33  ;;  %v2692_v39 = vsel %vm766_vm7, %v2676_v53, %v2691_v8  ;;  %v5455_v29 = vld [vmem:[#allocation35_spill] sm:$0xff]  ;;  %v5457_v8 = vld [vmem:[#allocation33_spill] sm:$0xff] }
 0x31a   : > { %v2693_v62 = vsel %vm754_vm1, %v2684_v41, %v2680_v24  ;;  %v5435_v32 = vunpack.c.l.b16 %v4695_v26  ;;  %v5436_v31 = vunpack.c.l.bf16 %v4827_v15  ;;  %v2697_v25 = vsel %vm2613_vm14, %v2692_v39, 0.0 }
 0x31b   : > { %v2694_v28 = vsel %vm756_vm2, %v2688_v11, %v2693_v62  ;;  %v5437_v49 = vpack.c.bf16 %v4783_v18, %v4783_v18  ;;  %v2826_v33 = vsel %vm754_vm1, %v2825_v2, %v4817_v16  ;;  %v5438_v55 = vunpack.c.l.bf16 %v4820_v4  ;;  %2698 = vadd.xlane.f32.xlu0 %v2697_v25  ;;  %v5441_v16 = vld [vmem:[#allocation44_spill] sm:$0xff]  ;;  %v5443_v4 = vld [vmem:[#allocation45_spill] sm:$0xff] }
 0x31c   : > { %v2827_v51 = vrot.slane %v5435_v32, 1  ;;  %v2481_v46 = vadd.f32 %v2466_v0, %v5436_v31  ;;  %v2700_v26 = vsel %vm2617_vm15, %v2694_v28, 0.0  ;;  %v2210_v15 = vsel %vm764_vm6, %v4797_v12, %v4807_v35  ;;  %v5446_v12 = vld [vmem:[#allocation47_spill] sm:$0xff]  ;;  %v5458_v32 = vld [vmem:[#allocation37_spill] sm:$0xff] }
 0x31d   : > { %v2107_v61 = vunpack.c.l.b16 %v5437_v49  ;;  %v2480_v47 = vadd.f32 %v4781_v14, %v5438_v55  ;;  %v5440_v60 = vpack.c.bf16 %v5439_v63, %v5439_v63  ;;  %v2468_v18 = vrot.slane %v4880_v21, 7  ;;  %2701 = vadd.xlane.f32.xlu1 %v2700_v26  ;;  %v5461_v55 = vld [vmem:[#allocation46_spill] sm:$0xff] }
 0x31e   : > { %v2495_v13 = vpack.c.bf16 %v2487_v23, %v2487_v23  ;;  %v5442_v10 = vrot.slane %v5441_v16, 2  ;;  %v5444_v54 = vrot.slane %v5443_v4, 1  ;;  %v5445_v5 = vunpack.c.l.bf16 %v4838_v57  ;;  %v5464_v16 = vld [vmem:[#allocation43_spill] sm:$0xff] }
 0x31f   : > { %v2106_v43 = vunpack.c.l.b16 %v5440_v60  ;;  %v2729_v38 = vunpack.c.l.b16 %v2493_v36  ;;  %v2730_v30 = vunpack.c.l.b16 %v2494_v9  ;;  %v1874_v35 = vpack.c.bf16 %v5446_v12, %v5446_v12 }
 0x320   : > { %v2114_v14 = vsel %vm754_vm1, %v5444_v54, %v5442_v10  ;;  %v2482_v50 = vadd.f32 %v2467_v6, %v5445_v5  ;;  %v5448_v3 = vpack.c.bf16 %v5447_v22, %v5447_v22  ;;  %v2828_v1 = vsel %vm756_vm2, %v2827_v51, %v2826_v33 }
 0x321   : > { %v2489_v40 = vmul.f32 0.35355338, %v2481_v46  ;;  %v1875_v20 = vpack.c.bf16 %v5449_v45, %v5449_v45  ;;  %v5451_v42 = vpack.c.bf16 %v5450_v44, %v5450_v44  ;;  %v2116_v7 = vrot.slane %v2107_v61, 7 }
 0x322   : > { %v2108_v17 = vunpack.c.l.b16 %v5448_v3  ;;  %v2488_v37 = vmul.f32 0.35355338, %v2480_v47  ;;  %v2115_v53 = vsel %vm756_vm2, %v2106_v43, %v2114_v14  ;;  %v5453_v34 = vunpack.c.l.b16 %v5452_v27 }
 0x323   : > { %v2109_v57 = vunpack.c.l.b16 %v5451_v42  ;;  %v5454_v52 = vunpack.c.l.bf16 %v4841_v56  ;;  %v2731_v0 = vunpack.c.l.b16 %v2495_v13  ;;  %v5456_v59 = vunpack.c.l.b16 %v5455_v29 }
 0x324   : > { %v2490_v41 = vmul.f32 0.35355338, %v2482_v50  ;;  %v2737_v6 = vrot.slane %v2729_v38, 3  ;;  %v2738_v23 = vrot.slane %v2730_v30, 2  ;;  %v2110_v36 = vunpack.c.l.b16 %v1874_v35  ;;  %v5466_v35 = vld [vmem:[#allocation39_spill] sm:$0xff] }
 0x325   : > { %v2483_v2 = vadd.f32 %v2468_v18, %v5454_v52  ;;  %v2829_v24 = vsel %vm758_vm3, %v5456_v59, %v2828_v1  ;;  %v2118_v9 = vrot.slane %v2108_v17, 6  ;;  %v2497_v39 = vpack.c.bf16 %v2489_v40, %v2489_v40  ;;  %v5468_v1 = vld [vmem:[#allocation34_spill] sm:$0xff] }
 0x326   : > { %v2117_v62 = vsel %vm758_vm3, %v2116_v7, %v2115_v53  ;;  %v5459_v51 = vunpack.c.l.b16 %v5458_v32  ;;  %v5460_v31 = vunpack.c.l.bf16 %v4850_v19  ;;  %v2496_v25 = vpack.c.bf16 %v2488_v37, %v2488_v37  ;;  %v5462_v19 = vld [vmem:[#allocation38_spill] sm:$0xff] }
 0x327   : > { %v2491_v61 = vmul.f32 0.35355338, %v2483_v2  ;;  %v2740_v33 = vrot.slane %v2731_v0, 1  ;;  %v2212_v47 = vsel %vm766_vm7, %v5461_v55, %v2210_v15  ;;  %v2120_v26 = vrot.slane %v2109_v57, 5 }
 0x328   : > { %v2832_v56 = vrot.slane %v5459_v51, 6  ;;  %v2484_v46 = vadd.f32 %v4880_v21, %v5460_v31  ;;  %v2498_v63 = vpack.c.bf16 %v2490_v41, %v2490_v41  ;;  %v2739_v60 = vsel %vm754_vm1, %v2738_v23, %v2737_v6 }
 0x329   : > { %v2119_v43 = vsel %vm760_vm4, %v2118_v9, %v2117_v62  ;;  %v5463_v18 = vunpack.c.l.b16 %v5462_v19  ;;  %v2733_v13 = vunpack.c.l.b16 %v2497_v39  ;;  %v5465_v10 = vmov 0.0  }
 0x32a   : > { %v2111_v4 = vunpack.c.l.b16 %v1875_v20  ;;  %v2492_v54 = vmul.f32 0.35355338, %v2484_v46  ;;  %v2732_v14 = vunpack.c.l.b16 %v2496_v25  ;;  %v2213_v5 = vpack.c.b16 %v2212_v47, %v2212_v47 }
 0x32b   : > { %v2834_v21 = vrot.slane %v5463_v18, 5  ;;  %v2122_v50 = vrot.slane %v2110_v36, 4  ;;  %v2499_v38 = vpack.c.bf16 %v2491_v61, %v2491_v61  ;;  %v2741_v30 = vsel %vm756_vm2, %v2740_v33, %v2739_v60 }
 0x32c   : > { %v2121_v12 = vsel %vm762_vm5, %v2120_v26, %v2119_v43  ;;  %v5467_v22 = vunpack.c.l.b16 %v5466_v35  ;;  %v2734_v17 = vunpack.c.l.b16 %v2498_v63  ;;  %v1501_v40 = vpack.c.b16 %v5468_v1, %v5468_v1  ;;  %v3606_v26 = vld [vmem:[%s4389_s20] sm:$0xff] }
 0x32d   : > { %v2743_v20 = vrot.slane %v2733_v13, 7  ;;  %v2124_v44 = vrot.slane %v2111_v4, 3  ;;  %v2500_v42 = vpack.c.bf16 %v2492_v54, %v2492_v54  ;;  %v2742_v57 = vsel %vm758_vm3, %v2732_v14, %v2741_v30 }
 0x32e   : > { %v2836_v3 = vrot.slane %v5467_v22, 4  ;;  %v2218_v7 = vsel %vm769_vm8, %v2213_v5, 0  ;;  %v2123_v37 = vsel %vm764_vm6, %v2122_v50, %v2121_v12  ;;  %v2735_v53 = vunpack.c.l.b16 %v2499_v38  ;;  %v3326_v12 = vld [vmem:[%s4382_s3 + $0x4] sm:$0xff]  }
 0x32f   : > { %v2125_v52 = vsel %vm766_vm7, %v2124_v44, %v2123_v37  ;;  %v2736_v2 = vunpack.c.l.b16 %v2500_v42  ;;  %vm1457_vm10 = vcmask 1046528   ;;  %vm2082_vm11 = vcmask 1045504  }
 0x330   : > { %v2126_v59 = vpack.c.b16 %v2125_v52, %v2125_v52  ;;  %vm1169_vm12 = vcmask 60416   ;;  %vm2707_vm13 = vcmask 1044480  }
 0x344   : > { %v1030_v58 = vpop.xlane.xlu1 %1029 }
 0x345   : > { %3592 = vrcp.f32 %v1030_v58  ;;  %v2830_v58 = vrot.slane %v5453_v34, 7  ;;  %v2745_v34 = vrot.slane %v2734_v17, 6  ;;  %v1470_v17 = vunpack.c.l.bf16 %v3326_v12 }
 0x347   : > { %v2831_v49 = vsel %vm760_vm4, %v2830_v58, %v2829_v24  ;;  %v2744_v58 = vsel %vm760_vm4, %v2743_v20, %v2742_v57  ;;  %v2749_v24 = vrot.slane %v2736_v2, 4 }
 0x348   : > { %v2833_v15 = vsel %vm762_vm5, %v2832_v56, %v2831_v49  ;;  %v2746_v29 = vsel %vm762_vm5, %v2745_v34, %v2744_v58 }
 0x349   : > { %v2835_v45 = vsel %vm764_vm6, %v2834_v21, %v2833_v15 }
 0x34a   : > { %v2837_v27 = vsel %vm766_vm7, %v2836_v3, %v2835_v45 }
 0x34b   : > { %v2838_v0 = vpack.c.b16 %v2837_v27, %v2837_v27 }
 0x34d   : > { %v2843_v41 = vsel %vm769_vm8, %v2838_v0, 0  ;;  %v2095_v0 = vunpack.c.h.bf16 %v3326_v12 }
 0x34f   : > { %v3593_v48 = vpop.eup %3592 }
 0x350   : > { %v1032_v11 = vmul.f32 %v3593_v48, %v5457_v8  ;;  %v2747_v48 = vrot.slane %v2735_v53, 5 }
 0x352   : > { %v1033_v28 = vpack.c.bf16 %v1032_v11, %v1032_v11  ;;  %v2748_v6 = vsel %vm764_vm6, %v2747_v48, %v2746_v29 }
 0x353   : > { %v2750_v23 = vsel %vm766_vm7, %v2749_v24, %v2748_v6 }
 0x354   : > { %3427 = vmatmul.mubr.msk.bf16.vlgmr.msra.gmra.mrb[0].mxu1 %vm769_vm8, %v1033_v28  ;;  %v2751_v8 = vpack.c.b16 %v2750_v23, %v2750_v23 }
 0x355   : > { %3431 = vmatpush3.bf16.xpose.msra.mxu1 %v5464_v16  ;;  %3432 = vmatprep.mubr.msk.bf16.mxu1 %vm3957_vm0, %v5465_v10 }
 0x356   : > { %3442 = vmatprep.subr.bf16.mxu1 %v5465_v10 }
 0x35c   : > { %3433 = vmatmul.mubr.msk.bf16.vlgmr.msra.gmra.mrb[4].mxu1 %vm769_vm8, %v1501_v40 }
 0x35d   : > { %3443 = vmatpush3.bf16.xpose.msra.mxu1 %v2218_v7  ;;  %3444 = vmatprep.mubr.msk.bf16.mxu1 %vm3957_vm0, %v5465_v10 }
 0x35e   : > { %3454 = vmatprep.subr.bf16.mxu1 %v5465_v10 }
 0x364   : > { %3445 = vmatmul.mubr.msk.bf16.vlgmr.msra.gmra.mrb[8].mxu1 %vm769_vm8, %v2126_v59 }
 0x365   : > { %3455 = vmatpush3.bf16.xpose.msra.mxu1 %v2843_v41  ;;  %3456 = vmatprep.mubr.msk.bf16.mxu1 %vm3957_vm0, %v5465_v10 }
 0x36c   : > { %3457 = vmatmul.mubr.msk.bf16.vlgmr.msra.gmra.mrb[12].mxu1 %vm769_vm8, %v2751_v8 }
 0x373   : > { %v1366_v11 = vpop.xlane.xlu0 %1365 }
 0x377   : > { %v1370_v36 = vpop.xlane.xlu1 %1369 }
 0x37b   : > { %v1449_v9 = vpop.xlane.xlu0 %1448 }
 0x37c   : > { %v1452_v39 = vpop.xlane.xlu1 %1451  ;;  %v1453_v51 = vsub.f32 %v1366_v11, %v1449_v9 }
 0x37d   : > { %v1454_v56 = vsub.f32 %v1370_v36, %v1452_v39 }
 0x37e   : > { %v1458_v25 = vrot.slane %v1453_v51, 1 }
 0x37f   : > { %v1459_v28 = vrot.slane %v1454_v56, 1 }
 0x381   : > { %v1460_v33 = vsel %vm1457_vm10, %v1458_v25, %v1459_v28 }
 0x382   : > { %v1462_v63 = vmul.f32 %v3606_v26, %v1460_v33 }
 0x384   : > { %v1464_v21 = vrot.slane %v1462_v63, 7 }
 0x386   : > { %v1466_v5 = vadd.f32 %v1464_v21, %v1449_v9  ;;  %v1467_v50 = vadd.f32 %v1464_v21, %v1452_v39  ;;  %v3374_v9 = vld [vmem:[%s4382_s3 + $0xc] sm:$0xf] }
 0x387   : > { %v2720_v51 = vunpack.c.l.bf16 %v3374_v9  ;;  %v3361_v9 = vld.sshfl [vmem:[%s4380_s1 + $0x2] sm:$0x2 pattern:$0x76325410] }
 0x388   : > { %v1637_v1 = vrot.slane %v1466_v5, 1  ;;  %v1638_v40 = vrot.slane %v1467_v50, 1  ;;  %v3336_v5 = vld.sshfl [vmem:[%s4380_s1] sm:$0x1 pattern:$0x76325410] }
 0x389   : > { %v1991_v62 = vpop.xlane.xlu0 %1990  ;;  %v3338_v50 = vld.sshfl [vmem:[%s4380_s1 + $0x4] sm:$0x1 pattern:$0x76325410] }
 0x38a   : > { %v1639_v34 = vsel %vm1457_vm10, %v1637_v1, %v1638_v40  ;;  %v1720_v12 = vunpack.c.l.b16 %v3338_v50  ;;  %v3340_v40 = vld.sshfl [vmem:[%s4380_s1 + $0x8] sm:$0x1 pattern:$0x76325410] }
 0x38e   : > { %v1995_v32 = vpop.xlane.xlu1 %1994 }
 0x391   : > { %v2074_v31 = vpop.xlane.xlu0 %2073 }
 0x392   : > { %v2078_v55 = vsub.f32 %v1991_v62, %v2074_v31 }
 0x393   : > { %v2077_v46 = vpop.xlane.xlu1 %2076 }
 0x394   : > { %v2079_v47 = vsub.f32 %v1995_v32, %v2077_v46  ;;  %v2083_v60 = vrot.slane %v2078_v55, 2 }
 0x396   : > { %v2084_v43 = vrot.slane %v2079_v47, 2 }
 0x398   : > { %v2085_v13 = vsel %vm2082_vm11, %v2083_v60, %v2084_v43 }
 0x399   : > { %v2087_v38 = vmul.f32 %v3606_v26, %v2085_v13 }
 0x39b   : > { %v2089_v45 = vrot.slane %v2087_v38, 6  ;;  %v1718_v38 = vunpack.c.l.b16 %v3336_v5 }
 0x39d   : > { %v2091_v7 = vadd.f32 %v2089_v45, %v2074_v31  ;;  %v2092_v37 = vadd.f32 %v2089_v45, %v2077_v46 }
 0x39e   : > { %v2616_v49 = vpop.xlane.xlu0 %2615 }
 0x39f   : > { %v2262_v48 = vrot.slane %v2091_v7, 2  ;;  %v2263_v29 = vrot.slane %v2092_v37, 2  ;;  %v3342_v7 = vld.sshfl [vmem:[%s4380_s1 + $0xc] sm:$0x1 pattern:$0x76325410] }
 0x3a1   : > { %v2264_v36 = vsel %vm2082_vm11, %v2262_v48, %v2263_v29 }
 0x3a5   : > { %v2620_v61 = vpop.xlane.xlu1 %2619 }
 0x3a8   : > { %v2699_v19 = vpop.xlane.xlu0 %2698 }
 0x3a9   : > { %v2703_v16 = vsub.f32 %v2616_v49, %v2699_v19 }
 0x3aa   : > { %v2702_v18 = vpop.xlane.xlu1 %2701 }
 0x3ab   : > { %v2704_v4 = vsub.f32 %v2620_v61, %v2702_v18  ;;  %v2708_v35 = vrot.slane %v2703_v16, 3 }
 0x3ad   : > { %v2709_v3 = vrot.slane %v2704_v4, 3 }
 0x3af   : > { %v2710_v20 = vsel %vm2707_vm13, %v2708_v35, %v2709_v3 }
 0x3b0   : > { %v2712_v53 = vmul.f32 %v3606_v26, %v2710_v20  ;;  %v1728_v20 = vrot.slane %v1720_v12, 7 }
 0x3b2   : > { %v2714_v59 = vrot.slane %v2712_v53, 5 }
 0x3b4   : > { %v2716_v23 = vadd.f32 %v2714_v59, %v2699_v19  ;;  %v2717_v8 = vadd.f32 %v2714_v59, %v2702_v18 }
 0x3b6   : > { %v2887_v56 = vrot.slane %v2716_v23, 3  ;;  %v2888_v31 = vrot.slane %v2717_v8, 3 }
 0x3b8   : > { %v2889_v61 = vsel %vm2707_vm13, %v2887_v56, %v2888_v31 }
 0x427   : > { %v1162_v15 = vpop.f32.mrb[0].mxu1 }
 0x428   : > { %v1168_v54 = vpack.c.bf16 %v1162_v15, %v1162_v15  ;;  %v3428_v14 = vpop.f32.mrb[1].mxu1 }
 0x429   : > { %v1165_v30 = vpop.f32.mrb[2].mxu1 }
 0x42a   : > { %1170 = vst.msk [vmem:[%s5136_s25] sm:$0xf] %vm1169_vm12, %v1168_v54  ;;  %v3429_v22 = vpop.f32.mrb[3].mxu1 }
 0x42b   : > { %v3337_v30 = vld.sshfl [vmem:[%s4380_s1 + $0x2] sm:$0x1 pattern:$0x76325410] }
 0x42c   : > { %v3339_v22 = vld.sshfl [vmem:[%s4380_s1 + $0x6] sm:$0x1 pattern:$0x76325410]  ;;  %v1719_v3 = vunpack.c.l.b16 %v3337_v30 }
 0x42d   : > { %v1721_v45 = vunpack.c.l.b16 %v3339_v22 }
 0x42f   : > { %v1629_v44 = vpop.f32.mrb[4].mxu1 }
 0x430   : > { %v1630_v42 = vadd.f32 %v1629_v44, %v1470_v17  ;;  %v3434_v57 = vpop.f32.mrb[5].mxu1  ;;  %v1726_v17 = vrot.slane %v1718_v38, 1  ;;  %v3341_v44 = vld.sshfl [vmem:[%s4380_s1 + $0xa] sm:$0x1 pattern:$0x76325410] }
 0x431   : > { %v1632_v27 = vpop.f32.mrb[6].mxu1  ;;  %v1723_v37 = vunpack.c.l.b16 %v3341_v44 }
 0x432   : > { %v3435_v58 = vpop.f32.mrb[7].mxu1  ;;  %v1641_v52 = vadd.f32 %v1639_v34, %v1630_v42  ;;  %v1722_v42 = vunpack.c.l.b16 %v3340_v40  ;;  %v1727_v57 = vsel %vm754_vm1, %v1719_v3, %v1726_v17  ;;  %v1730_v27 = vrot.slane %v1721_v45, 6  ;;  %v3343_v34 = vld.sshfl [vmem:[%s4380_s1 + $0xe] sm:$0x1 pattern:$0x76325410] }
 0x433   : > { %v1729_v53 = vsel %vm756_vm2, %v1728_v20, %v1727_v57  ;;  %v1724_v58 = vunpack.c.l.b16 %v3342_v7  ;;  %v1734_v48 = vrot.slane %v1723_v37, 4 }
 0x434   : > { %v1642_v2 = vsel %vm769_vm8, %v1641_v52, -inf }
 0x435   : > { %1643 = vmax.xlane.f32.xlu0 %v1642_v2  ;;  %v1725_v2 = vunpack.c.l.b16 %v3343_v34  ;;  %v1736_v59 = vrot.slane %v1724_v58, 3 }
 0x437   : > { %v2254_v24 = vpop.f32.mrb[8].mxu1 }
 0x438   : > { %v2255_v41 = vadd.f32 %v2254_v24, %v2095_v0  ;;  %v3446_v6 = vpop.f32.mrb[9].mxu1  ;;  %v1731_v0 = vsel %vm758_vm3, %v1730_v27, %v1729_v53 }
 0x439   : > { %v2257_v11 = vpop.f32.mrb[10].mxu1 }
 0x43a   : > { %v3447_v39 = vpop.f32.mrb[11].mxu1  ;;  %v2266_v62 = vadd.f32 %v2264_v36, %v2255_v41  ;;  %v1738_v41 = vrot.slane %v1725_v2, 2  ;;  %v3360_v36 = vld.sshfl [vmem:[%s4380_s1] sm:$0x2 pattern:$0x76325410] }
 0x43b   : > { %v2343_v39 = vunpack.c.l.b16 %v3360_v36 }
 0x43c   : > { %v2267_v32 = vsel %vm769_vm8, %v2266_v62, -inf }
 0x43d   : > { %2268 = vmax.xlane.f32.xlu1 %v2267_v32  ;;  %v3363_v32 = vld.sshfl [vmem:[%s4380_s1 + $0x6] sm:$0x2 pattern:$0x76325410]  ;;  %v2351_v56 = vrot.slane %v2343_v39, 2 }
 0x43f   : > { %v2879_v46 = vpop.f32.mrb[12].mxu1 }
 0x440   : > { %v2880_v25 = vadd.f32 %v2879_v46, %v2720_v51  ;;  %v3458_v28 = vpop.f32.mrb[13].mxu1  ;;  %v3362_v51 = vld.sshfl [vmem:[%s4380_s1 + $0x4] sm:$0x2 pattern:$0x76325410] }
 0x441   : > { %v2882_v49 = vpop.f32.mrb[14].mxu1  ;;  %v3364_v46 = vld.sshfl [vmem:[%s4380_s1 + $0x8] sm:$0x2 pattern:$0x76325410]  ;;  %v2345_v28 = vunpack.c.l.b16 %v3362_v51 }
 0x442   : > { %v3459_v33 = vpop.f32.mrb[15].mxu1  ;;  %v2891_v55 = vadd.f32 %v2889_v61, %v2880_v25  ;;  %v2346_v25 = vunpack.c.l.b16 %v3363_v32  ;;  %v3365_v61 = vld.sshfl [vmem:[%s4380_s1 + $0xa] sm:$0x2 pattern:$0x76325410] }
 0x443   : > { %v2347_v33 = vunpack.c.l.b16 %v3364_v46 }
 0x444   : > { %v2892_v47 = vsel %vm769_vm8, %v2891_v55, -inf }
 0x445   : > { %2893 = vmax.xlane.f32.xlu0 %v2892_v47  ;;  %v2982_v3 = vrot.slane %v2347_v33, 7 }
 0x4c2   : > { %v1644_v26 = vpop.xlane.xlu0 %1643 }
 0x4c3   : > { %v1645_v63 = vsub.f32 %v1641_v52, %v1644_v26  ;;  %v1732_v52 = vrot.slane %v1722_v42, 5  ;;  %v3366_v26 = vld.sshfl [vmem:[%s4380_s1 + $0xc] sm:$0x2 pattern:$0x76325410] }
 0x4c5   : > { %v1646_v60 = vmul.f32 1.442695, %v1645_v63  ;;  %v1733_v29 = vsel %vm760_vm4, %v1732_v52, %v1731_v0  ;;  %v2348_v63 = vunpack.c.l.b16 %v3365_v61 }
 0x4c6   : > { %v1735_v24 = vsel %vm762_vm5, %v1734_v48, %v1733_v29 }
 0x4c7   : > { %3594 = vpow2.f32 %v1646_v60  ;;  %v1737_v6 = vsel %vm764_vm6, %v1736_v59, %v1735_v24  ;;  %v2976_v60 = vrot.slane %v2343_v39, 3  ;;  %v2984_v45 = vrot.slane %v2348_v63, 6 }
 0x4c8   : > { %v1739_v23 = vsel %vm766_vm7, %v1738_v41, %v1737_v6 }
 0x4c9   : > { %v1740_v8 = vpack.c.b16 %v1739_v23, %v1739_v23 }
 0x4ca   : > { %v2269_v43 = vpop.xlane.xlu1 %2268 }
 0x4cb   : > { %v2270_v19 = vsub.f32 %v2266_v62, %v2269_v43  ;;  %v1745_v11 = vsel %vm1124_vm9, %v1740_v8, 0  ;;  %v2344_v62 = vunpack.c.l.b16 %v3361_v9 }
 0x4cc   : > { %3437 = vmatpush3.bf16.msra.mxu0 %v1745_v11 }
 0x4cd   : > { %v2271_v18 = vmul.f32 1.442695, %v2270_v19  ;;  %3448 = vmatprep.subr.bf16.mxu0 %v5465_v10  ;;  %v2352_v31 = vrot.slane %v2344_v62, 1  ;;  %v2977_v43 = vrot.slane %v2344_v62, 2  ;;  %v2357_v19 = vrot.slane %v2347_v33, 6 }
 0x4cf   : > { %3596 = vpow2.f32 %v2271_v18  ;;  %v2353_v49 = vsel %vm754_vm1, %v2352_v31, %v2351_v56 }
 0x4d0   : > { %v2354_v47 = vsel %vm756_vm2, %v2345_v28, %v2353_v49 }
 0x4d1   : > { %v5147_v21 = vpop.eup %3594 }
 0x4d2   : > { %v2894_v13 = vpop.xlane.xlu0 %2893  ;;  %v1648_v16 = vsel %vm769_vm8, %v5147_v21, 0.0 }
 0x4d3   : > { %v2895_v4 = vsub.f32 %v2891_v55, %v2894_v13  ;;  %1649 = vadd.xlane.f32.xlu1 %v1648_v16  ;;  %v2355_v55 = vrot.slane %v2346_v25, 7  ;;  %v3367_v13 = vld.sshfl [vmem:[%s4380_s1 + $0xe] sm:$0x2 pattern:$0x76325410]  ;;  %v2349_v16 = vunpack.c.l.b16 %v3366_v26  ;;  %s3849_s1 = scalar_lea.vmem %s3848_s5, 128 }
 0x4d4   : > { %v2350_v50 = vunpack.c.l.b16 %v3367_v13  ;;  %p3851_p10 = scmp.lt.s32.totalorder %s3849_s1, %s3843_s15 }
 0x4d5   : > { %v2896_v15 = vmul.f32 1.442695, %v2895_v4  ;;  %v2356_v18 = vsel %vm758_vm3, %v2355_v55, %v2354_v47  ;;  %v2979_v4 = vrot.slane %v2345_v28, 1  ;;  %v2361_v30 = vrot.slane %v2349_v16, 4 }
 0x4d6   : > { %v2358_v5 = vsel %vm760_vm4, %v2357_v19, %v2356_v18  ;;  %v2363_v17 = vrot.slane %v2350_v50, 3  ;;  %v2986_v57 = vrot.slane %v2349_v16, 5  ;;  %v2988_v27 = vrot.slane %v2350_v50, 4  ;;  %p3852_p1 = por %p3851_p10, %p3850_p6 }
 0x4d7   : > { %3598 = vpow2.f32 %v2896_v15  ;;  %v2359_v15 = vrot.slane %v2348_v63, 5 }
 0x4d8   : > { %p3853_p3 = pnand %p3852_p1, %p3846_p2 }
 0x4d9   : > { %v5151_v54 = vpop.eup %3596  ;;  %v2360_v22 = vsel %vm762_vm5, %v2359_v15, %v2358_v5 }
 0x4da   : > { %v2273_v14 = vsel %vm769_vm8, %v5151_v54, 0.0  ;;  %v2362_v40 = vsel %vm764_vm6, %v2361_v30, %v2360_v22 }
 0x4db   : > { %2274 = vadd.xlane.f32.xlu0 %v2273_v14  ;;  %v2978_v14 = vsel %vm754_vm1, %v2977_v43, %v2976_v60  ;;  %v2364_v44 = vsel %vm766_vm7, %v2363_v17, %v2362_v40  ;;  %vm2419_vm1 = vcmask 191616  }
 0x4dc   : > { %v2980_v12 = vsel %vm756_vm2, %v2979_v4, %v2978_v14  ;;  %v2365_v37 = vpack.c.b16 %v2364_v44, %v2364_v44  ;;  %vm3044_vm2 = vcmask 257216  }
 0x4de   : > { %v2370_v2 = vsel %vm1124_vm9, %v2365_v37, 0 }
 0x4e1   : > { %v5158_v35 = vpop.eup %3598 }
 0x4e2   : > { %v2898_v1 = vsel %vm769_vm8, %v5158_v35, 0.0 }
 0x4e3   : > { %2899 = vadd.xlane.f32.xlu1 %v2898_v1  ;;  %v2981_v1 = vsel %vm758_vm3, %v2346_v25, %v2980_v12 }
 0x4e4   : > { %v2983_v20 = vsel %vm760_vm4, %v2982_v3, %v2981_v1 }
 0x4e5   : > { %v2985_v7 = vsel %vm762_vm5, %v2984_v45, %v2983_v20 }
 0x4e6   : > { %v2987_v58 = vsel %vm764_vm6, %v2986_v57, %v2985_v7 }
 0x4e7   : > { %v2989_v0 = vsel %vm766_vm7, %v2988_v27, %v2987_v58 }
 0x4e8   : > { %v2990_v29 = vpack.c.b16 %v2989_v0, %v2989_v0 }
 0x4ea   : > { %v2995_v41 = vsel %vm1124_vm9, %v2990_v29, 0 }
 0x560   : > { %v1650_v38 = vpop.xlane.xlu1 %1649 }
 0x561   : > { %3600 = vrcp.f32 %v1650_v38 }
 0x568   : > { %v2275_v42 = vpop.xlane.xlu0 %2274 }
 0x569   : > { %3602 = vrcp.f32 %v2275_v42 }
 0x56b   : > { %v3601_v53 = vpop.eup %3600 }
 0x56c   : > { %v1652_v34 = vmul.f32 %v3601_v53, %v5147_v21 }
 0x56e   : > { %v1653_v52 = vpack.c.bf16 %v1652_v34, %v1652_v34 }
 0x570   : > { %3439 = vmatmul.mubr.msk.bf16.vlgmr.msra.gmra.mrb[4].mxu0 %vm769_vm8, %v1653_v52  ;;  %v2900_v48 = vpop.xlane.xlu1 %2899 }
 0x571   : > { %3449 = vmatpush3.bf16.msra.mxu0 %v2370_v2  ;;  %3604 = vrcp.f32 %v2900_v48  ;;  %3450 = vmatprep.mubr.msk.bf16.mxu0 %vm3957_vm0, %v5465_v10 }
 0x572   : > { %3460 = vmatprep.subr.bf16.mxu0 %v5465_v10 }
 0x573   : > { %v3603_v59 = vpop.eup %3602 }
 0x574   : > { %v2277_v21 = vmul.f32 %v3603_v59, %v5151_v54 }
 0x576   : > { %v2278_v24 = vpack.c.bf16 %v2277_v21, %v2277_v21 }
 0x578   : > { %3451 = vmatmul.mubr.msk.bf16.vlgmr.msra.gmra.mrb[8].mxu0 %vm769_vm8, %v2278_v24 }
 0x579   : > { %3461 = vmatpush3.bf16.msra.mxu0 %v2995_v41  ;;  %3462 = vmatprep.mubr.msk.bf16.mxu0 %vm3957_vm0, %v5465_v10  ;;  %vm1794_vm0 = vcmask 126016  }
 0x57b   : > { %v3605_v6 = vpop.eup %3604 }
 0x57c   : > { %v2902_v23 = vmul.f32 %v3605_v6, %v5158_v35 }
 0x57e   : > { %v2903_v8 = vpack.c.bf16 %v2902_v23, %v2902_v23 }
 0x580   : > { %3463 = vmatmul.mubr.msk.bf16.vlgmr.msra.gmra.mrb[12].mxu0 %vm769_vm8, %v2903_v8 }
 0x643   : > { %v1781_v11 = vpop.f32.mrb[4].mxu0 }
 0x644   : > { %v3399_v36 = vpack.c.bf16 %v1781_v11, %v1781_v11  ;;  %v3440_v9 = vpop.f32.mrb[5].mxu0 }
 0x645   : > { %v1784_v39 = vpop.f32.mrb[6].mxu0 }
 0x646   : > { %1791 = vrot.lane.b32.xlu0 %v3399_v36, %s3958_s17  ;;  %v3441_v54 = vpop.f32.mrb[7].mxu0 }
 0x64b   : > { %v2406_v62 = vpop.f32.mrb[8].mxu0 }
 0x64c   : > { %v3400_v32 = vpack.c.bf16 %v2406_v62, %v2406_v62  ;;  %v3452_v51 = vpop.f32.mrb[9].mxu0 }
 0x64d   : > { %v2409_v56 = vpop.f32.mrb[10].mxu0 }
 0x64e   : > { %2416 = vrot.lane.b32.xlu1 %v3400_v32, %s3959_s24  ;;  %v3453_v10 = vpop.f32.mrb[11].mxu0 }
 0x653   : > { %v3031_v35 = vpop.f32.mrb[12].mxu0 }
 0x654   : > { %v3401_v31 = vpack.c.bf16 %v3031_v35, %v3031_v35  ;;  %v3464_v46 = vpop.f32.mrb[13].mxu0 }
 0x655   : > { %v3034_v25 = vpop.f32.mrb[14].mxu0 }
 0x656   : > { %3041 = vrot.lane.b32.xlu1 %v3401_v31, %s3960_s11  ;;  %v3465_v28 = vpop.f32.mrb[15].mxu0 }
 0x6b8   : > { %v1792_v49 = vpop.permute.xlu0 %1791 }
 0x6b9   : > { %1795 = vst.msk [vmem:[%s5136_s25] sm:$0xf] %vm1794_vm0, %v1792_v49 }
 0x6c0   : > { %v2417_v61 = vpop.permute.xlu1 %2416 }
 0x6c1   : > { %2420 = vst.msk [vmem:[%s5136_s25] sm:$0xf] %vm2419_vm1, %v2417_v61 }
 0x6c8   : > { %v3042_v33 = vpop.permute.xlu1 %3041 }
 0x6c9   : > { %3045 = vst.msk [vmem:[%s5136_s25] sm:$0xf] %vm3044_vm2, %v3042_v33 }
 0x6ca   : > { %3856 = shalt.err (!%p3853_p3)
}
 0x6cb   : > { %s3857_s14 = scalar_lea.hbm %s5218_s28, 64  ;;  %s3861_s13 = scalar_lea.hbm %s5472_s19, 128 }
 0x6cc   : > { %p3858_p11 = scmp.ne.s32.totalorder %s5218_s28, %s3857_s14  ;;  %p3862_p0 = scmp.lt.u32.totalorder %s5218_s28, %s5472_s19 }
 0x6cd   : > { %p3863_p7 = scmp.lt.u32.totalorder %s3861_s13, %s3857_s14  ;;  %p3865_p9 = scmp.lt.u32.totalorder %s3857_s14, %s5218_s28 }
 0x6ce   : > { %p3859_p12 = pnand %p3858_p11, %p5473_p13 }
 0x6cf   : > { %p3864_p4 = por %p3863_p7, %p3862_p0 }
 0x6d0   : > { %p3860_p8 = pneg %p3859_p12 }
 0x6d1   : > { %p3866_p5 = por %p3865_p9, %p3864_p4 }
 0x6d3   : > { %p3867_p2 = pnand %p3866_p5, %p3860_p8 }
 0x6d5   : > { %3870 = shalt.err (!%p3867_p2)
}
 0x6d6   : > { %3489 = dma.vmem_to_hbm [thread:$0]  (%p5473_p13), %s5220_s8, 64, %s5218_s28, %s3047_s21  }
 0x6d7 PF: > { %s5474_s25 = sld [smem:[#allocation23_spill]]  ;;  %s5475_s17 = sld [smem:[#allocation30_spill]] }
 0x6d8   : > { %p5477_p10 = scmp.ge.s32.totalorder %s3941_s10, 2 }
 0x6dd   : > { %s3073_s24 = sand.u32 1, %s5474_s25   ;;  %p5476_p6 = scmp.ne.s32.totalorder %s5475_s17, 0 }
 0x6de   : > { %s3074_s22 = scalar_lea.sflag [#allocation4], %s3073_s24 }
 0x6df   : > { %p3518_p1 = pnand %p5477_p10, %p5476_p6 }
 0x6e1   : > { %3916 = dma.done.wait (!%p3518_p1), %s3074_s22, 64  }
 0x6e2   : > { %3918 = vsyncadd (!%p3518_p1), %s3074_s22, 4294967232  ;;  %s32_s10 = sadd.s32 1, %s3941_s10   ;;  %s5478_s27 = sld [smem:[#allocation24_spill]] }
 0x6e3   : > { %p29_p3 = scmp.ge.s32.totalorder %s32_s10, 4   ;;  %s5479_s28 = sld [smem:[#allocation25_spill]] }
 0x6e4   : > { %s5480_s29 = sld [smem:[#allocation32_spill]]  ;;  %s5481_s11 = sld [smem:[#allocation31_spill]] }
 0x6e5   : > { %s5482_s30 = smov %s3937_s9  ;;  %31 = sbr.rel (!%p29_p3) target bundleno = 17 (0x11), region = 164 }
 0x6ea   : > { %s5483_s9 = smov %s5481_s11 }
 0x6ec   :  { %3079 = vsyncpa [#allocation3], 1 }
 0x6ed   :  { %3081 = vsyncpa [#allocation3 + $0x1], 1 }
 0x6ee   :  { %3082 = vsyncpa [#allocation6], 1 }
 0x6ef   :  { %3084 = vsyncpa [#allocation6 + $0x1], 1 }
 0x6f0   :  { %3085 = vsyncpa [#allocation9], 1 }
 0x6f1   :  { %3087 = vsyncpa [#allocation9 + $0x1], 1 }
 0x6f2   :  { %3088 = vsyncpa [#allocation12], 1 }
 0x6f3   :  { %3089 = vsyncpa [#allocation15], 1 }
 0x6f4   :  { %3090 = vsyncpa [#allocation4], 1 }
 0x6f5   :  { %3092 = vsyncpa [#allocation4 + $0x1], 1 }

</bundles_post_ra>
